<compile_context>
chip_gen: v6e
topology: v6e:2x2x1
jax: 0.10.0
libtpu: 0.0.40
codegen_flags: <defaults>
</compile_context>

<pallas_src>
import functools

import jax
import jax.numpy as jnp
from jax.experimental import pallas as pl
from jax.experimental.pallas import tpu as pltpu

# ---------------- config (small synthetic shapes) ----------------
B = 2                      # batch
N_FRAMES = 2               # video frames
TOK_PER_FRAME = 8
S_V = N_FRAMES * TOK_PER_FRAME   # visual sequence length = 16
T_ACT = 2                  # action time steps
H_ACT = 4                  # action horizon per step
S_A = T_ACT * H_ACT        # action sequence length = 8
S_TOT = S_V + S_A          # joint sequence = 24
D = 32                     # hidden size
N_HEADS = 4
DH = D // N_HEADS          # head dim = 8
N_LAYERS = 2
VOCAB = 64
ACTION_DIM = 3
N_CMD = 4
ATTN_SCALE = 1.0           # muP attention constant: sdpa scale = ATTN_SCALE / DH
LN_EPS = 1e-5
NEG_INF = -1e30
MXU_DTYPE = jnp.bfloat16   # MXU operand dtype (accumulation stays f32)
HEAD_SLAB = 128            # lane-dense packed output slab width
HEAD_PAD = HEAD_SLAB - D   # columns used for the padded head projections
assert ACTION_DIM <= HEAD_PAD and VOCAB <= HEAD_PAD
GPT, ACT = 0, 1            # branch indices in the stacked per-layer weights


# ---------------- in-kernel helpers (pure jnp, f32 VPU math) ----------------
def _ln(x, g, b, eps=LN_EPS):
    m = jnp.mean(x, axis=-1, keepdims=True)
    var = jnp.mean(jnp.square(x - m), axis=-1, keepdims=True)
    return (x - m) * jax.lax.rsqrt(var + eps) * g + b


def _dense(x, w, b):
    # w is pre-cast to bf16 in HBM; the defensive astype is a no-op then.
    y = jnp.dot(x.astype(MXU_DTYPE), w.astype(MXU_DTYPE),
                preferred_element_type=jnp.float32)
    return y + b


# ---------------- the single fused forward kernel ----------------
def _joint_model_kernel(
        # per-batch inputs
        v_in_ref, noisy_ref, tfeat_ref, cmd_ref, bias_ref,
        # action-encoder params
        act_in_w_ref, act_in_b_ref, time_w_ref, time_b_ref,
        # stacked per-layer params [1, 2(branch), ...] (streamed per grid step)
        ln1_g_ref, ln1_b_ref, attn_w_ref, attn_b_ref,
        proj_w_ref, proj_b_ref, ln2_g_ref, ln2_b_ref,
        fc_w_ref, fc_b_ref, mlp_w_ref, mlp_b_ref,
        # head params (final LNs + padded lane-dense decoders)
        act_lnf_g_ref, act_lnf_b_ref, act_head_w_ref, act_head_b_ref,
        gpt_lnf_g_ref, gpt_lnf_b_ref, gpt_head_w_ref, gpt_head_b_ref,
        # outputs (only written at the last layer)
        act_slab_ref, vis_slab_ref,
        # scratch
        v_res_ref, a_res_ref, q_scr, k_scr, v_scr, y_scr):
    layer = pl.program_id(1)

    # ---- layer 0 (per batch shard): action encoder + load visual embeds ----
    @pl.when(layer == 0)
    def _():
        v_res_ref[...] = v_in_ref[...]
        # TODO(synk): MupActionExpert.action_encoder internals unknown;
        # synthesized as linear(actions) + command emb + projected timestep emb.
        ctx = cmd_ref[0] + _dense(tfeat_ref[0], time_w_ref[...], time_b_ref[...])
        a_res_ref[...] = (_dense(noisy_ref[...], act_in_w_ref[...],
                                 act_in_b_ref[...]) + ctx)

    v_res = v_res_ref[...]          # [S_V, D] f32, VMEM-resident across layers
    a_res = a_res_ref[...]          # [S_A, D] f32

    # ---- LN1 + fused QKV projection per branch, cast to bf16 once ----
    v_qkv = _dense(_ln(v_res, ln1_g_ref[0, GPT], ln1_b_ref[0, GPT]),
                   attn_w_ref[0, GPT], attn_b_ref[0, GPT]).astype(MXU_DTYPE)
    a_qkv = _dense(_ln(a_res, ln1_g_ref[0, ACT], ln1_b_ref[0, ACT]),
                   attn_w_ref[0, ACT], attn_b_ref[0, ACT]).astype(MXU_DTYPE)

    # ---- head-major joint Q/K/V scratch: [N_HEADS, S_TOT, DH] bf16 ----
    # (visual rows first, action rows appended -> joint sequence per head)
    for h in range(N_HEADS):
        q0, k0, v0 = h * DH, D + h * DH, 2 * D + h * DH
        q_scr[h, :S_V, :] = v_qkv[:, q0:q0 + DH]
        q_scr[h, S_V:, :] = a_qkv[:, q0:q0 + DH]
        k_scr[h, :S_V, :] = v_qkv[:, k0:k0 + DH]
        k_scr[h, S_V:, :] = a_qkv[:, k0:k0 + DH]
        v_scr[h, :S_V, :] = v_qkv[:, v0:v0 + DH]
        v_scr[h, S_V:, :] = a_qkv[:, v0:v0 + DH]

    # ---- mixed attention, heads batched in one pair of MXU einsums ----
    scale = ATTN_SCALE / DH                       # muP: attn_scale / head_dim
    bias = bias_ref[0].astype(jnp.float32)        # [S_TOT, S_TOT], loaded once
    s = jnp.einsum('hqd,hkd->hqk', q_scr[...], k_scr[...],
                   preferred_element_type=jnp.float32)
    s = s * scale + bias                          # bias broadcast over heads
    m = jnp.max(s, axis=-1, keepdims=True)
    p = jnp.exp(s - m)
    denom = jnp.sum(p, axis=-1, keepdims=True)
    o = jnp.einsum('hqk,hkd->hqd', p.astype(MXU_DTYPE), v_scr[...],
                   preferred_element_type=jnp.float32)
    o = o * pl.reciprocal(denom, approx=True)     # EUP slot; ~1e-3 rel error

    # head merge in VMEM scratch (no XLA transpose / HBM round trip)
    for h in range(N_HEADS):
        y_scr[:, h * DH:(h + 1) * DH] = o[h]

    # ---- out-proj + residual, then per-branch GELU MLP + residual ----
    v_res = v_res + _dense(y_scr[:S_V, :], proj_w_ref[0, GPT], proj_b_ref[0, GPT])
    a_res = a_res + _dense(y_scr[S_V:, :], proj_w_ref[0, ACT], proj_b_ref[0, ACT])

    h_v = jax.nn.gelu(_dense(_ln(v_res, ln2_g_ref[0, GPT], ln2_b_ref[0, GPT]),
                             fc_w_ref[0, GPT], fc_b_ref[0, GPT]),
                      approximate=True)           # GPT2 "gelu_new"
    v_res = v_res + _dense(h_v, mlp_w_ref[0, GPT], mlp_b_ref[0, GPT])

    h_a = jax.nn.gelu(_dense(_ln(a_res, ln2_g_ref[0, ACT], ln2_b_ref[0, ACT]),
                             fc_w_ref[0, ACT], fc_b_ref[0, ACT]),
                      approximate=True)           # TODO(synk): confirm tanh GELU
    a_res = a_res + _dense(h_a, mlp_w_ref[0, ACT], mlp_b_ref[0, ACT])

    v_res_ref[...] = v_res
    a_res_ref[...] = a_res

    # ---- last layer: fused heads, 128-lane-dense packed output slabs ----
    @pl.when(layer == pl.num_programs(1) - 1)
    def _():
        a_ln = _ln(a_res, act_lnf_g_ref[...], act_lnf_b_ref[...])
        act_slab_ref[:, :D] = a_ln
        act_slab_ref[:, D:] = _dense(a_ln, act_head_w_ref[...], act_head_b_ref[...])
        v_ln = _ln(v_res, gpt_lnf_g_ref[...], gpt_lnf_b_ref[...])
        vis_slab_ref[:, :D] = v_ln
        vis_slab_ref[:, D:] = _dense(v_ln, gpt_head_w_ref[...], gpt_head_b_ref[...])


# ---------------- parameter packing ----------------
def pack_layer_params(p):
    """Stack per-layer weights [N_LAYERS, 2(branch: gpt=0, act=1), ...];
    matmul weights pre-cast to bf16 (halves the streamed weight DMA)."""
    def stack(name):
        return jnp.stack([
            jnp.stack([p["gpt_blocks"][l][name], p["act_blocks"][l][name]])
            for l in range(N_LAYERS)])

    packed = {}
    for name in ("ln1_g", "ln1_b", "ln2_g", "ln2_b",
                 "attn_b", "proj_b", "fc_b", "mlp_proj_b"):
        s = stack(name)                                      # [L, 2, N]
        packed[name] = s.reshape(N_LAYERS, 2, 1, s.shape[-1])   # f32 (negligible bytes)
    for name in ("attn_w", "proj_w", "fc_w", "mlp_proj_w"):
        packed[name] = stack(name).astype(MXU_DTYPE)         # [L, 2, K, N] bf16
    return packed


def pack_aux_params(p):
    """Encoder + final-LN + lane-dense padded head params (bf16 MXU weights)."""
    aux = {
        "act_in_w": p["act_in_w"].astype(MXU_DTYPE),
        "act_in_b": p["act_in_b"].reshape(1, D),
        "time_w": p["time_w"].astype(MXU_DTYPE),
        "time_b": p["time_b"].reshape(1, D),
        "act_lnf_g": p["act_ln_f_g"].reshape(1, D),
        "act_lnf_b": p["act_ln_f_b"].reshape(1, D),
        "gpt_lnf_g": p["gpt_ln_f_g"].reshape(1, D),
        "gpt_lnf_b": p["gpt_ln_f_b"].reshape(1, D),
    }
    # Zero-pad the head projections to a 128-wide (with the LN'd embeds) slab
    # so the output stores are lane-dense; wrapper slices the real columns.
    act_w = jnp.zeros((D, HEAD_PAD), jnp.float32).at[:, :ACTION_DIM].set(p["act_out_w"])
    act_b = jnp.zeros((1, HEAD_PAD), jnp.float32).at[:, :ACTION_DIM].set(p["act_out_b"][None, :])
    gpt_w = jnp.zeros((D, HEAD_PAD), jnp.float32).at[:, :VOCAB].set(p["lm_head_w"])
    gpt_b = jnp.zeros((1, HEAD_PAD), jnp.float32).at[:, :VOCAB].set(p["lm_head_b"][None, :])
    aux["act_head_w"] = act_w.astype(MXU_DTYPE)
    aux["act_head_b"] = act_b
    aux["gpt_head_w"] = gpt_w.astype(MXU_DTYPE)
    aux["gpt_head_b"] = gpt_b
    return aux


# ---------------- pallas_call wrapper ----------------
def _joint_model_call(v_flat, noisy_flat, tfeat, cmd, attn_bias, packed, aux, Bv):
    layer_names = ("ln1_g", "ln1_b", "attn_w", "attn_b", "proj_w", "proj_b",
                   "ln2_g", "ln2_b", "fc_w", "fc_b", "mlp_proj_w", "mlp_proj_b")
    layer_args = [packed[n] for n in layer_names]
    aux_pre = [aux["act_in_w"], aux["act_in_b"], aux["time_w"], aux["time_b"]]
    aux_post = [aux["act_lnf_g"], aux["act_lnf_b"], aux["act_head_w"], aux["act_head_b"],
                aux["gpt_lnf_g"], aux["gpt_lnf_b"], aux["gpt_head_w"], aux["gpt_head_b"]]

    def full_spec(arr):
        zeros = (0,) * arr.ndim
        return pl.BlockSpec(arr.shape, lambda b, l: zeros)

    def per_layer_spec(arr):      # stream one layer's [2, ...] block per step
        tail = (0,) * (arr.ndim - 1)
        return pl.BlockSpec((1,) + arr.shape[1:], lambda b, l: (l,) + tail)

    def per_batch_rows(rows, cols):
        return pl.BlockSpec((rows, cols), lambda b, l: (b, 0))

    def per_batch3(arr):
        return pl.BlockSpec((1,) + arr.shape[1:], lambda b, l: (b, 0, 0))

    in_specs = ([per_batch_rows(S_V, D), per_batch_rows(S_A, ACTION_DIM),
                 per_batch3(tfeat), per_batch3(cmd), per_batch3(attn_bias)]
                + [full_spec(a) for a in aux_pre]
                + [per_layer_spec(w) for w in layer_args]
                + [full_spec(a) for a in aux_post])

    out_shape = (jax.ShapeDtypeStruct((Bv * S_A, HEAD_SLAB), jnp.float32),
                 jax.ShapeDtypeStruct((Bv * S_V, HEAD_SLAB), jnp.float32))
    out_specs = (pl.BlockSpec((S_A, HEAD_SLAB), lambda b, l: (b, 0)),
                 pl.BlockSpec((S_V, HEAD_SLAB), lambda b, l: (b, 0)))

    scratch_shapes = [
        pltpu.VMEM((S_V, D), jnp.float32),            # visual residual stream
        pltpu.VMEM((S_A, D), jnp.float32),            # action residual stream
        pltpu.VMEM((N_HEADS, S_TOT, DH), MXU_DTYPE),  # head-major joint Q
        pltpu.VMEM((N_HEADS, S_TOT, DH), MXU_DTYPE),  # head-major joint K
        pltpu.VMEM((N_HEADS, S_TOT, DH), MXU_DTYPE),  # head-major joint V
        pltpu.VMEM((S_TOT, D), jnp.float32),          # merged attention output
    ]

    # NOTE: at production sizes, also set vmem_limit_bytes and tile fc_w /
    # mlp_proj_w over an inner K/N axis (v7x has only 64 MiB VMEM).
    return pl.pallas_call(
        _joint_model_kernel,
        out_shape=out_shape,
        grid=(Bv, N_LAYERS),
        in_specs=in_specs,
        out_specs=out_specs,
        scratch_shapes=scratch_shapes,
        compiler_params=pltpu.CompilerParams(
            # batch "parallel" -> shardable across v7x's two TensorCores;
            # layer "arbitrary" -> sequential, residuals stay VMEM-resident.
            dimension_semantics=("parallel", "arbitrary")),
    )(v_flat, noisy_flat, tfeat, cmd, attn_bias, *aux_pre, *layer_args, *aux_post)


# ---------------- glue: embeddings (XLA gathers / sinusoids) ----------------
def prepare_token_sequence(visual_tokens):
    # TODO(synk): exact prepare_token_sequence layout unknown; synthesize
    # frame-major spatial/temporal positions for a flat visual token sequence.
    Bv, Sv = visual_tokens.shape
    idx = jnp.arange(Sv)
    return {
        "token_sequence": visual_tokens,
        "spatial_positions": jnp.broadcast_to(idx % TOK_PER_FRAME, (Bv, Sv)),
        "temporal_positions": jnp.broadcast_to(idx // TOK_PER_FRAME, (Bv, Sv)),
    }


def visual_tokens_to_embeds(p, visual_tokens):
    seq = prepare_token_sequence(visual_tokens)
    tok = jnp.take(p["wie"], seq["token_sequence"], axis=0)
    tem = jnp.take(p["wte"], seq["temporal_positions"], axis=0)
    spa = jnp.take(p["wse"], seq["spatial_positions"], axis=0)
    return tok + tem + spa                       # [B, S_V, D]


def timestep_features(t, dim):
    half = dim // 2
    freqs = jnp.exp(-jnp.log(10000.0) * jnp.arange(half, dtype=jnp.float32) / half)
    args = t[:, None].astype(jnp.float32) * freqs[None, :]
    return jnp.concatenate([jnp.sin(args), jnp.cos(args)], axis=-1)   # [B, dim]


# ---------------- full forward ----------------
def joint_model_forward(p, attention_mask, inputs_all, return_gpt=False):
    # TODO(synk): KV-cache inference path is Python-stateful; only the
    # no-cache (training-style) forward is implemented here.
    Bv = inputs_all["visual_tokens"].shape[0]
    visual_embeds = visual_tokens_to_embeds(p, inputs_all["visual_tokens"])
    v_flat = visual_embeds.reshape(Bv * S_V, D).astype(jnp.float32)

    noisy_flat = inputs_all["noisy_actions"].reshape(Bv * S_A, ACTION_DIM)
    noisy_flat = noisy_flat.astype(jnp.float32)
    tfeat = timestep_features(inputs_all["diffusion_step"], D).reshape(Bv, 1, D)
    cmd = jnp.take(p["cmd_emb"], inputs_all["high_level_command"],
                   axis=0).reshape(Bv, 1, D)

    # bool mask (True = attend) -> compact bf16 additive bias (half the HBM
    # bytes of f32; at production S generate it in-kernel from iota instead).
    attn_bias = jnp.where(attention_mask[:, 0], 0.0, NEG_INF).astype(jnp.bfloat16)

    act_slab, vis_slab = _joint_model_call(
        v_flat, noisy_flat, tfeat, cmd, attn_bias,
        pack_layer_params(p), pack_aux_params(p), Bv)

    outputs = {
        "actions": act_slab[:, D:D + ACTION_DIM].reshape(Bv, T_ACT, H_ACT, ACTION_DIM),
        "actions_embeds": act_slab[:, :D].reshape(Bv, T_ACT, H_ACT, D),
    }
    if return_gpt:   # the kernel always fills the GPT slab; gate the outputs
        outputs["visual_embeds"] = vis_slab[:, :D].reshape(Bv, S_V, D)
        outputs["visual_logits"] = vis_slab[:, D:D + VOCAB].reshape(Bv, S_V, VOCAB)
    return outputs


# ---------------- parameters ----------------
def init_params(key):
    def normal(k, shape, scale=0.02):
        return scale * jax.random.normal(k, shape, dtype=jnp.float32)

    keys = iter(jax.random.split(key, 256))
    p = {}
    p["wie"] = normal(next(keys), (VOCAB, D))
    p["wte"] = normal(next(keys), (N_FRAMES, D))
    p["wse"] = normal(next(keys), (TOK_PER_FRAME, D))
    p["act_in_w"] = normal(next(keys), (ACTION_DIM, D))
    p["act_in_b"] = jnp.zeros((D,), jnp.float32)
    p["cmd_emb"] = normal(next(keys), (N_CMD, D))
    p["time_w"] = normal(next(keys), (D, D))
    p["time_b"] = jnp.zeros((D,), jnp.float32)
    p["act_ln_f_g"] = jnp.ones((D,), jnp.float32)
    p["act_ln_f_b"] = jnp.zeros((D,), jnp.float32)
    p["act_out_w"] = normal(next(keys), (D, ACTION_DIM))
    p["act_out_b"] = jnp.zeros((ACTION_DIM,), jnp.float32)
    p["gpt_ln_f_g"] = jnp.ones((D,), jnp.float32)
    p["gpt_ln_f_b"] = jnp.zeros((D,), jnp.float32)
    p["lm_head_w"] = normal(next(keys), (D, VOCAB))
    p["lm_head_b"] = jnp.zeros((VOCAB,), jnp.float32)

    def block():
        return {
            "ln1_g": jnp.ones((D,), jnp.float32), "ln1_b": jnp.zeros((D,), jnp.float32),
            "ln2_g": jnp.ones((D,), jnp.float32), "ln2_b": jnp.zeros((D,), jnp.float32),
            "attn_w": normal(next(keys), (D, 3 * D)), "attn_b": jnp.zeros((3 * D,), jnp.float32),
            "proj_w": normal(next(keys), (D, D)), "proj_b": jnp.zeros((D,), jnp.float32),
            "fc_w": normal(next(keys), (D, 4 * D)), "fc_b": jnp.zeros((4 * D,), jnp.float32),
            "mlp_proj_w": normal(next(keys), (4 * D, D)), "mlp_proj_b": jnp.zeros((D,), jnp.float32),
        }

    p["gpt_blocks"] = [block() for _ in range(N_LAYERS)]
    p["act_blocks"] = [block() for _ in range(N_LAYERS)]
    return p


def build_joint_attention_mask():
    # visual queries: causal over visual keys only (cannot see action tokens);
    # action queries: attend to all visual and all action tokens.
    causal = jnp.tril(jnp.ones((S_TOT, S_TOT), dtype=bool))
    is_visual = jnp.arange(S_TOT) < S_V
    mask = jnp.where(is_visual[:, None], causal & is_visual[None, :], True)
    return jnp.broadcast_to(mask[None, None], (B, 1, S_TOT, S_TOT))


if __name__ == "__main__":
    key = jax.random.PRNGKey(0)
    kp, k1, k2, k3, k4 = jax.random.split(key, 5)
    params = init_params(kp)

    inputs_all = {
        "visual_tokens": jax.random.randint(k1, (B, S_V), 0, VOCAB),
        "noisy_actions": jax.random.normal(k2, (B, T_ACT, H_ACT, ACTION_DIM),
                                           dtype=jnp.float32),
        "high_level_command": jax.random.randint(k3, (B,), 0, N_CMD),
        "diffusion_step": jax.random.uniform(k4, (B,), dtype=jnp.float32),
    }
    attention_mask = build_joint_attention_mask()

    fwd = jax.jit(functools.partial(joint_model_forward, return_gpt=True))
    outputs = jax.block_until_ready(fwd(params, attention_mask, inputs_all))

    assert outputs["actions"].shape == (B, T_ACT, H_ACT, ACTION_DIM)
    assert outputs["actions_embeds"].shape == (B, T_ACT, H_ACT, D)
    assert outputs["visual_embeds"].shape == (B, S_V, D)
    assert outputs["visual_logits"].shape == (B, S_V, VOCAB)
    assert all(bool(jnp.all(jnp.isfinite(v))) for v in outputs.values())
    print("KERNEL_OK")
</pallas_src>

<mosaic_0001>
module attributes {stable_mosaic.version = 11 : i64} {
  func.func @_joint_model_kernel(%arg0: i32, %arg1: i32, %arg2: memref<16x32xf32, #tpu.memory_space<vmem>>, %arg3: memref<8x3xf32, #tpu.memory_space<vmem>>, %arg4: memref<1x1x32xf32, #tpu.memory_space<vmem>>, %arg5: memref<1x1x32xf32, #tpu.memory_space<vmem>>, %arg6: memref<1x24x24xbf16, #tpu.memory_space<vmem>>, %arg7: memref<3x32xbf16, #tpu.memory_space<vmem>>, %arg8: memref<1x32xf32, #tpu.memory_space<vmem>>, %arg9: memref<32x32xbf16, #tpu.memory_space<vmem>>, %arg10: memref<1x32xf32, #tpu.memory_space<vmem>>, %arg11: memref<1x2x1x32xf32, #tpu.memory_space<vmem>>, %arg12: memref<1x2x1x32xf32, #tpu.memory_space<vmem>>, %arg13: memref<1x2x32x96xbf16, #tpu.memory_space<vmem>>, %arg14: memref<1x2x1x96xf32, #tpu.memory_space<vmem>>, %arg15: memref<1x2x32x32xbf16, #tpu.memory_space<vmem>>, %arg16: memref<1x2x1x32xf32, #tpu.memory_space<vmem>>, %arg17: memref<1x2x1x32xf32, #tpu.memory_space<vmem>>, %arg18: memref<1x2x1x32xf32, #tpu.memory_space<vmem>>, %arg19: memref<1x2x32x128xbf16, #tpu.memory_space<vmem>>, %arg20: memref<1x2x1x128xf32, #tpu.memory_space<vmem>>, %arg21: memref<1x2x128x32xbf16, #tpu.memory_space<vmem>>, %arg22: memref<1x2x1x32xf32, #tpu.memory_space<vmem>>, %arg23: memref<1x32xf32, #tpu.memory_space<vmem>>, %arg24: memref<1x32xf32, #tpu.memory_space<vmem>>, %arg25: memref<32x96xbf16, #tpu.memory_space<vmem>>, %arg26: memref<1x96xf32, #tpu.memory_space<vmem>>, %arg27: memref<1x32xf32, #tpu.memory_space<vmem>>, %arg28: memref<1x32xf32, #tpu.memory_space<vmem>>, %arg29: memref<32x96xbf16, #tpu.memory_space<vmem>>, %arg30: memref<1x96xf32, #tpu.memory_space<vmem>>, %arg31: memref<8x128xf32, #tpu.memory_space<vmem>>, %arg32: memref<16x128xf32, #tpu.memory_space<vmem>>, %arg33: memref<16x32xf32, #tpu.memory_space<vmem>>, %arg34: memref<8x32xf32, #tpu.memory_space<vmem>>, %arg35: memref<4x24x8xbf16, #tpu.memory_space<vmem>>, %arg36: memref<4x24x8xbf16, #tpu.memory_space<vmem>>, %arg37: memref<4x24x8xbf16, #tpu.memory_space<vmem>>, %arg38: memref<24x32xf32, #tpu.memory_space<vmem>>) attributes {dimension_semantics = [#tpu.dimension_semantics<parallel>, #tpu.dimension_semantics<arbitrary>], iteration_bounds = array<i64: 2, 2>, scalar_prefetch = 0 : i64, scratch_operands = 6 : i64, tpu.core_type = #tpu.core_type<tc>, window_params = [{transform_indices = @transform_0, window_bounds = array<i64: 16, 32>}, {transform_indices = @transform_1, window_bounds = array<i64: 8, 3>}, {transform_indices = @transform_2, window_bounds = array<i64: 1, 1, 32>}, {transform_indices = @transform_3, window_bounds = array<i64: 1, 1, 32>}, {transform_indices = @transform_4, window_bounds = array<i64: 1, 24, 24>}, {pipeline_mode = #tpu.pipeline_mode<synchronous>, transform_indices = @transform_5, window_bounds = array<i64: 3, 32>}, {pipeline_mode = #tpu.pipeline_mode<synchronous>, transform_indices = @transform_6, window_bounds = array<i64: 1, 32>}, {pipeline_mode = #tpu.pipeline_mode<synchronous>, transform_indices = @transform_7, window_bounds = array<i64: 32, 32>}, {pipeline_mode = #tpu.pipeline_mode<synchronous>, transform_indices = @transform_8, window_bounds = array<i64: 1, 32>}, {transform_indices = @transform_9, window_bounds = array<i64: 1, 2, 1, 32>}, {transform_indices = @transform_10, window_bounds = array<i64: 1, 2, 1, 32>}, {transform_indices = @transform_11, window_bounds = array<i64: 1, 2, 32, 96>}, {transform_indices = @transform_12, window_bounds = array<i64: 1, 2, 1, 96>}, {transform_indices = @transform_13, window_bounds = array<i64: 1, 2, 32, 32>}, {transform_indices = @transform_14, window_bounds = array<i64: 1, 2, 1, 32>}, {transform_indices = @transform_15, window_bounds = array<i64: 1, 2, 1, 32>}, {transform_indices = @transform_16, window_bounds = array<i64: 1, 2, 1, 32>}, {transform_indices = @transform_17, window_bounds = array<i64: 1, 2, 32, 128>}, {transform_indices = @transform_18, window_bounds = array<i64: 1, 2, 1, 128>}, {transform_indices = @transform_19, window_bounds = array<i64: 1, 2, 128, 32>}, {transform_indices = @transform_20, window_bounds = array<i64: 1, 2, 1, 32>}, {pipeline_mode = #tpu.pipeline_mode<synchronous>, transform_indices = @transform_21, window_bounds = array<i64: 1, 32>}, {pipeline_mode = #tpu.pipeline_mode<synchronous>, transform_indices = @transform_22, window_bounds = array<i64: 1, 32>}, {pipeline_mode = #tpu.pipeline_mode<synchronous>, transform_indices = @transform_23, window_bounds = array<i64: 32, 96>}, {pipeline_mode = #tpu.pipeline_mode<synchronous>, transform_indices = @transform_24, window_bounds = array<i64: 1, 96>}, {pipeline_mode = #tpu.pipeline_mode<synchronous>, transform_indices = @transform_25, window_bounds = array<i64: 1, 32>}, {pipeline_mode = #tpu.pipeline_mode<synchronous>, transform_indices = @transform_26, window_bounds = array<i64: 1, 32>}, {pipeline_mode = #tpu.pipeline_mode<synchronous>, transform_indices = @transform_27, window_bounds = array<i64: 32, 96>}, {pipeline_mode = #tpu.pipeline_mode<synchronous>, transform_indices = @transform_28, window_bounds = array<i64: 1, 96>}, {transform_indices = @transform_29, window_bounds = array<i64: 8, 128>}, {transform_indices = @transform_30, window_bounds = array<i64: 16, 128>}]} {
    %c0_i32 = arith.constant 0 : i32
    %0 = arith.cmpi eq, %arg1, %c0_i32 : i32
    %1 = arith.extui %0 : i1 to i32
    %c0_i32_0 = arith.constant 0 : i32
    %2 = arith.cmpi ne, %1, %c0_i32_0 : i32
    scf.if %2 {
      %c0_235 = arith.constant 0 : index
      %c0_236 = arith.constant 0 : index
      %344 = vector.load %arg2[%c0_235, %c0_236] : memref<16x32xf32, #tpu.memory_space<vmem>>, vector<16x32xf32>
      %c0_237 = arith.constant 0 : index
      %c0_238 = arith.constant 0 : index
      %345 = vector.load %arg33[%c0_237, %c0_238] : memref<16x32xf32, #tpu.memory_space<vmem>>, vector<16x32xf32>
      tpu.vector_store %arg33[%c0_237, %c0_238], %344 {strides = array<i32>} : memref<16x32xf32, #tpu.memory_space<vmem>>, vector<16x32xf32>,
      %c0_239 = arith.constant 0 : index
      %c0_240 = arith.constant 0 : index
      %c0_241 = arith.constant 0 : index
      %346 = vector.load %arg5[%c0_239, %c0_240, %c0_241] : memref<1x1x32xf32, #tpu.memory_space<vmem>>, vector<1x1x32xf32>
      %347 = vector.shape_cast %346 : vector<1x1x32xf32> to vector<1x32xf32>
      %c0_242 = arith.constant 0 : index
      %c0_243 = arith.constant 0 : index
      %c0_244 = arith.constant 0 : index
      %348 = vector.load %arg4[%c0_242, %c0_243, %c0_244] : memref<1x1x32xf32, #tpu.memory_space<vmem>>, vector<1x1x32xf32>
      %349 = vector.shape_cast %348 : vector<1x1x32xf32> to vector<1x32xf32>
      %c0_245 = arith.constant 0 : index
      %c0_246 = arith.constant 0 : index
      %350 = vector.load %arg9[%c0_245, %c0_246] : memref<32x32xbf16, #tpu.memory_space<vmem>>, vector<32x32xbf16>
      %c0_247 = arith.constant 0 : index
      %c0_248 = arith.constant 0 : index
      %351 = vector.load %arg10[%c0_247, %c0_248] : memref<1x32xf32, #tpu.memory_space<vmem>>, vector<1x32xf32>
      %352 = arith.truncf %349 : vector<1x32xf32> to vector<1x32xbf16>
      %cst_249 = arith.constant dense<0.000000e+00> : vector<1x32xf32>
      %353 = tpu.matmul %352, %350, %cst_249 {dimension_numbers = #tpu.dot_dimension_numbers<[1], [0], [0], [1], [0, 0, 1, 1], [], []>} : vector<1x32xbf16>, vector<32x32xbf16>, vector<1x32xf32> -> vector<1x32xf32>
      %354 = arith.addf %353, %351 : vector<1x32xf32>
      %355 = arith.addf %347, %354 : vector<1x32xf32>
      %c0_250 = arith.constant 0 : index
      %c0_251 = arith.constant 0 : index
      %356 = vector.load %arg3[%c0_250, %c0_251] : memref<8x3xf32, #tpu.memory_space<vmem>>, vector<8x3xf32>
      %c0_252 = arith.constant 0 : index
      %c0_253 = arith.constant 0 : index
      %357 = vector.load %arg7[%c0_252, %c0_253] : memref<3x32xbf16, #tpu.memory_space<vmem>>, vector<3x32xbf16>
      %c0_254 = arith.constant 0 : index
      %c0_255 = arith.constant 0 : index
      %358 = vector.load %arg8[%c0_254, %c0_255] : memref<1x32xf32, #tpu.memory_space<vmem>>, vector<1x32xf32>
      %359 = arith.truncf %356 : vector<8x3xf32> to vector<8x3xbf16>
      %cst_256 = arith.constant dense<0.000000e+00> : vector<8x32xf32>
      %360 = tpu.matmul %359, %357, %cst_256 {dimension_numbers = #tpu.dot_dimension_numbers<[1], [0], [0], [1], [0, 0, 1, 1], [], []>} : vector<8x3xbf16>, vector<3x32xbf16>, vector<8x32xf32> -> vector<8x32xf32>
      %361 = vector.broadcast %358 : vector<1x32xf32> to vector<8x32xf32>
      %362 = arith.addf %360, %361 : vector<8x32xf32>
      %363 = vector.broadcast %355 : vector<1x32xf32> to vector<8x32xf32>
      %364 = arith.addf %362, %363 : vector<8x32xf32>
      %c0_257 = arith.constant 0 : index
      %c0_258 = arith.constant 0 : index
      %365 = vector.load %arg34[%c0_257, %c0_258] : memref<8x32xf32, #tpu.memory_space<vmem>>, vector<8x32xf32>
      tpu.vector_store %arg34[%c0_257, %c0_258], %364 {strides = array<i32>} : memref<8x32xf32, #tpu.memory_space<vmem>>, vector<8x32xf32>,
    } else {
    }
    %c0 = arith.constant 0 : index
    %c0_1 = arith.constant 0 : index
    %3 = vector.load %arg33[%c0, %c0_1] : memref<16x32xf32, #tpu.memory_space<vmem>>, vector<16x32xf32>
    %c0_2 = arith.constant 0 : index
    %c0_3 = arith.constant 0 : index
    %4 = vector.load %arg34[%c0_2, %c0_3] : memref<8x32xf32, #tpu.memory_space<vmem>>, vector<8x32xf32>
    %c0_4 = arith.constant 0 : index
    %c0_5 = arith.constant 0 : index
    %c0_6 = arith.constant 0 : index
    %c0_7 = arith.constant 0 : index
    %5 = vector.load %arg11[%c0_4, %c0_5, %c0_6, %c0_7] : memref<1x2x1x32xf32, #tpu.memory_space<vmem>>, vector<1x1x1x32xf32>
    %6 = vector.shape_cast %5 : vector<1x1x1x32xf32> to vector<1x32xf32>
    %c0_8 = arith.constant 0 : index
    %c0_9 = arith.constant 0 : index
    %c0_10 = arith.constant 0 : index
    %c0_11 = arith.constant 0 : index
    %7 = vector.load %arg12[%c0_8, %c0_9, %c0_10, %c0_11] : memref<1x2x1x32xf32, #tpu.memory_space<vmem>>, vector<1x1x1x32xf32>
    %8 = vector.shape_cast %7 : vector<1x1x1x32xf32> to vector<1x32xf32>
    %cst = arith.constant dense<0.000000e+00> : vector<16xf32>
    %9 = vector.multi_reduction <add>, %3, %cst [1] : vector<16x32xf32> to vector<16xf32>
    %10 = vector.shape_cast %9 : vector<16xf32> to vector<16x1xf32>
    %cst_12 = arith.constant 3.200000e+01 : f32
    %11 = vector.broadcast %cst_12 : f32 to vector<16x1xf32>
    %12 = arith.divf %10, %11 : vector<16x1xf32>
    %13 = vector.broadcast %12 : vector<16x1xf32> to vector<16x32xf32>
    %14 = arith.subf %3, %13 : vector<16x32xf32>
    %15 = arith.mulf %14, %14 : vector<16x32xf32>
    %cst_13 = arith.constant dense<0.000000e+00> : vector<16xf32>
    %16 = vector.multi_reduction <add>, %15, %cst_13 [1] : vector<16x32xf32> to vector<16xf32>
    %17 = vector.shape_cast %16 : vector<16xf32> to vector<16x1xf32>
    %cst_14 = arith.constant 3.200000e+01 : f32
    %18 = vector.broadcast %cst_14 : f32 to vector<16x1xf32>
    %19 = arith.divf %17, %18 : vector<16x1xf32>
    %20 = vector.broadcast %12 : vector<16x1xf32> to vector<16x32xf32>
    %21 = arith.subf %3, %20 : vector<16x32xf32>
    %cst_15 = arith.constant 9.99999974E-6 : f32
    %22 = vector.broadcast %cst_15 : f32 to vector<16x1xf32>
    %23 = arith.addf %19, %22 : vector<16x1xf32>
    %24 = math.rsqrt %23 : vector<16x1xf32>
    %25 = vector.broadcast %24 : vector<16x1xf32> to vector<16x32xf32>
    %26 = arith.mulf %21, %25 : vector<16x32xf32>
    %27 = vector.broadcast %6 : vector<1x32xf32> to vector<16x32xf32>
    %28 = arith.mulf %26, %27 : vector<16x32xf32>
    %29 = vector.broadcast %8 : vector<1x32xf32> to vector<16x32xf32>
    %30 = arith.addf %28, %29 : vector<16x32xf32>
    %c0_16 = arith.constant 0 : index
    %c0_17 = arith.constant 0 : index
    %c0_18 = arith.constant 0 : index
    %c0_19 = arith.constant 0 : index
    %31 = vector.load %arg13[%c0_16, %c0_17, %c0_18, %c0_19] : memref<1x2x32x96xbf16, #tpu.memory_space<vmem>>, vector<1x1x32x96xbf16>
    %32 = vector.shape_cast %31 : vector<1x1x32x96xbf16> to vector<32x96xbf16>
    %c0_20 = arith.constant 0 : index
    %c0_21 = arith.constant 0 : index
    %c0_22 = arith.constant 0 : index
    %c0_23 = arith.constant 0 : index
    %33 = vector.load %arg14[%c0_20, %c0_21, %c0_22, %c0_23] : memref<1x2x1x96xf32, #tpu.memory_space<vmem>>, vector<1x1x1x96xf32>
    %34 = vector.shape_cast %33 : vector<1x1x1x96xf32> to vector<1x96xf32>
    %35 = arith.truncf %30 : vector<16x32xf32> to vector<16x32xbf16>
    %cst_24 = arith.constant dense<0.000000e+00> : vector<16x96xf32>
    %36 = tpu.matmul %35, %32, %cst_24 {dimension_numbers = #tpu.dot_dimension_numbers<[1], [0], [0], [1], [0, 0, 1, 1], [], []>} : vector<16x32xbf16>, vector<32x96xbf16>, vector<16x96xf32> -> vector<16x96xf32>
    %37 = vector.broadcast %34 : vector<1x96xf32> to vector<16x96xf32>
    %38 = arith.addf %36, %37 : vector<16x96xf32>
    %39 = arith.truncf %38 : vector<16x96xf32> to vector<16x96xbf16>
    %c0_25 = arith.constant 0 : index
    %c1 = arith.constant 1 : index
    %c0_26 = arith.constant 0 : index
    %c0_27 = arith.constant 0 : index
    %40 = vector.load %arg11[%c0_25, %c1, %c0_26, %c0_27] : memref<1x2x1x32xf32, #tpu.memory_space<vmem>>, vector<1x1x1x32xf32>
    %41 = vector.shape_cast %40 : vector<1x1x1x32xf32> to vector<1x32xf32>
    %c0_28 = arith.constant 0 : index
    %c1_29 = arith.constant 1 : index
    %c0_30 = arith.constant 0 : index
    %c0_31 = arith.constant 0 : index
    %42 = vector.load %arg12[%c0_28, %c1_29, %c0_30, %c0_31] : memref<1x2x1x32xf32, #tpu.memory_space<vmem>>, vector<1x1x1x32xf32>
    %43 = vector.shape_cast %42 : vector<1x1x1x32xf32> to vector<1x32xf32>
    %cst_32 = arith.constant dense<0.000000e+00> : vector<8xf32>
    %44 = vector.multi_reduction <add>, %4, %cst_32 [1] : vector<8x32xf32> to vector<8xf32>
    %45 = vector.shape_cast %44 : vector<8xf32> to vector<8x1xf32>
    %cst_33 = arith.constant 3.200000e+01 : f32
    %46 = vector.broadcast %cst_33 : f32 to vector<8x1xf32>
    %47 = arith.divf %45, %46 : vector<8x1xf32>
    %48 = vector.broadcast %47 : vector<8x1xf32> to vector<8x32xf32>
    %49 = arith.subf %4, %48 : vector<8x32xf32>
    %50 = arith.mulf %49, %49 : vector<8x32xf32>
    %cst_34 = arith.constant dense<0.000000e+00> : vector<8xf32>
    %51 = vector.multi_reduction <add>, %50, %cst_34 [1] : vector<8x32xf32> to vector<8xf32>
    %52 = vector.shape_cast %51 : vector<8xf32> to vector<8x1xf32>
    %cst_35 = arith.constant 3.200000e+01 : f32
    %53 = vector.broadcast %cst_35 : f32 to vector<8x1xf32>
    %54 = arith.divf %52, %53 : vector<8x1xf32>
    %55 = vector.broadcast %47 : vector<8x1xf32> to vector<8x32xf32>
    %56 = arith.subf %4, %55 : vector<8x32xf32>
    %cst_36 = arith.constant 9.99999974E-6 : f32
    %57 = vector.broadcast %cst_36 : f32 to vector<8x1xf32>
    %58 = arith.addf %54, %57 : vector<8x1xf32>
    %59 = math.rsqrt %58 : vector<8x1xf32>
    %60 = vector.broadcast %59 : vector<8x1xf32> to vector<8x32xf32>
    %61 = arith.mulf %56, %60 : vector<8x32xf32>
    %62 = vector.broadcast %41 : vector<1x32xf32> to vector<8x32xf32>
    %63 = arith.mulf %61, %62 : vector<8x32xf32>
    %64 = vector.broadcast %43 : vector<1x32xf32> to vector<8x32xf32>
    %65 = arith.addf %63, %64 : vector<8x32xf32>
    %c0_37 = arith.constant 0 : index
    %c1_38 = arith.constant 1 : index
    %c0_39 = arith.constant 0 : index
    %c0_40 = arith.constant 0 : index
    %66 = vector.load %arg13[%c0_37, %c1_38, %c0_39, %c0_40] : memref<1x2x32x96xbf16, #tpu.memory_space<vmem>>, vector<1x1x32x96xbf16>
    %67 = vector.shape_cast %66 : vector<1x1x32x96xbf16> to vector<32x96xbf16>
    %c0_41 = arith.constant 0 : index
    %c1_42 = arith.constant 1 : index
    %c0_43 = arith.constant 0 : index
    %c0_44 = arith.constant 0 : index
    %68 = vector.load %arg14[%c0_41, %c1_42, %c0_43, %c0_44] : memref<1x2x1x96xf32, #tpu.memory_space<vmem>>, vector<1x1x1x96xf32>
    %69 = vector.shape_cast %68 : vector<1x1x1x96xf32> to vector<1x96xf32>
    %70 = arith.truncf %65 : vector<8x32xf32> to vector<8x32xbf16>
    %cst_45 = arith.constant dense<0.000000e+00> : vector<8x96xf32>
    %71 = tpu.matmul %70, %67, %cst_45 {dimension_numbers = #tpu.dot_dimension_numbers<[1], [0], [0], [1], [0, 0, 1, 1], [], []>} : vector<8x32xbf16>, vector<32x96xbf16>, vector<8x96xf32> -> vector<8x96xf32>
    %72 = vector.broadcast %69 : vector<1x96xf32> to vector<8x96xf32>
    %73 = arith.addf %71, %72 : vector<8x96xf32>
    %74 = arith.truncf %73 : vector<8x96xf32> to vector<8x96xbf16>
    %75 = vector.extract_strided_slice %39 {offsets = [0, 0], sizes = [16, 8], strides = [1, 1]} : vector<16x96xbf16> to vector<16x8xbf16>
    %c0_46 = arith.constant 0 : index
    %c0_47 = arith.constant 0 : index
    %c0_48 = arith.constant 0 : index
    %76 = vector.load %arg35[%c0_46, %c0_47, %c0_48] : memref<4x24x8xbf16, #tpu.memory_space<vmem>>, vector<1x16x8xbf16>
    %77 = vector.shape_cast %76 : vector<1x16x8xbf16> to vector<16x8xbf16>
    %78 = vector.shape_cast %75 : vector<16x8xbf16> to vector<1x16x8xbf16>
    tpu.vector_store %arg35[%c0_46, %c0_47, %c0_48], %78 {strides = array<i32>} : memref<4x24x8xbf16, #tpu.memory_space<vmem>>, vector<1x16x8xbf16>,
    %79 = vector.extract_strided_slice %74 {offsets = [0, 0], sizes = [8, 8], strides = [1, 1]} : vector<8x96xbf16> to vector<8x8xbf16>
    %c0_49 = arith.constant 0 : index
    %c16 = arith.constant 16 : index
    %c0_50 = arith.constant 0 : index
    %80 = vector.load %arg35[%c0_49, %c16, %c0_50] : memref<4x24x8xbf16, #tpu.memory_space<vmem>>, vector<1x8x8xbf16>
    %81 = vector.shape_cast %80 : vector<1x8x8xbf16> to vector<8x8xbf16>
    %82 = vector.shape_cast %79 : vector<8x8xbf16> to vector<1x8x8xbf16>
    tpu.vector_store %arg35[%c0_49, %c16, %c0_50], %82 {strides = array<i32>} : memref<4x24x8xbf16, #tpu.memory_space<vmem>>, vector<1x8x8xbf16>,
    %83 = vector.extract_strided_slice %39 {offsets = [0, 32], sizes = [16, 8], strides = [1, 1]} : vector<16x96xbf16> to vector<16x8xbf16>
    %c0_51 = arith.constant 0 : index
    %c0_52 = arith.constant 0 : index
    %c0_53 = arith.constant 0 : index
    %84 = vector.load %arg36[%c0_51, %c0_52, %c0_53] : memref<4x24x8xbf16, #tpu.memory_space<vmem>>, vector<1x16x8xbf16>
    %85 = vector.shape_cast %84 : vector<1x16x8xbf16> to vector<16x8xbf16>
    %86 = vector.shape_cast %83 : vector<16x8xbf16> to vector<1x16x8xbf16>
    tpu.vector_store %arg36[%c0_51, %c0_52, %c0_53], %86 {strides = array<i32>} : memref<4x24x8xbf16, #tpu.memory_space<vmem>>, vector<1x16x8xbf16>,
    %87 = vector.extract_strided_slice %74 {offsets = [0, 32], sizes = [8, 8], strides = [1, 1]} : vector<8x96xbf16> to vector<8x8xbf16>
    %c0_54 = arith.constant 0 : index
    %c16_55 = arith.constant 16 : index
    %c0_56 = arith.constant 0 : index
    %88 = vector.load %arg36[%c0_54, %c16_55, %c0_56] : memref<4x24x8xbf16, #tpu.memory_space<vmem>>, vector<1x8x8xbf16>
    %89 = vector.shape_cast %88 : vector<1x8x8xbf16> to vector<8x8xbf16>
    %90 = vector.shape_cast %87 : vector<8x8xbf16> to vector<1x8x8xbf16>
    tpu.vector_store %arg36[%c0_54, %c16_55, %c0_56], %90 {strides = array<i32>} : memref<4x24x8xbf16, #tpu.memory_space<vmem>>, vector<1x8x8xbf16>,
    %91 = vector.extract_strided_slice %39 {offsets = [0, 64], sizes = [16, 8], strides = [1, 1]} : vector<16x96xbf16> to vector<16x8xbf16>
    %c0_57 = arith.constant 0 : index
    %c0_58 = arith.constant 0 : index
    %c0_59 = arith.constant 0 : index
    %92 = vector.load %arg37[%c0_57, %c0_58, %c0_59] : memref<4x24x8xbf16, #tpu.memory_space<vmem>>, vector<1x16x8xbf16>
    %93 = vector.shape_cast %92 : vector<1x16x8xbf16> to vector<16x8xbf16>
    %94 = vector.shape_cast %91 : vector<16x8xbf16> to vector<1x16x8xbf16>
    tpu.vector_store %arg37[%c0_57, %c0_58, %c0_59], %94 {strides = array<i32>} : memref<4x24x8xbf16, #tpu.memory_space<vmem>>, vector<1x16x8xbf16>,
    %95 = vector.extract_strided_slice %74 {offsets = [0, 64], sizes = [8, 8], strides = [1, 1]} : vector<8x96xbf16> to vector<8x8xbf16>
    %c0_60 = arith.constant 0 : index
    %c16_61 = arith.constant 16 : index
    %c0_62 = arith.constant 0 : index
    %96 = vector.load %arg37[%c0_60, %c16_61, %c0_62] : memref<4x24x8xbf16, #tpu.memory_space<vmem>>, vector<1x8x8xbf16>
    %97 = vector.shape_cast %96 : vector<1x8x8xbf16> to vector<8x8xbf16>
    %98 = vector.shape_cast %95 : vector<8x8xbf16> to vector<1x8x8xbf16>
    tpu.vector_store %arg37[%c0_60, %c16_61, %c0_62], %98 {strides = array<i32>} : memref<4x24x8xbf16, #tpu.memory_space<vmem>>, vector<1x8x8xbf16>,
    %99 = vector.extract_strided_slice %39 {offsets = [0, 8], sizes = [16, 8], strides = [1, 1]} : vector<16x96xbf16> to vector<16x8xbf16>
    %c1_63 = arith.constant 1 : index
    %c0_64 = arith.constant 0 : index
    %c0_65 = arith.constant 0 : index
    %100 = vector.load %arg35[%c1_63, %c0_64, %c0_65] : memref<4x24x8xbf16, #tpu.memory_space<vmem>>, vector<1x16x8xbf16>
    %101 = vector.shape_cast %100 : vector<1x16x8xbf16> to vector<16x8xbf16>
    %102 = vector.shape_cast %99 : vector<16x8xbf16> to vector<1x16x8xbf16>
    tpu.vector_store %arg35[%c1_63, %c0_64, %c0_65], %102 {strides = array<i32>} : memref<4x24x8xbf16, #tpu.memory_space<vmem>>, vector<1x16x8xbf16>,
    %103 = vector.extract_strided_slice %74 {offsets = [0, 8], sizes = [8, 8], strides = [1, 1]} : vector<8x96xbf16> to vector<8x8xbf16>
    %c1_66 = arith.constant 1 : index
    %c16_67 = arith.constant 16 : index
    %c0_68 = arith.constant 0 : index
    %104 = vector.load %arg35[%c1_66, %c16_67, %c0_68] : memref<4x24x8xbf16, #tpu.memory_space<vmem>>, vector<1x8x8xbf16>
    %105 = vector.shape_cast %104 : vector<1x8x8xbf16> to vector<8x8xbf16>
    %106 = vector.shape_cast %103 : vector<8x8xbf16> to vector<1x8x8xbf16>
    tpu.vector_store %arg35[%c1_66, %c16_67, %c0_68], %106 {strides = array<i32>} : memref<4x24x8xbf16, #tpu.memory_space<vmem>>, vector<1x8x8xbf16>,
    %107 = vector.extract_strided_slice %39 {offsets = [0, 40], sizes = [16, 8], strides = [1, 1]} : vector<16x96xbf16> to vector<16x8xbf16>
    %c1_69 = arith.constant 1 : index
    %c0_70 = arith.constant 0 : index
    %c0_71 = arith.constant 0 : index
    %108 = vector.load %arg36[%c1_69, %c0_70, %c0_71] : memref<4x24x8xbf16, #tpu.memory_space<vmem>>, vector<1x16x8xbf16>
    %109 = vector.shape_cast %108 : vector<1x16x8xbf16> to vector<16x8xbf16>
    %110 = vector.shape_cast %107 : vector<16x8xbf16> to vector<1x16x8xbf16>
    tpu.vector_store %arg36[%c1_69, %c0_70, %c0_71], %110 {strides = array<i32>} : memref<4x24x8xbf16, #tpu.memory_space<vmem>>, vector<1x16x8xbf16>,
    %111 = vector.extract_strided_slice %74 {offsets = [0, 40], sizes = [8, 8], strides = [1, 1]} : vector<8x96xbf16> to vector<8x8xbf16>
    %c1_72 = arith.constant 1 : index
    %c16_73 = arith.constant 16 : index
    %c0_74 = arith.constant 0 : index
    %112 = vector.load %arg36[%c1_72, %c16_73, %c0_74] : memref<4x24x8xbf16, #tpu.memory_space<vmem>>, vector<1x8x8xbf16>
    %113 = vector.shape_cast %112 : vector<1x8x8xbf16> to vector<8x8xbf16>
    %114 = vector.shape_cast %111 : vector<8x8xbf16> to vector<1x8x8xbf16>
    tpu.vector_store %arg36[%c1_72, %c16_73, %c0_74], %114 {strides = array<i32>} : memref<4x24x8xbf16, #tpu.memory_space<vmem>>, vector<1x8x8xbf16>,
    %115 = vector.extract_strided_slice %39 {offsets = [0, 72], sizes = [16, 8], strides = [1, 1]} : vector<16x96xbf16> to vector<16x8xbf16>
    %c1_75 = arith.constant 1 : index
    %c0_76 = arith.constant 0 : index
    %c0_77 = arith.constant 0 : index
    %116 = vector.load %arg37[%c1_75, %c0_76, %c0_77] : memref<4x24x8xbf16, #tpu.memory_space<vmem>>, vector<1x16x8xbf16>
    %117 = vector.shape_cast %116 : vector<1x16x8xbf16> to vector<16x8xbf16>
    %118 = vector.shape_cast %115 : vector<16x8xbf16> to vector<1x16x8xbf16>
    tpu.vector_store %arg37[%c1_75, %c0_76, %c0_77], %118 {strides = array<i32>} : memref<4x24x8xbf16, #tpu.memory_space<vmem>>, vector<1x16x8xbf16>,
    %119 = vector.extract_strided_slice %74 {offsets = [0, 72], sizes = [8, 8], strides = [1, 1]} : vector<8x96xbf16> to vector<8x8xbf16>
    %c1_78 = arith.constant 1 : index
    %c16_79 = arith.constant 16 : index
    %c0_80 = arith.constant 0 : index
    %120 = vector.load %arg37[%c1_78, %c16_79, %c0_80] : memref<4x24x8xbf16, #tpu.memory_space<vmem>>, vector<1x8x8xbf16>
    %121 = vector.shape_cast %120 : vector<1x8x8xbf16> to vector<8x8xbf16>
    %122 = vector.shape_cast %119 : vector<8x8xbf16> to vector<1x8x8xbf16>
    tpu.vector_store %arg37[%c1_78, %c16_79, %c0_80], %122 {strides = array<i32>} : memref<4x24x8xbf16, #tpu.memory_space<vmem>>, vector<1x8x8xbf16>,
    %123 = vector.extract_strided_slice %39 {offsets = [0, 16], sizes = [16, 8], strides = [1, 1]} : vector<16x96xbf16> to vector<16x8xbf16>
    %c2 = arith.constant 2 : index
    %c0_81 = arith.constant 0 : index
    %c0_82 = arith.constant 0 : index
    %124 = vector.load %arg35[%c2, %c0_81, %c0_82] : memref<4x24x8xbf16, #tpu.memory_space<vmem>>, vector<1x16x8xbf16>
    %125 = vector.shape_cast %124 : vector<1x16x8xbf16> to vector<16x8xbf16>
    %126 = vector.shape_cast %123 : vector<16x8xbf16> to vector<1x16x8xbf16>
    tpu.vector_store %arg35[%c2, %c0_81, %c0_82], %126 {strides = array<i32>} : memref<4x24x8xbf16, #tpu.memory_space<vmem>>, vector<1x16x8xbf16>,
    %127 = vector.extract_strided_slice %74 {offsets = [0, 16], sizes = [8, 8], strides = [1, 1]} : vector<8x96xbf16> to vector<8x8xbf16>
    %c2_83 = arith.constant 2 : index
    %c16_84 = arith.constant 16 : index
    %c0_85 = arith.constant 0 : index
    %128 = vector.load %arg35[%c2_83, %c16_84, %c0_85] : memref<4x24x8xbf16, #tpu.memory_space<vmem>>, vector<1x8x8xbf16>
    %129 = vector.shape_cast %128 : vector<1x8x8xbf16> to vector<8x8xbf16>
    %130 = vector.shape_cast %127 : vector<8x8xbf16> to vector<1x8x8xbf16>
    tpu.vector_store %arg35[%c2_83, %c16_84, %c0_85], %130 {strides = array<i32>} : memref<4x24x8xbf16, #tpu.memory_space<vmem>>, vector<1x8x8xbf16>,
    %131 = vector.extract_strided_slice %39 {offsets = [0, 48], sizes = [16, 8], strides = [1, 1]} : vector<16x96xbf16> to vector<16x8xbf16>
    %c2_86 = arith.constant 2 : index
    %c0_87 = arith.constant 0 : index
    %c0_88 = arith.constant 0 : index
    %132 = vector.load %arg36[%c2_86, %c0_87, %c0_88] : memref<4x24x8xbf16, #tpu.memory_space<vmem>>, vector<1x16x8xbf16>
    %133 = vector.shape_cast %132 : vector<1x16x8xbf16> to vector<16x8xbf16>
    %134 = vector.shape_cast %131 : vector<16x8xbf16> to vector<1x16x8xbf16>
    tpu.vector_store %arg36[%c2_86, %c0_87, %c0_88], %134 {strides = array<i32>} : memref<4x24x8xbf16, #tpu.memory_space<vmem>>, vector<1x16x8xbf16>,
    %135 = vector.extract_strided_slice %74 {offsets = [0, 48], sizes = [8, 8], strides = [1, 1]} : vector<8x96xbf16> to vector<8x8xbf16>
    %c2_89 = arith.constant 2 : index
    %c16_90 = arith.constant 16 : index
    %c0_91 = arith.constant 0 : index
    %136 = vector.load %arg36[%c2_89, %c16_90, %c0_91] : memref<4x24x8xbf16, #tpu.memory_space<vmem>>, vector<1x8x8xbf16>
    %137 = vector.shape_cast %136 : vector<1x8x8xbf16> to vector<8x8xbf16>
    %138 = vector.shape_cast %135 : vector<8x8xbf16> to vector<1x8x8xbf16>
    tpu.vector_store %arg36[%c2_89, %c16_90, %c0_91], %138 {strides = array<i32>} : memref<4x24x8xbf16, #tpu.memory_space<vmem>>, vector<1x8x8xbf16>,
    %139 = vector.extract_strided_slice %39 {offsets = [0, 80], sizes = [16, 8], strides = [1, 1]} : vector<16x96xbf16> to vector<16x8xbf16>
    %c2_92 = arith.constant 2 : index
    %c0_93 = arith.constant 0 : index
    %c0_94 = arith.constant 0 : index
    %140 = vector.load %arg37[%c2_92, %c0_93, %c0_94] : memref<4x24x8xbf16, #tpu.memory_space<vmem>>, vector<1x16x8xbf16>
    %141 = vector.shape_cast %140 : vector<1x16x8xbf16> to vector<16x8xbf16>
    %142 = vector.shape_cast %139 : vector<16x8xbf16> to vector<1x16x8xbf16>
    tpu.vector_store %arg37[%c2_92, %c0_93, %c0_94], %142 {strides = array<i32>} : memref<4x24x8xbf16, #tpu.memory_space<vmem>>, vector<1x16x8xbf16>,
    %143 = vector.extract_strided_slice %74 {offsets = [0, 80], sizes = [8, 8], strides = [1, 1]} : vector<8x96xbf16> to vector<8x8xbf16>
    %c2_95 = arith.constant 2 : index
    %c16_96 = arith.constant 16 : index
    %c0_97 = arith.constant 0 : index
    %144 = vector.load %arg37[%c2_95, %c16_96, %c0_97] : memref<4x24x8xbf16, #tpu.memory_space<vmem>>, vector<1x8x8xbf16>
    %145 = vector.shape_cast %144 : vector<1x8x8xbf16> to vector<8x8xbf16>
    %146 = vector.shape_cast %143 : vector<8x8xbf16> to vector<1x8x8xbf16>
    tpu.vector_store %arg37[%c2_95, %c16_96, %c0_97], %146 {strides = array<i32>} : memref<4x24x8xbf16, #tpu.memory_space<vmem>>, vector<1x8x8xbf16>,
    %147 = vector.extract_strided_slice %39 {offsets = [0, 24], sizes = [16, 8], strides = [1, 1]} : vector<16x96xbf16> to vector<16x8xbf16>
    %c3 = arith.constant 3 : index
    %c0_98 = arith.constant 0 : index
    %c0_99 = arith.constant 0 : index
    %148 = vector.load %arg35[%c3, %c0_98, %c0_99] : memref<4x24x8xbf16, #tpu.memory_space<vmem>>, vector<1x16x8xbf16>
    %149 = vector.shape_cast %148 : vector<1x16x8xbf16> to vector<16x8xbf16>
    %150 = vector.shape_cast %147 : vector<16x8xbf16> to vector<1x16x8xbf16>
    tpu.vector_store %arg35[%c3, %c0_98, %c0_99], %150 {strides = array<i32>} : memref<4x24x8xbf16, #tpu.memory_space<vmem>>, vector<1x16x8xbf16>,
    %151 = vector.extract_strided_slice %74 {offsets = [0, 24], sizes = [8, 8], strides = [1, 1]} : vector<8x96xbf16> to vector<8x8xbf16>
    %c3_100 = arith.constant 3 : index
    %c16_101 = arith.constant 16 : index
    %c0_102 = arith.constant 0 : index
    %152 = vector.load %arg35[%c3_100, %c16_101, %c0_102] : memref<4x24x8xbf16, #tpu.memory_space<vmem>>, vector<1x8x8xbf16>
    %153 = vector.shape_cast %152 : vector<1x8x8xbf16> to vector<8x8xbf16>
    %154 = vector.shape_cast %151 : vector<8x8xbf16> to vector<1x8x8xbf16>
    tpu.vector_store %arg35[%c3_100, %c16_101, %c0_102], %154 {strides = array<i32>} : memref<4x24x8xbf16, #tpu.memory_space<vmem>>, vector<1x8x8xbf16>,
    %155 = vector.extract_strided_slice %39 {offsets = [0, 56], sizes = [16, 8], strides = [1, 1]} : vector<16x96xbf16> to vector<16x8xbf16>
    %c3_103 = arith.constant 3 : index
    %c0_104 = arith.constant 0 : index
    %c0_105 = arith.constant 0 : index
    %156 = vector.load %arg36[%c3_103, %c0_104, %c0_105] : memref<4x24x8xbf16, #tpu.memory_space<vmem>>, vector<1x16x8xbf16>
    %157 = vector.shape_cast %156 : vector<1x16x8xbf16> to vector<16x8xbf16>
    %158 = vector.shape_cast %155 : vector<16x8xbf16> to vector<1x16x8xbf16>
    tpu.vector_store %arg36[%c3_103, %c0_104, %c0_105], %158 {strides = array<i32>} : memref<4x24x8xbf16, #tpu.memory_space<vmem>>, vector<1x16x8xbf16>,
    %159 = vector.extract_strided_slice %74 {offsets = [0, 56], sizes = [8, 8], strides = [1, 1]} : vector<8x96xbf16> to vector<8x8xbf16>
    %c3_106 = arith.constant 3 : index
    %c16_107 = arith.constant 16 : index
    %c0_108 = arith.constant 0 : index
    %160 = vector.load %arg36[%c3_106, %c16_107, %c0_108] : memref<4x24x8xbf16, #tpu.memory_space<vmem>>, vector<1x8x8xbf16>
    %161 = vector.shape_cast %160 : vector<1x8x8xbf16> to vector<8x8xbf16>
    %162 = vector.shape_cast %159 : vector<8x8xbf16> to vector<1x8x8xbf16>
    tpu.vector_store %arg36[%c3_106, %c16_107, %c0_108], %162 {strides = array<i32>} : memref<4x24x8xbf16, #tpu.memory_space<vmem>>, vector<1x8x8xbf16>,
    %163 = vector.extract_strided_slice %39 {offsets = [0, 88], sizes = [16, 8], strides = [1, 1]} : vector<16x96xbf16> to vector<16x8xbf16>
    %c3_109 = arith.constant 3 : index
    %c0_110 = arith.constant 0 : index
    %c0_111 = arith.constant 0 : index
    %164 = vector.load %arg37[%c3_109, %c0_110, %c0_111] : memref<4x24x8xbf16, #tpu.memory_space<vmem>>, vector<1x16x8xbf16>
    %165 = vector.shape_cast %164 : vector<1x16x8xbf16> to vector<16x8xbf16>
    %166 = vector.shape_cast %163 : vector<16x8xbf16> to vector<1x16x8xbf16>
    tpu.vector_store %arg37[%c3_109, %c0_110, %c0_111], %166 {strides = array<i32>} : memref<4x24x8xbf16, #tpu.memory_space<vmem>>, vector<1x16x8xbf16>,
    %167 = vector.extract_strided_slice %74 {offsets = [0, 88], sizes = [8, 8], strides = [1, 1]} : vector<8x96xbf16> to vector<8x8xbf16>
    %c3_112 = arith.constant 3 : index
    %c16_113 = arith.constant 16 : index
    %c0_114 = arith.constant 0 : index
    %168 = vector.load %arg37[%c3_112, %c16_113, %c0_114] : memref<4x24x8xbf16, #tpu.memory_space<vmem>>, vector<1x8x8xbf16>
    %169 = vector.shape_cast %168 : vector<1x8x8xbf16> to vector<8x8xbf16>
    %170 = vector.shape_cast %167 : vector<8x8xbf16> to vector<1x8x8xbf16>
    tpu.vector_store %arg37[%c3_112, %c16_113, %c0_114], %170 {strides = array<i32>} : memref<4x24x8xbf16, #tpu.memory_space<vmem>>, vector<1x8x8xbf16>,
    %c0_115 = arith.constant 0 : index
    %c0_116 = arith.constant 0 : index
    %c0_117 = arith.constant 0 : index
    %171 = vector.load %arg6[%c0_115, %c0_116, %c0_117] : memref<1x24x24xbf16, #tpu.memory_space<vmem>>, vector<1x24x24xbf16>
    %172 = vector.shape_cast %171 : vector<1x24x24xbf16> to vector<24x24xbf16>
    %173 = arith.extf %172 : vector<24x24xbf16> to vector<24x24xf32>
    %c0_118 = arith.constant 0 : index
    %c0_119 = arith.constant 0 : index
    %c0_120 = arith.constant 0 : index
    %174 = vector.load %arg35[%c0_118, %c0_119, %c0_120] : memref<4x24x8xbf16, #tpu.memory_space<vmem>>, vector<4x24x8xbf16>
    %c0_121 = arith.constant 0 : index
    %c0_122 = arith.constant 0 : index
    %c0_123 = arith.constant 0 : index
    %175 = vector.load %arg36[%c0_121, %c0_122, %c0_123] : memref<4x24x8xbf16, #tpu.memory_space<vmem>>, vector<4x24x8xbf16>
    "tpu.trace_start"() <{level = 10 : i32, message = "hqd,hkd->hqk"}> : () -> ()
    %cst_124 = arith.constant dense<0.000000e+00> : vector<4x24x24xf32>
    %176 = tpu.matmul %174, %175, %cst_124 {dimension_numbers = #tpu.dot_dimension_numbers<[2], [2], [1], [1], [0, 0, 0, 1, 1, 1], [0], [0]>} : vector<4x24x8xbf16>, vector<4x24x8xbf16>, vector<4x24x24xf32> -> vector<4x24x24xf32>
    "tpu.trace_stop"() : () -> ()
    %cst_125 = arith.constant 1.250000e-01 : f32
    %177 = vector.broadcast %cst_125 : f32 to vector<4x24x24xf32>
    %178 = arith.mulf %176, %177 : vector<4x24x24xf32>
    %179 = vector.shape_cast %173 : vector<24x24xf32> to vector<1x24x24xf32>
    %180 = vector.broadcast %179 : vector<1x24x24xf32> to vector<4x24x24xf32>
    %181 = arith.addf %178, %180 : vector<4x24x24xf32>
    %cst_126 = arith.constant dense<0xFF800000> : vector<4x24xf32>
    %182 = vector.multi_reduction <maximumf>, %181, %cst_126 [2] : vector<4x24x24xf32> to vector<4x24xf32>
    %183 = vector.shape_cast %182 : vector<4x24xf32> to vector<4x24x1xf32>
    %184 = vector.broadcast %183 : vector<4x24x1xf32> to vector<4x24x24xf32>
    %185 = arith.subf %181, %184 : vector<4x24x24xf32>
    %186 = math.exp %185 : vector<4x24x24xf32>
    %cst_127 = arith.constant dense<0.000000e+00> : vector<4x24xf32>
    %187 = vector.multi_reduction <add>, %186, %cst_127 [2] : vector<4x24x24xf32> to vector<4x24xf32>
    %188 = vector.shape_cast %187 : vector<4x24xf32> to vector<4x24x1xf32>
    %189 = arith.truncf %186 : vector<4x24x24xf32> to vector<4x24x24xbf16>
    %c0_128 = arith.constant 0 : index
    %c0_129 = arith.constant 0 : index
    %c0_130 = arith.constant 0 : index
    %190 = vector.load %arg37[%c0_128, %c0_129, %c0_130] : memref<4x24x8xbf16, #tpu.memory_space<vmem>>, vector<4x24x8xbf16>
    "tpu.trace_start"() <{level = 10 : i32, message = "hqk,hkd->hqd"}> : () -> ()
    %cst_131 = arith.constant dense<0.000000e+00> : vector<4x24x8xf32>
    %191 = tpu.matmul %189, %190, %cst_131 {dimension_numbers = #tpu.dot_dimension_numbers<[2], [1], [1], [2], [0, 0, 0, 1, 1, 2], [0], [0]>} : vector<4x24x24xbf16>, vector<4x24x8xbf16>, vector<4x24x8xf32> -> vector<4x24x8xf32>
    "tpu.trace_stop"() : () -> ()
    %192 = tpu.reciprocal %188 {approx = true} : vector<4x24x1xf32> -> vector<4x24x1xf32>
    %193 = vector.broadcast %192 : vector<4x24x1xf32> to vector<4x24x8xf32>
    %194 = arith.mulf %191, %193 : vector<4x24x8xf32>
    %195 = vector.extract_strided_slice %194 {offsets = [0, 0, 0], sizes = [1, 24, 8], strides = [1, 1, 1]} : vector<4x24x8xf32> to vector<1x24x8xf32>
    %196 = vector.shape_cast %195 : vector<1x24x8xf32> to vector<24x8xf32>
    %c0_132 = arith.constant 0 : index
    %c0_133 = arith.constant 0 : index
    %197 = vector.load %arg38[%c0_132, %c0_133] : memref<24x32xf32, #tpu.memory_space<vmem>>, vector<24x8xf32>
    tpu.vector_store %arg38[%c0_132, %c0_133], %196 {strides = array<i32>} : memref<24x32xf32, #tpu.memory_space<vmem>>, vector<24x8xf32>,
    %198 = vector.extract_strided_slice %194 {offsets = [1, 0, 0], sizes = [1, 24, 8], strides = [1, 1, 1]} : vector<4x24x8xf32> to vector<1x24x8xf32>
    %199 = vector.shape_cast %198 : vector<1x24x8xf32> to vector<24x8xf32>
    %c0_134 = arith.constant 0 : index
    %c8 = arith.constant 8 : index
    %200 = vector.load %arg38[%c0_134, %c8] : memref<24x32xf32, #tpu.memory_space<vmem>>, vector<24x8xf32>
    tpu.vector_store %arg38[%c0_134, %c8], %199 {strides = array<i32>} : memref<24x32xf32, #tpu.memory_space<vmem>>, vector<24x8xf32>,
    %201 = vector.extract_strided_slice %194 {offsets = [2, 0, 0], sizes = [1, 24, 8], strides = [1, 1, 1]} : vector<4x24x8xf32> to vector<1x24x8xf32>
    %202 = vector.shape_cast %201 : vector<1x24x8xf32> to vector<24x8xf32>
    %c0_135 = arith.constant 0 : index
    %c16_136 = arith.constant 16 : index
    %203 = vector.load %arg38[%c0_135, %c16_136] : memref<24x32xf32, #tpu.memory_space<vmem>>, vector<24x8xf32>
    tpu.vector_store %arg38[%c0_135, %c16_136], %202 {strides = array<i32>} : memref<24x32xf32, #tpu.memory_space<vmem>>, vector<24x8xf32>,
    %204 = vector.extract_strided_slice %194 {offsets = [3, 0, 0], sizes = [1, 24, 8], strides = [1, 1, 1]} : vector<4x24x8xf32> to vector<1x24x8xf32>
    %205 = vector.shape_cast %204 : vector<1x24x8xf32> to vector<24x8xf32>
    %c0_137 = arith.constant 0 : index
    %c24 = arith.constant 24 : index
    %206 = vector.load %arg38[%c0_137, %c24] : memref<24x32xf32, #tpu.memory_space<vmem>>, vector<24x8xf32>
    tpu.vector_store %arg38[%c0_137, %c24], %205 {strides = array<i32>} : memref<24x32xf32, #tpu.memory_space<vmem>>, vector<24x8xf32>,
    %c0_138 = arith.constant 0 : index
    %c0_139 = arith.constant 0 : index
    %207 = vector.load %arg38[%c0_138, %c0_139] : memref<24x32xf32, #tpu.memory_space<vmem>>, vector<16x32xf32>
    %c0_140 = arith.constant 0 : index
    %c0_141 = arith.constant 0 : index
    %c0_142 = arith.constant 0 : index
    %c0_143 = arith.constant 0 : index
    %208 = vector.load %arg15[%c0_140, %c0_141, %c0_142, %c0_143] : memref<1x2x32x32xbf16, #tpu.memory_space<vmem>>, vector<1x1x32x32xbf16>
    %209 = vector.shape_cast %208 : vector<1x1x32x32xbf16> to vector<32x32xbf16>
    %c0_144 = arith.constant 0 : index
    %c0_145 = arith.constant 0 : index
    %c0_146 = arith.constant 0 : index
    %c0_147 = arith.constant 0 : index
    %210 = vector.load %arg16[%c0_144, %c0_145, %c0_146, %c0_147] : memref<1x2x1x32xf32, #tpu.memory_space<vmem>>, vector<1x1x1x32xf32>
    %211 = vector.shape_cast %210 : vector<1x1x1x32xf32> to vector<1x32xf32>
    %212 = arith.truncf %207 : vector<16x32xf32> to vector<16x32xbf16>
    %cst_148 = arith.constant dense<0.000000e+00> : vector<16x32xf32>
    %213 = tpu.matmul %212, %209, %cst_148 {dimension_numbers = #tpu.dot_dimension_numbers<[1], [0], [0], [1], [0, 0, 1, 1], [], []>} : vector<16x32xbf16>, vector<32x32xbf16>, vector<16x32xf32> -> vector<16x32xf32>
    %214 = vector.broadcast %211 : vector<1x32xf32> to vector<16x32xf32>
    %215 = arith.addf %213, %214 : vector<16x32xf32>
    %216 = arith.addf %3, %215 : vector<16x32xf32>
    %c16_149 = arith.constant 16 : index
    %c0_150 = arith.constant 0 : index
    %217 = vector.load %arg38[%c16_149, %c0_150] : memref<24x32xf32, #tpu.memory_space<vmem>>, vector<8x32xf32>
    %c0_151 = arith.constant 0 : index
    %c1_152 = arith.constant 1 : index
    %c0_153 = arith.constant 0 : index
    %c0_154 = arith.constant 0 : index
    %218 = vector.load %arg15[%c0_151, %c1_152, %c0_153, %c0_154] : memref<1x2x32x32xbf16, #tpu.memory_space<vmem>>, vector<1x1x32x32xbf16>
    %219 = vector.shape_cast %218 : vector<1x1x32x32xbf16> to vector<32x32xbf16>
    %c0_155 = arith.constant 0 : index
    %c1_156 = arith.constant 1 : index
    %c0_157 = arith.constant 0 : index
    %c0_158 = arith.constant 0 : index
    %220 = vector.load %arg16[%c0_155, %c1_156, %c0_157, %c0_158] : memref<1x2x1x32xf32, #tpu.memory_space<vmem>>, vector<1x1x1x32xf32>
    %221 = vector.shape_cast %220 : vector<1x1x1x32xf32> to vector<1x32xf32>
    %222 = arith.truncf %217 : vector<8x32xf32> to vector<8x32xbf16>
    %cst_159 = arith.constant dense<0.000000e+00> : vector<8x32xf32>
    %223 = tpu.matmul %222, %219, %cst_159 {dimension_numbers = #tpu.dot_dimension_numbers<[1], [0], [0], [1], [0, 0, 1, 1], [], []>} : vector<8x32xbf16>, vector<32x32xbf16>, vector<8x32xf32> -> vector<8x32xf32>
    %224 = vector.broadcast %221 : vector<1x32xf32> to vector<8x32xf32>
    %225 = arith.addf %223, %224 : vector<8x32xf32>
    %226 = arith.addf %4, %225 : vector<8x32xf32>
    %c0_160 = arith.constant 0 : index
    %c0_161 = arith.constant 0 : index
    %c0_162 = arith.constant 0 : index
    %c0_163 = arith.constant 0 : index
    %227 = vector.load %arg17[%c0_160, %c0_161, %c0_162, %c0_163] : memref<1x2x1x32xf32, #tpu.memory_space<vmem>>, vector<1x1x1x32xf32>
    %228 = vector.shape_cast %227 : vector<1x1x1x32xf32> to vector<1x32xf32>
    %c0_164 = arith.constant 0 : index
    %c0_165 = arith.constant 0 : index
    %c0_166 = arith.constant 0 : index
    %c0_167 = arith.constant 0 : index
    %229 = vector.load %arg18[%c0_164, %c0_165, %c0_166, %c0_167] : memref<1x2x1x32xf32, #tpu.memory_space<vmem>>, vector<1x1x1x32xf32>
    %230 = vector.shape_cast %229 : vector<1x1x1x32xf32> to vector<1x32xf32>
    %cst_168 = arith.constant dense<0.000000e+00> : vector<16xf32>
    %231 = vector.multi_reduction <add>, %216, %cst_168 [1] : vector<16x32xf32> to vector<16xf32>
    %232 = vector.shape_cast %231 : vector<16xf32> to vector<16x1xf32>
    %cst_169 = arith.constant 3.200000e+01 : f32
    %233 = vector.broadcast %cst_169 : f32 to vector<16x1xf32>
    %234 = arith.divf %232, %233 : vector<16x1xf32>
    %235 = vector.broadcast %234 : vector<16x1xf32> to vector<16x32xf32>
    %236 = arith.subf %216, %235 : vector<16x32xf32>
    %237 = arith.mulf %236, %236 : vector<16x32xf32>
    %cst_170 = arith.constant dense<0.000000e+00> : vector<16xf32>
    %238 = vector.multi_reduction <add>, %237, %cst_170 [1] : vector<16x32xf32> to vector<16xf32>
    %239 = vector.shape_cast %238 : vector<16xf32> to vector<16x1xf32>
    %cst_171 = arith.constant 3.200000e+01 : f32
    %240 = vector.broadcast %cst_171 : f32 to vector<16x1xf32>
    %241 = arith.divf %239, %240 : vector<16x1xf32>
    %242 = vector.broadcast %234 : vector<16x1xf32> to vector<16x32xf32>
    %243 = arith.subf %216, %242 : vector<16x32xf32>
    %cst_172 = arith.constant 9.99999974E-6 : f32
    %244 = vector.broadcast %cst_172 : f32 to vector<16x1xf32>
    %245 = arith.addf %241, %244 : vector<16x1xf32>
    %246 = math.rsqrt %245 : vector<16x1xf32>
    %247 = vector.broadcast %246 : vector<16x1xf32> to vector<16x32xf32>
    %248 = arith.mulf %243, %247 : vector<16x32xf32>
    %249 = vector.broadcast %228 : vector<1x32xf32> to vector<16x32xf32>
    %250 = arith.mulf %248, %249 : vector<16x32xf32>
    %251 = vector.broadcast %230 : vector<1x32xf32> to vector<16x32xf32>
    %252 = arith.addf %250, %251 : vector<16x32xf32>
    %c0_173 = arith.constant 0 : index
    %c0_174 = arith.constant 0 : index
    %c0_175 = arith.constant 0 : index
    %c0_176 = arith.constant 0 : index
    %253 = vector.load %arg19[%c0_173, %c0_174, %c0_175, %c0_176] : memref<1x2x32x128xbf16, #tpu.memory_space<vmem>>, vector<1x1x32x128xbf16>
    %254 = vector.shape_cast %253 : vector<1x1x32x128xbf16> to vector<32x128xbf16>
    %c0_177 = arith.constant 0 : index
    %c0_178 = arith.constant 0 : index
    %c0_179 = arith.constant 0 : index
    %c0_180 = arith.constant 0 : index
    %255 = vector.load %arg20[%c0_177, %c0_178, %c0_179, %c0_180] : memref<1x2x1x128xf32, #tpu.memory_space<vmem>>, vector<1x1x1x128xf32>
    %256 = vector.shape_cast %255 : vector<1x1x1x128xf32> to vector<1x128xf32>
    %257 = arith.truncf %252 : vector<16x32xf32> to vector<16x32xbf16>
    %cst_181 = arith.constant dense<0.000000e+00> : vector<16x128xf32>
    %258 = tpu.matmul %257, %254, %cst_181 {dimension_numbers = #tpu.dot_dimension_numbers<[1], [0], [0], [1], [0, 0, 1, 1], [], []>} : vector<16x32xbf16>, vector<32x128xbf16>, vector<16x128xf32> -> vector<16x128xf32>
    %259 = vector.broadcast %256 : vector<1x128xf32> to vector<16x128xf32>
    %260 = arith.addf %258, %259 : vector<16x128xf32>
    %261 = arith.mulf %260, %260 : vector<16x128xf32>
    %262 = arith.mulf %260, %261 : vector<16x128xf32>
    %cst_182 = arith.constant 4.471500e-02 : f32
    %263 = vector.broadcast %cst_182 : f32 to vector<16x128xf32>
    %264 = arith.mulf %263, %262 : vector<16x128xf32>
    %265 = arith.addf %260, %264 : vector<16x128xf32>
    %cst_183 = arith.constant 0.797884583 : f32
    %266 = vector.broadcast %cst_183 : f32 to vector<16x128xf32>
    %267 = arith.mulf %266, %265 : vector<16x128xf32>
    %268 = math.tanh %267 : vector<16x128xf32>
    %cst_184 = arith.constant 1.000000e+00 : f32
    %269 = vector.broadcast %cst_184 : f32 to vector<16x128xf32>
    %270 = arith.addf %269, %268 : vector<16x128xf32>
    %cst_185 = arith.constant 5.000000e-01 : f32
    %271 = vector.broadcast %cst_185 : f32 to vector<16x128xf32>
    %272 = arith.mulf %271, %270 : vector<16x128xf32>
    %273 = arith.mulf %260, %272 : vector<16x128xf32>
    %c0_186 = arith.constant 0 : index
    %c0_187 = arith.constant 0 : index
    %c0_188 = arith.constant 0 : index
    %c0_189 = arith.constant 0 : index
    %274 = vector.load %arg21[%c0_186, %c0_187, %c0_188, %c0_189] : memref<1x2x128x32xbf16, #tpu.memory_space<vmem>>, vector<1x1x128x32xbf16>
    %275 = vector.shape_cast %274 : vector<1x1x128x32xbf16> to vector<128x32xbf16>
    %c0_190 = arith.constant 0 : index
    %c0_191 = arith.constant 0 : index
    %c0_192 = arith.constant 0 : index
    %c0_193 = arith.constant 0 : index
    %276 = vector.load %arg22[%c0_190, %c0_191, %c0_192, %c0_193] : memref<1x2x1x32xf32, #tpu.memory_space<vmem>>, vector<1x1x1x32xf32>
    %277 = vector.shape_cast %276 : vector<1x1x1x32xf32> to vector<1x32xf32>
    %278 = arith.truncf %273 : vector<16x128xf32> to vector<16x128xbf16>
    %cst_194 = arith.constant dense<0.000000e+00> : vector<16x32xf32>
    %279 = tpu.matmul %278, %275, %cst_194 {dimension_numbers = #tpu.dot_dimension_numbers<[1], [0], [0], [1], [0, 0, 1, 1], [], []>} : vector<16x128xbf16>, vector<128x32xbf16>, vector<16x32xf32> -> vector<16x32xf32>
    %280 = vector.broadcast %277 : vector<1x32xf32> to vector<16x32xf32>
    %281 = arith.addf %279, %280 : vector<16x32xf32>
    %282 = arith.addf %216, %281 : vector<16x32xf32>
    %c0_195 = arith.constant 0 : index
    %c1_196 = arith.constant 1 : index
    %c0_197 = arith.constant 0 : index
    %c0_198 = arith.constant 0 : index
    %283 = vector.load %arg17[%c0_195, %c1_196, %c0_197, %c0_198] : memref<1x2x1x32xf32, #tpu.memory_space<vmem>>, vector<1x1x1x32xf32>
    %284 = vector.shape_cast %283 : vector<1x1x1x32xf32> to vector<1x32xf32>
    %c0_199 = arith.constant 0 : index
    %c1_200 = arith.constant 1 : index
    %c0_201 = arith.constant 0 : index
    %c0_202 = arith.constant 0 : index
    %285 = vector.load %arg18[%c0_199, %c1_200, %c0_201, %c0_202] : memref<1x2x1x32xf32, #tpu.memory_space<vmem>>, vector<1x1x1x32xf32>
    %286 = vector.shape_cast %285 : vector<1x1x1x32xf32> to vector<1x32xf32>
    %cst_203 = arith.constant dense<0.000000e+00> : vector<8xf32>
    %287 = vector.multi_reduction <add>, %226, %cst_203 [1] : vector<8x32xf32> to vector<8xf32>
    %288 = vector.shape_cast %287 : vector<8xf32> to vector<8x1xf32>
    %cst_204 = arith.constant 3.200000e+01 : f32
    %289 = vector.broadcast %cst_204 : f32 to vector<8x1xf32>
    %290 = arith.divf %288, %289 : vector<8x1xf32>
    %291 = vector.broadcast %290 : vector<8x1xf32> to vector<8x32xf32>
    %292 = arith.subf %226, %291 : vector<8x32xf32>
    %293 = arith.mulf %292, %292 : vector<8x32xf32>
    %cst_205 = arith.constant dense<0.000000e+00> : vector<8xf32>
    %294 = vector.multi_reduction <add>, %293, %cst_205 [1] : vector<8x32xf32> to vector<8xf32>
    %295 = vector.shape_cast %294 : vector<8xf32> to vector<8x1xf32>
    %cst_206 = arith.constant 3.200000e+01 : f32
    %296 = vector.broadcast %cst_206 : f32 to vector<8x1xf32>
    %297 = arith.divf %295, %296 : vector<8x1xf32>
    %298 = vector.broadcast %290 : vector<8x1xf32> to vector<8x32xf32>
    %299 = arith.subf %226, %298 : vector<8x32xf32>
    %cst_207 = arith.constant 9.99999974E-6 : f32
    %300 = vector.broadcast %cst_207 : f32 to vector<8x1xf32>
    %301 = arith.addf %297, %300 : vector<8x1xf32>
    %302 = math.rsqrt %301 : vector<8x1xf32>
    %303 = vector.broadcast %302 : vector<8x1xf32> to vector<8x32xf32>
    %304 = arith.mulf %299, %303 : vector<8x32xf32>
    %305 = vector.broadcast %284 : vector<1x32xf32> to vector<8x32xf32>
    %306 = arith.mulf %304, %305 : vector<8x32xf32>
    %307 = vector.broadcast %286 : vector<1x32xf32> to vector<8x32xf32>
    %308 = arith.addf %306, %307 : vector<8x32xf32>
    %c0_208 = arith.constant 0 : index
    %c1_209 = arith.constant 1 : index
    %c0_210 = arith.constant 0 : index
    %c0_211 = arith.constant 0 : index
    %309 = vector.load %arg19[%c0_208, %c1_209, %c0_210, %c0_211] : memref<1x2x32x128xbf16, #tpu.memory_space<vmem>>, vector<1x1x32x128xbf16>
    %310 = vector.shape_cast %309 : vector<1x1x32x128xbf16> to vector<32x128xbf16>
    %c0_212 = arith.constant 0 : index
    %c1_213 = arith.constant 1 : index
    %c0_214 = arith.constant 0 : index
    %c0_215 = arith.constant 0 : index
    %311 = vector.load %arg20[%c0_212, %c1_213, %c0_214, %c0_215] : memref<1x2x1x128xf32, #tpu.memory_space<vmem>>, vector<1x1x1x128xf32>
    %312 = vector.shape_cast %311 : vector<1x1x1x128xf32> to vector<1x128xf32>
    %313 = arith.truncf %308 : vector<8x32xf32> to vector<8x32xbf16>
    %cst_216 = arith.constant dense<0.000000e+00> : vector<8x128xf32>
    %314 = tpu.matmul %313, %310, %cst_216 {dimension_numbers = #tpu.dot_dimension_numbers<[1], [0], [0], [1], [0, 0, 1, 1], [], []>} : vector<8x32xbf16>, vector<32x128xbf16>, vector<8x128xf32> -> vector<8x128xf32>
    %315 = vector.broadcast %312 : vector<1x128xf32> to vector<8x128xf32>
    %316 = arith.addf %314, %315 : vector<8x128xf32>
    %317 = arith.mulf %316, %316 : vector<8x128xf32>
    %318 = arith.mulf %316, %317 : vector<8x128xf32>
    %cst_217 = arith.constant 4.471500e-02 : f32
    %319 = vector.broadcast %cst_217 : f32 to vector<8x128xf32>
    %320 = arith.mulf %319, %318 : vector<8x128xf32>
    %321 = arith.addf %316, %320 : vector<8x128xf32>
    %cst_218 = arith.constant 0.797884583 : f32
    %322 = vector.broadcast %cst_218 : f32 to vector<8x128xf32>
    %323 = arith.mulf %322, %321 : vector<8x128xf32>
    %324 = math.tanh %323 : vector<8x128xf32>
    %cst_219 = arith.constant 1.000000e+00 : f32
    %325 = vector.broadcast %cst_219 : f32 to vector<8x128xf32>
    %326 = arith.addf %325, %324 : vector<8x128xf32>
    %cst_220 = arith.constant 5.000000e-01 : f32
    %327 = vector.broadcast %cst_220 : f32 to vector<8x128xf32>
    %328 = arith.mulf %327, %326 : vector<8x128xf32>
    %329 = arith.mulf %316, %328 : vector<8x128xf32>
    %c0_221 = arith.constant 0 : index
    %c1_222 = arith.constant 1 : index
    %c0_223 = arith.constant 0 : index
    %c0_224 = arith.constant 0 : index
    %330 = vector.load %arg21[%c0_221, %c1_222, %c0_223, %c0_224] : memref<1x2x128x32xbf16, #tpu.memory_space<vmem>>, vector<1x1x128x32xbf16>
    %331 = vector.shape_cast %330 : vector<1x1x128x32xbf16> to vector<128x32xbf16>
    %c0_225 = arith.constant 0 : index
    %c1_226 = arith.constant 1 : index
    %c0_227 = arith.constant 0 : index
    %c0_228 = arith.constant 0 : index
    %332 = vector.load %arg22[%c0_225, %c1_226, %c0_227, %c0_228] : memref<1x2x1x32xf32, #tpu.memory_space<vmem>>, vector<1x1x1x32xf32>
    %333 = vector.shape_cast %332 : vector<1x1x1x32xf32> to vector<1x32xf32>
    %334 = arith.truncf %329 : vector<8x128xf32> to vector<8x128xbf16>
    %cst_229 = arith.constant dense<0.000000e+00> : vector<8x32xf32>
    %335 = tpu.matmul %334, %331, %cst_229 {dimension_numbers = #tpu.dot_dimension_numbers<[1], [0], [0], [1], [0, 0, 1, 1], [], []>} : vector<8x128xbf16>, vector<128x32xbf16>, vector<8x32xf32> -> vector<8x32xf32>
    %336 = vector.broadcast %333 : vector<1x32xf32> to vector<8x32xf32>
    %337 = arith.addf %335, %336 : vector<8x32xf32>
    %338 = arith.addf %226, %337 : vector<8x32xf32>
    %c0_230 = arith.constant 0 : index
    %c0_231 = arith.constant 0 : index
    %339 = vector.load %arg33[%c0_230, %c0_231] : memref<16x32xf32, #tpu.memory_space<vmem>>, vector<16x32xf32>
    tpu.vector_store %arg33[%c0_230, %c0_231], %282 {strides = array<i32>} : memref<16x32xf32, #tpu.memory_space<vmem>>, vector<16x32xf32>,
    %c0_232 = arith.constant 0 : index
    %c0_233 = arith.constant 0 : index
    %340 = vector.load %arg34[%c0_232, %c0_233] : memref<8x32xf32, #tpu.memory_space<vmem>>, vector<8x32xf32>
    tpu.vector_store %arg34[%c0_232, %c0_233], %338 {strides = array<i32>} : memref<8x32xf32, #tpu.memory_space<vmem>>, vector<8x32xf32>,
    %c1_i32 = arith.constant 1 : i32
    %341 = arith.cmpi eq, %arg1, %c1_i32 : i32
    %342 = arith.extui %341 : i1 to i32
    %c0_i32_234 = arith.constant 0 : i32
    %343 = arith.cmpi ne, %342, %c0_i32_234 : i32
    scf.if %343 {
      %c0_235 = arith.constant 0 : index
      %c0_236 = arith.constant 0 : index
      %344 = vector.load %arg23[%c0_235, %c0_236] : memref<1x32xf32, #tpu.memory_space<vmem>>, vector<1x32xf32>
      %c0_237 = arith.constant 0 : index
      %c0_238 = arith.constant 0 : index
      %345 = vector.load %arg24[%c0_237, %c0_238] : memref<1x32xf32, #tpu.memory_space<vmem>>, vector<1x32xf32>
      %cst_239 = arith.constant dense<0.000000e+00> : vector<8xf32>
      %346 = vector.multi_reduction <add>, %338, %cst_239 [1] : vector<8x32xf32> to vector<8xf32>
      %347 = vector.shape_cast %346 : vector<8xf32> to vector<8x1xf32>
      %cst_240 = arith.constant 3.200000e+01 : f32
      %348 = vector.broadcast %cst_240 : f32 to vector<8x1xf32>
      %349 = arith.divf %347, %348 : vector<8x1xf32>
      %350 = vector.broadcast %349 : vector<8x1xf32> to vector<8x32xf32>
      %351 = arith.subf %338, %350 : vector<8x32xf32>
      %352 = arith.mulf %351, %351 : vector<8x32xf32>
      %cst_241 = arith.constant dense<0.000000e+00> : vector<8xf32>
      %353 = vector.multi_reduction <add>, %352, %cst_241 [1] : vector<8x32xf32> to vector<8xf32>
      %354 = vector.shape_cast %353 : vector<8xf32> to vector<8x1xf32>
      %cst_242 = arith.constant 3.200000e+01 : f32
      %355 = vector.broadcast %cst_242 : f32 to vector<8x1xf32>
      %356 = arith.divf %354, %355 : vector<8x1xf32>
      %357 = vector.broadcast %349 : vector<8x1xf32> to vector<8x32xf32>
      %358 = arith.subf %338, %357 : vector<8x32xf32>
      %cst_243 = arith.constant 9.99999974E-6 : f32
      %359 = vector.broadcast %cst_243 : f32 to vector<8x1xf32>
      %360 = arith.addf %356, %359 : vector<8x1xf32>
      %361 = math.rsqrt %360 : vector<8x1xf32>
      %362 = vector.broadcast %361 : vector<8x1xf32> to vector<8x32xf32>
      %363 = arith.mulf %358, %362 : vector<8x32xf32>
      %364 = vector.broadcast %344 : vector<1x32xf32> to vector<8x32xf32>
      %365 = arith.mulf %363, %364 : vector<8x32xf32>
      %366 = vector.broadcast %345 : vector<1x32xf32> to vector<8x32xf32>
      %367 = arith.addf %365, %366 : vector<8x32xf32>
      %c0_244 = arith.constant 0 : index
      %c0_245 = arith.constant 0 : index
      %368 = vector.load %arg31[%c0_244, %c0_245] : memref<8x128xf32, #tpu.memory_space<vmem>>, vector<8x32xf32>
      tpu.vector_store %arg31[%c0_244, %c0_245], %367 {strides = array<i32>} : memref<8x128xf32, #tpu.memory_space<vmem>>, vector<8x32xf32>,
      %c0_246 = arith.constant 0 : index
      %c0_247 = arith.constant 0 : index
      %369 = vector.load %arg25[%c0_246, %c0_247] : memref<32x96xbf16, #tpu.memory_space<vmem>>, vector<32x96xbf16>
      %c0_248 = arith.constant 0 : index
      %c0_249 = arith.constant 0 : index
      %370 = vector.load %arg26[%c0_248, %c0_249] : memref<1x96xf32, #tpu.memory_space<vmem>>, vector<1x96xf32>
      %371 = arith.truncf %367 : vector<8x32xf32> to vector<8x32xbf16>
      %cst_250 = arith.constant dense<0.000000e+00> : vector<8x96xf32>
      %372 = tpu.matmul %371, %369, %cst_250 {dimension_numbers = #tpu.dot_dimension_numbers<[1], [0], [0], [1], [0, 0, 1, 1], [], []>} : vector<8x32xbf16>, vector<32x96xbf16>, vector<8x96xf32> -> vector<8x96xf32>
      %373 = vector.broadcast %370 : vector<1x96xf32> to vector<8x96xf32>
      %374 = arith.addf %372, %373 : vector<8x96xf32>
      %c0_251 = arith.constant 0 : index
      %c32 = arith.constant 32 : index
      %375 = vector.load %arg31[%c0_251, %c32] : memref<8x128xf32, #tpu.memory_space<vmem>>, vector<8x96xf32>
      tpu.vector_store %arg31[%c0_251, %c32], %374 {strides = array<i32>} : memref<8x128xf32, #tpu.memory_space<vmem>>, vector<8x96xf32>,
      %c0_252 = arith.constant 0 : index
      %c0_253 = arith.constant 0 : index
      %376 = vector.load %arg27[%c0_252, %c0_253] : memref<1x32xf32, #tpu.memory_space<vmem>>, vector<1x32xf32>
      %c0_254 = arith.constant 0 : index
      %c0_255 = arith.constant 0 : index
      %377 = vector.load %arg28[%c0_254, %c0_255] : memref<1x32xf32, #tpu.memory_space<vmem>>, vector<1x32xf32>
      %cst_256 = arith.constant dense<0.000000e+00> : vector<16xf32>
      %378 = vector.multi_reduction <add>, %282, %cst_256 [1] : vector<16x32xf32> to vector<16xf32>
      %379 = vector.shape_cast %378 : vector<16xf32> to vector<16x1xf32>
      %cst_257 = arith.constant 3.200000e+01 : f32
      %380 = vector.broadcast %cst_257 : f32 to vector<16x1xf32>
      %381 = arith.divf %379, %380 : vector<16x1xf32>
      %382 = vector.broadcast %381 : vector<16x1xf32> to vector<16x32xf32>
      %383 = arith.subf %282, %382 : vector<16x32xf32>
      %384 = arith.mulf %383, %383 : vector<16x32xf32>
      %cst_258 = arith.constant dense<0.000000e+00> : vector<16xf32>
      %385 = vector.multi_reduction <add>, %384, %cst_258 [1] : vector<16x32xf32> to vector<16xf32>
      %386 = vector.shape_cast %385 : vector<16xf32> to vector<16x1xf32>
      %cst_259 = arith.constant 3.200000e+01 : f32
      %387 = vector.broadcast %cst_259 : f32 to vector<16x1xf32>
      %388 = arith.divf %386, %387 : vector<16x1xf32>
      %389 = vector.broadcast %381 : vector<16x1xf32> to vector<16x32xf32>
      %390 = arith.subf %282, %389 : vector<16x32xf32>
      %cst_260 = arith.constant 9.99999974E-6 : f32
      %391 = vector.broadcast %cst_260 : f32 to vector<16x1xf32>
      %392 = arith.addf %388, %391 : vector<16x1xf32>
      %393 = math.rsqrt %392 : vector<16x1xf32>
      %394 = vector.broadcast %393 : vector<16x1xf32> to vector<16x32xf32>
      %395 = arith.mulf %390, %394 : vector<16x32xf32>
      %396 = vector.broadcast %376 : vector<1x32xf32> to vector<16x32xf32>
      %397 = arith.mulf %395, %396 : vector<16x32xf32>
      %398 = vector.broadcast %377 : vector<1x32xf32> to vector<16x32xf32>
      %399 = arith.addf %397, %398 : vector<16x32xf32>
      %c0_261 = arith.constant 0 : index
      %c0_262 = arith.constant 0 : index
      %400 = vector.load %arg32[%c0_261, %c0_262] : memref<16x128xf32, #tpu.memory_space<vmem>>, vector<16x32xf32>
      tpu.vector_store %arg32[%c0_261, %c0_262], %399 {strides = array<i32>} : memref<16x128xf32, #tpu.memory_space<vmem>>, vector<16x32xf32>,
      %c0_263 = arith.constant 0 : index
      %c0_264 = arith.constant 0 : index
      %401 = vector.load %arg29[%c0_263, %c0_264] : memref<32x96xbf16, #tpu.memory_space<vmem>>, vector<32x96xbf16>
      %c0_265 = arith.constant 0 : index
      %c0_266 = arith.constant 0 : index
      %402 = vector.load %arg30[%c0_265, %c0_266] : memref<1x96xf32, #tpu.memory_space<vmem>>, vector<1x96xf32>
      %403 = arith.truncf %399 : vector<16x32xf32> to vector<16x32xbf16>
      %cst_267 = arith.constant dense<0.000000e+00> : vector<16x96xf32>
      %404 = tpu.matmul %403, %401, %cst_267 {dimension_numbers = #tpu.dot_dimension_numbers<[1], [0], [0], [1], [0, 0, 1, 1], [], []>} : vector<16x32xbf16>, vector<32x96xbf16>, vector<16x96xf32> -> vector<16x96xf32>
      %405 = vector.broadcast %402 : vector<1x96xf32> to vector<16x96xf32>
      %406 = arith.addf %404, %405 : vector<16x96xf32>
      %c0_268 = arith.constant 0 : index
      %c32_269 = arith.constant 32 : index
      %407 = vector.load %arg32[%c0_268, %c32_269] : memref<16x128xf32, #tpu.memory_space<vmem>>, vector<16x96xf32>
      tpu.vector_store %arg32[%c0_268, %c32_269], %406 {strides = array<i32>} : memref<16x128xf32, #tpu.memory_space<vmem>>, vector<16x96xf32>,
    } else {
    }
    return
  }
  func.func @transform_0(%arg0: i32, %arg1: i32) -> (i32, i32) {
    %c0_i32 = arith.constant 0 : i32
    %c0_i32_0 = arith.constant 0 : i32
    return %arg0, %c0_i32 : i32, i32
  }
  func.func @transform_1(%arg0: i32, %arg1: i32) -> (i32, i32) {
    %c0_i32 = arith.constant 0 : i32
    %c0_i32_0 = arith.constant 0 : i32
    return %arg0, %c0_i32 : i32, i32
  }
  func.func @transform_2(%arg0: i32, %arg1: i32) -> (i32, i32, i32) {
    %c0_i32 = arith.constant 0 : i32
    %c0_i32_0 = arith.constant 0 : i32
    %c0_i32_1 = arith.constant 0 : i32
    return %arg0, %c0_i32, %c0_i32_0 : i32, i32, i32
  }
  func.func @transform_3(%arg0: i32, %arg1: i32) -> (i32, i32, i32) {
    %c0_i32 = arith.constant 0 : i32
    %c0_i32_0 = arith.constant 0 : i32
    %c0_i32_1 = arith.constant 0 : i32
    return %arg0, %c0_i32, %c0_i32_0 : i32, i32, i32
  }
  func.func @transform_4(%arg0: i32, %arg1: i32) -> (i32, i32, i32) {
    %c0_i32 = arith.constant 0 : i32
    %c0_i32_0 = arith.constant 0 : i32
    %c0_i32_1 = arith.constant 0 : i32
    return %arg0, %c0_i32, %c0_i32_0 : i32, i32, i32
  }
  func.func @transform_5(%arg0: i32, %arg1: i32) -> (i32, i32) {
    %c0_i32 = arith.constant 0 : i32
    %c0_i32_0 = arith.constant 0 : i32
    %c0_i32_1 = arith.constant 0 : i32
    return %c0_i32, %c0_i32_0 : i32, i32
  }
  func.func @transform_6(%arg0: i32, %arg1: i32) -> (i32, i32) {
    %c0_i32 = arith.constant 0 : i32
    %c0_i32_0 = arith.constant 0 : i32
    %c0_i32_1 = arith.constant 0 : i32
    return %c0_i32, %c0_i32_0 : i32, i32
  }
  func.func @transform_7(%arg0: i32, %arg1: i32) -> (i32, i32) {
    %c0_i32 = arith.constant 0 : i32
    %c0_i32_0 = arith.constant 0 : i32
    %c0_i32_1 = arith.constant 0 : i32
    return %c0_i32, %c0_i32_0 : i32, i32
  }
  func.func @transform_8(%arg0: i32, %arg1: i32) -> (i32, i32) {
    %c0_i32 = arith.constant 0 : i32
    %c0_i32_0 = arith.constant 0 : i32
    %c0_i32_1 = arith.constant 0 : i32
    return %c0_i32, %c0_i32_0 : i32, i32
  }
  func.func @transform_9(%arg0: i32, %arg1: i32) -> (i32, i32, i32, i32) {
    %c0_i32 = arith.constant 0 : i32
    %c0_i32_0 = arith.constant 0 : i32
    %c0_i32_1 = arith.constant 0 : i32
    %c0_i32_2 = arith.constant 0 : i32
    return %arg1, %c0_i32, %c0_i32_0, %c0_i32_1 : i32, i32, i32, i32
  }
  func.func @transform_10(%arg0: i32, %arg1: i32) -> (i32, i32, i32, i32) {
    %c0_i32 = arith.constant 0 : i32
    %c0_i32_0 = arith.constant 0 : i32
    %c0_i32_1 = arith.constant 0 : i32
    %c0_i32_2 = arith.constant 0 : i32
    return %arg1, %c0_i32, %c0_i32_0, %c0_i32_1 : i32, i32, i32, i32
  }
  func.func @transform_11(%arg0: i32, %arg1: i32) -> (i32, i32, i32, i32) {
    %c0_i32 = arith.constant 0 : i32
    %c0_i32_0 = arith.constant 0 : i32
    %c0_i32_1 = arith.constant 0 : i32
    %c0_i32_2 = arith.constant 0 : i32
    return %arg1, %c0_i32, %c0_i32_0, %c0_i32_1 : i32, i32, i32, i32
  }
  func.func @transform_12(%arg0: i32, %arg1: i32) -> (i32, i32, i32, i32) {
    %c0_i32 = arith.constant 0 : i32
    %c0_i32_0 = arith.constant 0 : i32
    %c0_i32_1 = arith.constant 0 : i32
    %c0_i32_2 = arith.constant 0 : i32
    return %arg1, %c0_i32, %c0_i32_0, %c0_i32_1 : i32, i32, i32, i32
  }
  func.func @transform_13(%arg0: i32, %arg1: i32) -> (i32, i32, i32, i32) {
    %c0_i32 = arith.constant 0 : i32
    %c0_i32_0 = arith.constant 0 : i32
    %c0_i32_1 = arith.constant 0 : i32
    %c0_i32_2 = arith.constant 0 : i32
    return %arg1, %c0_i32, %c0_i32_0, %c0_i32_1 : i32, i32, i32, i32
  }
  func.func @transform_14(%arg0: i32, %arg1: i32) -> (i32, i32, i32, i32) {
    %c0_i32 = arith.constant 0 : i32
    %c0_i32_0 = arith.constant 0 : i32
    %c0_i32_1 = arith.constant 0 : i32
    %c0_i32_2 = arith.constant 0 : i32
    return %arg1, %c0_i32, %c0_i32_0, %c0_i32_1 : i32, i32, i32, i32
  }
  func.func @transform_15(%arg0: i32, %arg1: i32) -> (i32, i32, i32, i32) {
    %c0_i32 = arith.constant 0 : i32
    %c0_i32_0 = arith.constant 0 : i32
    %c0_i32_1 = arith.constant 0 : i32
    %c0_i32_2 = arith.constant 0 : i32
    return %arg1, %c0_i32, %c0_i32_0, %c0_i32_1 : i32, i32, i32, i32
  }
  func.func @transform_16(%arg0: i32, %arg1: i32) -> (i32, i32, i32, i32) {
    %c0_i32 = arith.constant 0 : i32
    %c0_i32_0 = arith.constant 0 : i32
    %c0_i32_1 = arith.constant 0 : i32
    %c0_i32_2 = arith.constant 0 : i32
    return %arg1, %c0_i32, %c0_i32_0, %c0_i32_1 : i32, i32, i32, i32
  }
  func.func @transform_17(%arg0: i32, %arg1: i32) -> (i32, i32, i32, i32) {
    %c0_i32 = arith.constant 0 : i32
    %c0_i32_0 = arith.constant 0 : i32
    %c0_i32_1 = arith.constant 0 : i32
    %c0_i32_2 = arith.constant 0 : i32
    return %arg1, %c0_i32, %c0_i32_0, %c0_i32_1 : i32, i32, i32, i32
  }
  func.func @transform_18(%arg0: i32, %arg1: i32) -> (i32, i32, i32, i32) {
    %c0_i32 = arith.constant 0 : i32
    %c0_i32_0 = arith.constant 0 : i32
    %c0_i32_1 = arith.constant 0 : i32
    %c0_i32_2 = arith.constant 0 : i32
    return %arg1, %c0_i32, %c0_i32_0, %c0_i32_1 : i32, i32, i32, i32
  }
  func.func @transform_19(%arg0: i32, %arg1: i32) -> (i32, i32, i32, i32) {
    %c0_i32 = arith.constant 0 : i32
    %c0_i32_0 = arith.constant 0 : i32
    %c0_i32_1 = arith.constant 0 : i32
    %c0_i32_2 = arith.constant 0 : i32
    return %arg1, %c0_i32, %c0_i32_0, %c0_i32_1 : i32, i32, i32, i32
  }
  func.func @transform_20(%arg0: i32, %arg1: i32) -> (i32, i32, i32, i32) {
    %c0_i32 = arith.constant 0 : i32
    %c0_i32_0 = arith.constant 0 : i32
    %c0_i32_1 = arith.constant 0 : i32
    %c0_i32_2 = arith.constant 0 : i32
    return %arg1, %c0_i32, %c0_i32_0, %c0_i32_1 : i32, i32, i32, i32
  }
  func.func @transform_21(%arg0: i32, %arg1: i32) -> (i32, i32) {
    %c0_i32 = arith.constant 0 : i32
    %c0_i32_0 = arith.constant 0 : i32
    %c0_i32_1 = arith.constant 0 : i32
    return %c0_i32, %c0_i32_0 : i32, i32
  }
  func.func @transform_22(%arg0: i32, %arg1: i32) -> (i32, i32) {
    %c0_i32 = arith.constant 0 : i32
    %c0_i32_0 = arith.constant 0 : i32
    %c0_i32_1 = arith.constant 0 : i32
    return %c0_i32, %c0_i32_0 : i32, i32
  }
  func.func @transform_23(%arg0: i32, %arg1: i32) -> (i32, i32) {
    %c0_i32 = arith.constant 0 : i32
    %c0_i32_0 = arith.constant 0 : i32
    %c0_i32_1 = arith.constant 0 : i32
    return %c0_i32, %c0_i32_0 : i32, i32
  }
  func.func @transform_24(%arg0: i32, %arg1: i32) -> (i32, i32) {
    %c0_i32 = arith.constant 0 : i32
    %c0_i32_0 = arith.constant 0 : i32
    %c0_i32_1 = arith.constant 0 : i32
    return %c0_i32, %c0_i32_0 : i32, i32
  }
  func.func @transform_25(%arg0: i32, %arg1: i32) -> (i32, i32) {
    %c0_i32 = arith.constant 0 : i32
    %c0_i32_0 = arith.constant 0 : i32
    %c0_i32_1 = arith.constant 0 : i32
    return %c0_i32, %c0_i32_0 : i32, i32
  }
  func.func @transform_26(%arg0: i32, %arg1: i32) -> (i32, i32) {
    %c0_i32 = arith.constant 0 : i32
    %c0_i32_0 = arith.constant 0 : i32
    %c0_i32_1 = arith.constant 0 : i32
    return %c0_i32, %c0_i32_0 : i32, i32
  }
  func.func @transform_27(%arg0: i32, %arg1: i32) -> (i32, i32) {
    %c0_i32 = arith.constant 0 : i32
    %c0_i32_0 = arith.constant 0 : i32
    %c0_i32_1 = arith.constant 0 : i32
    return %c0_i32, %c0_i32_0 : i32, i32
  }
  func.func @transform_28(%arg0: i32, %arg1: i32) -> (i32, i32) {
    %c0_i32 = arith.constant 0 : i32
    %c0_i32_0 = arith.constant 0 : i32
    %c0_i32_1 = arith.constant 0 : i32
    return %c0_i32, %c0_i32_0 : i32, i32
  }
  func.func @transform_29(%arg0: i32, %arg1: i32) -> (i32, i32) {
    %c0_i32 = arith.constant 0 : i32
    %c0_i32_0 = arith.constant 0 : i32
    return %arg0, %c0_i32 : i32, i32
  }
  func.func @transform_30(%arg0: i32, %arg1: i32) -> (i32, i32) {
    %c0_i32 = arith.constant 0 : i32
    %c0_i32_0 = arith.constant 0 : i32
    return %arg0, %c0_i32 : i32, i32
  }
}

</mosaic_0001>

<bundles_post_ra>
// kernel: joint_model_forward.1
= control target key start
LH: loop header
LB: loop body
LE: loop exit
PB: predicated region body
PF: predicated region fallthrough
CT: control target
= control target key end

     0   :  { %s4472_s6 = smov 1   ;;  %s4473_s10 = smov 2   ;;  %s5139_s0 = inlined_call_operand.smem [shape: u32[31], index: -1, kind: input, shape index: {}] }
   0x1   :  { %s4532_s5 = sld [smem:[%s5139_s0]]   ;;  %s4474_s14 = smov 3  }
   0x2   :  { %s4537_s9 = sld [smem:[%s5139_s0 + %s4472_s6]]   ;;  %s4475_s18 = smov 4  }
   0x3   :  { %s4542_s13 = sld [smem:[%s5139_s0 + %s4473_s10]]   ;;  %s4476_s22 = smov 5  }
   0x4   :  { %s4547_s17 = sld [smem:[%s5139_s0 + %s4474_s14]]   ;;  %s4477_s26 = smov 6  }
   0x5   :  { %s4552_s21 = sld [smem:[%s5139_s0 + %s4475_s18]]   ;;  %s4478_s30 = smov 7  }
   0x6   :  { %s4557_s25 = sld [smem:[%s5139_s0 + %s4476_s22]]   ;;  %s4479_s4 = smov 8  }
   0x7   :  { %5147 = sst [smem:[#allocation8_spill]] %s4532_s5  ;;  %s4480_s10 = smov 9  }
   0x8   :  { %5148 = sst [smem:[#allocation9_spill]] %s4537_s9  ;;  %s4481_s15 = smov 10  }
   0x9   :  { %5149 = sst [smem:[#allocation10_spill]] %s4542_s13  ;;  %s4482_s20 = smov 11  }
   0xa   :  { %5150 = sst [smem:[#allocation11_spill]] %s4547_s17  ;;  %s4484_s1 = smov 13  }
   0xb   :  { %5151 = sst [smem:[#allocation12_spill]] %s4552_s21  ;;  %s4485_s7 = smov 14  }
   0xc   :  { %5152 = sst [smem:[#allocation13_spill]] %s4557_s25  ;;  %s4487_s22 = smov 16  }
   0xd   :  { %s4562_s29 = sld [smem:[%s5139_s0 + %s4477_s26]]   ;;  %s4483_s26 = smov 12  }
   0xe   :  { %s4567_s3 = sld [smem:[%s5139_s0 + %s4478_s30]]   ;;  %s4488_s28 = smov 17  }
   0xf   :  { %s4572_s8 = sld [smem:[%s5139_s0 + %s4479_s4]]   ;;  %s4686_s16 = smov 0  }
  0x10   :  { %s4577_s14 = sld [smem:[%s5139_s0 + %s4480_s10]]   ;;  %s4688_s18 = smov 0  }
  0x11   :  { %s4582_s19 = sld [smem:[%s5139_s0 + %s4481_s15]]   ;;  %s4486_s15 = smov 15  }
  0x12   :  { %s4587_s24 = sld [smem:[%s5139_s0 + %s4482_s20]]   ;;  %s4692_s23 = smov 0  }
  0x13   :  { %5153 = sst [smem:[#allocation14_spill]] %s4562_s29 }
  0x14   :  { %5154 = sst [smem:[#allocation15_spill]] %s4567_s3 }
  0x15   :  { %5155 = sst [smem:[#allocation16_spill]] %s4572_s8 }
  0x16   :  { %5156 = sst [smem:[#allocation17_spill]] %s4577_s14 }
  0x17   :  { %5157 = sst [smem:[#allocation18_spill]] %s4582_s19 }
  0x18   :  { %5158 = sst [smem:[#allocation19_spill]] %s4587_s24 }
  0x19   :  { %s4592_s30 = sld [smem:[%s5139_s0 + %s4483_s26]]  }
  0x1a   :  { %s4597_s6 = sld [smem:[%s5139_s0 + %s4484_s1]]  }
  0x1b   :  { %s4602_s12 = sld [smem:[%s5139_s0 + %s4485_s7]]   ;;  %s4489_s7 = smov 18  }
  0x1c   :  { %s4607_s20 = sld [smem:[%s5139_s0 + %s4486_s15]]   ;;  %s4490_s15 = smov 19  }
  0x1d   :  { %s4612_s27 = sld [smem:[%s5139_s0 + %s4487_s22]]   ;;  %s4491_s22 = smov 20  }
  0x1e   :  { %s4617_s4 = sld [smem:[%s5139_s0 + %s4488_s28]]   ;;  %s4492_s28 = smov 21  }
  0x1f   :  { %s4622_s29 = sld [smem:[%s5139_s0 + %s4489_s7]]   ;;  %s4493_s7 = smov 22  }
  0x20   :  { %5159 = sst [smem:[#allocation20_spill]] %s4597_s6 }
  0x21   :  { %5160 = sst [smem:[#allocation21_spill]] %s4602_s12 }
  0x22   :  { %5161 = sst [smem:[#allocation22_spill]] %s4607_s20 }
  0x23   :  { %s4627_s8 = sld [smem:[%s5139_s0 + %s4490_s15]]   ;;  %s4494_s15 = smov 23  }
  0x24   :  { %s4632_s25 = sld [smem:[%s5139_s0 + %s4491_s22]]   ;;  %s4495_s22 = smov 24  }
  0x25   :  { %5162 = sst [smem:[#allocation23_spill]] %s4622_s29 }
  0x26   :  { %s4637_s3 = sld [smem:[%s5139_s0 + %s4492_s28]]   ;;  %s4496_s28 = smov 25  }
  0x27   :  { %s4642_s29 = sld [smem:[%s5139_s0 + %s4493_s7]]   ;;  %s4497_s7 = smov 26  }
  0x29   :  { %5163 = sst [smem:[#allocation24_spill]] %s4627_s8 }
  0x2a   :  { %5164 = sst [smem:[#allocation25_spill]] %s4632_s25 }
  0x2b   :  { %s4647_s8 = sld [smem:[%s5139_s0 + %s4494_s15]]   ;;  %s4498_s15 = smov 27  }
  0x2c   :  { %5165 = sst [smem:[#allocation26_spill]] %s4637_s3 }
  0x2d   :  { %5166 = sst [smem:[#allocation27_spill]] %s4642_s29 }
  0x2e   :  { %s4652_s25 = sld [smem:[%s5139_s0 + %s4495_s22]]   ;;  %s4499_s22 = smov 28  }
  0x2f   :  { %s4657_s3 = sld [smem:[%s5139_s0 + %s4496_s28]]   ;;  %s4500_s28 = smov 29  }
  0x30   :  { %s4662_s29 = sld [smem:[%s5139_s0 + %s4497_s7]]   ;;  %s4501_s7 = smov 30  }
  0x31   :  { %5167 = sst [smem:[#allocation28_spill]] %s4647_s8 }
  0x32   :  { %s4667_s8 = sld [smem:[%s5139_s0 + %s4498_s15]]   ;;  %s4684_s15 = smov 0  }
  0x34   :  { %5168 = sst [smem:[#allocation29_spill]] %s4652_s25 }
  0x35   :  { %5169 = sst [smem:[#allocation30_spill]] %s4657_s3 }
  0x36   :  { %5170 = sst [smem:[#allocation31_spill]] %s4662_s29 }
  0x37   :  { %s4672_s25 = sld [smem:[%s5139_s0 + %s4499_s22]]   ;;  %s4690_s22 = smov 0  }
  0x38   :  { %5171 = sst [smem:[#allocation32_spill]] %s4667_s8 }
  0x39   :  { %s4677_s3 = sld [smem:[%s5139_s0 + %s4500_s28]]  }
  0x3a   :  { %s4682_s29 = sld [smem:[%s5139_s0 + %s4501_s7]]  }
  0x3d   :  { %5172 = sst [smem:[#allocation33_spill]] %s4672_s25 }
  0x3f   :  { %5173 = sst [smem:[#allocation34_spill]] %s4677_s3 }
  0x40   :  { %5174 = sst [smem:[#allocation35_spill]] %s4682_s29 }
  0x41 LB: > { %5175 = sst [smem:[#allocation36_spill]] %s4462_s18  ;;  %s81_s0 = sadd.s32 1, %s4462_s18  ;;  %s4470_s23 = sphi %s4692_s23, %s72_s23   ;;  %s4466_s22 = sphi %s4690_s22, %s5220_s22   ;;  %s4462_s18 = sphi %s4688_s18, %s5219_s18   ;;  %s4458_s16 = sphi %s4686_s16, %s5218_s16   ;;  %s4454_s15 = sphi %s4684_s15, %s5217_s15  }
  0x42   : > { %5176 = sst [smem:[#allocation37_spill]] %s4466_s22  ;;  %s84_s26 = sadd.s32 1, %s4466_s22 }
  0x43   : > { %5177 = sst [smem:[#allocation38_spill]] %s4470_s23  ;;  %p82_p0 = scmp.ge.s32.totalorder %s81_s0, 2 }
  0x44   : > { %p3748_p1 = scmp.ge.s32.totalorder %s4470_s23, 1  ;;  %p1006_p2 = scmp.lt.s32.totalorder %s4470_s23, 5 }
  0x45   : > { %s5222_s0 = smov (%p82_p0, %s81_s0), 0  ;;  %s5224_s26 = smov (!%p82_p0, %s84_s26), %s4466_s22 }
  0x46   : > { %5178 = sst [smem:[#allocation39_spill]] %s5222_s0  ;;  %p1007_p3 = pnand %p3748_p1, %p1006_p2 }
  0x47   : > { %p86_p4 = scmp.ge.s32.totalorder %s5224_s26, 2 }
  0x48   : > { %1010 = sbr.rel (%p1007_p3) target bundleno = 3268 (0xcc4), region = 136 }
  0x49   : > { %s5226_s26 = smov (%p86_p4, %s5224_s26), 0 }
  0x4a   : > { %5179 = sst [smem:[#allocation40_spill]] %s5226_s26 }
  0x4d   : > { %s3749_s28 = sshll.u32 %s4458_s16, 1  ;;  %s5181_s9 = sld [smem:[#allocation9_spill]] }
  0x4e   : > { %s5182_s5 = sld [smem:[#allocation8_spill]]  ;;  %p1161_p5 = scmp.lt.s32.totalorder %s4458_s16, 1 }
  0x4f   : > { %s5184_s3 = sld [smem:[#allocation34_spill]]  ;;  %p1156_p6 = scmp.lt.s32.totalorder %s3749_s28, 3 }
  0x50   : > { %s5185_s21 = sld [smem:[#allocation12_spill]]  ;;  %p1176_p7 = scmp.lt.s32.totalorder %s4454_s15, 1 }
  0x51   : > { %s5186_s29 = sld [smem:[#allocation35_spill]]  ;;  %s5228_s16 = smov (!%p1161_p5, %s4458_s16), 1 }
  0x52   : > { %s5187_s14 = sld [smem:[#allocation17_spill]]  ;;  %s5230_s28 = smov (!%p1156_p6, %s3749_s28), 3 }
  0x53   : > { %s5188_s19 = sld [smem:[#allocation18_spill]]  ;;  %s3751_s1 = sshll.u32 %s5228_s16, 3 }
  0x54   : > { %s5189_s24 = sld [smem:[#allocation19_spill]]  ;;  %s3750_s7 = sshll.u32 %s5230_s28, 3 }
  0x55   : > { %s5190_s6 = sld [smem:[#allocation20_spill]]  ;;  %s4723_s10 = scalar_lea.vmem %s5181_s9, %s3751_s1 }
  0x56   : > { %s5191_s12 = sld [smem:[#allocation21_spill]]  ;;  %s4726_s11 = scalar_lea.vmem %s5182_s5, %s3750_s7 }
  0x57   : > { %5192 = sst [smem:[#allocation41_spill]] %s4723_s10  ;;  %s4206_s0 = smul.u32 12, %s5228_s16 }
  0x58   : > { %s5193_s20 = sld [smem:[#allocation22_spill]]  ;;  %s4732_s18 = scalar_lea.vmem %s5184_s3, %s3751_s1 }
  0x59   : > { %5194 = sst [smem:[#allocation42_spill]] %s4726_s11  ;;  %s4736_s8 = scalar_lea.vmem %s5185_s21, %s4206_s0 }
  0x5a   : > { %s5195_s22 = sld [smem:[#allocation23_spill]]  ;;  %s4739_s13 = scalar_lea.vmem %s5186_s29, %s3750_s7 }
  0x5b   : > { %s1177_s23 = scalar_select %p1176_p7, %s4454_s15, 1 }
  0x5c   : > { %s5196_s25 = sld [smem:[#allocation25_spill]]  ;;  %p3772_p8 = scmp.ne.s32.totalorder %s4454_s15, 0 }
  0x5d   : > { %s5197_s2 = sld [smem:[#allocation24_spill]]  ;;  %s3753_s28 = sshll.u32 %s1177_s23, 1 }
  0x5e   : > { %s3922_s9 = sshll.u32 %s1177_s23, 5  ;;  %s4742_s10 = scalar_lea.vmem %s5187_s14, %s3753_s28 }
  0x5f   : > { %s4745_s5 = scalar_lea.vmem %s5188_s19, %s3753_s28  ;;  %s4748_s11 = scalar_lea.vmem %s5189_s24, %s3922_s9 }
  0x60   : > { %s4751_s26 = scalar_lea.vmem %s4592_s30, %s3753_s28  ;;  %s4754_s17 = scalar_lea.vmem %s5190_s6, %s3922_s9 }
  0x61   : > { %s4757_s1 = scalar_lea.vmem %s5191_s12, %s3753_s28  ;;  %s4760_s3 = scalar_lea.vmem %s5193_s20, %s3753_s28 }
  0x62   : > { %s4763_s0 = scalar_lea.vmem %s4612_s27, %s3753_s28  ;;  %s4766_s7 = scalar_lea.vmem %s4617_s4, %s3922_s9 }
  0x63   : > { %s4769_s21 = scalar_lea.vmem %s5195_s22, %s3753_s28  ;;  %s3925_s14 = sshll.u32 %s1177_s23, 7 }
  0x64   : > { %s4772_s29 = scalar_lea.vmem %s5196_s25, %s3753_s28  ;;  %s4775_s19 = scalar_lea.vmem %s5197_s2, %s3925_s14 }
  0x65   : > { %1242 = sbr.rel (%p3772_p8) target bundleno = 317 (0x13d), region = 140  ;;  %s5198_s6 = sld [smem:[#allocation15_spill]] (!%p3772_p8) }
  0x66   : > { %s5199_s24 = sld [smem:[#allocation13_spill]] (!%p3772_p8) }
  0x67   : > { %s5200_s12 = sld [smem:[#allocation41_spill]] (!%p3772_p8) }
  0x68   : > { %s5201_s20 = sld [smem:[#allocation42_spill]] (!%p3772_p8) }
  0x69   : > { %s5202_s9 = sld [smem:[#allocation10_spill]] (!%p3772_p8) }
  0x6a   : > { %v4502_v1 = vmov 0.0   ;;  %vm1326_vm0 = vcmask 1040384   ;;  %vm1327_vm1 = vcmask 1041408   ;;  %v4503_v4 = vmov 65535   ;;  %s5203_s25 = sld [smem:[#allocation16_spill]] }
  0x6b   : > { %v4299_v0 = vld [vmem:[%s5198_s6 + $0x8] sm:$0xff]   ;;  %4012 = vmatprep.subr.bf16.mxu0 %v4502_v1  ;;  %4020 = vmatprep.subr.bf16.mxu1 %v4502_v1  ;;  %v4300_v3 = vld [vmem:[%s5198_s6] sm:$0xff]   ;;  %v1328_v5 = vsel %vm1326_vm0, 4294967295, %v4503_v4  ;;  %vm4504_vm2 = vmmov 0   ;;  %vm1245_vm3 = vcmask 261120   ;;  %s5204_s14 = sld [smem:[#allocation14_spill]]  ;;  %v1374_v14 = vlaneseq }
  0x6c   : > { %v1313_v2 = vld [vmem:[%s5199_s24] sm:$0x3]  ;;  %4013 = vmatpush3.bf16.msra.mxu0 %v4299_v0  ;;  %v1329_v6 = vsel %vm1327_vm1, %v1328_v5, 0  ;;  %4022 = vmatprep.mubr.msk.bf16.mxu1 %vm4504_vm2, %v4502_v1  ;;  %s5205_s24 = sld [smem:[#allocation11_spill]]  ;;  %vm1322_vm4 = vcmask 23552  }
  0x6d   : > { %4014 = vmatprep.subr.bf16.mxu0 %v4502_v1  ;;  %v1312_v7 = vld [vmem:[%s5200_s12] sm:$0xff]  ;;  %v1331_v10 = vand.u32 %v1329_v6, %v1313_v2  ;;  %4016 = vmatprep.mubr.msk.bf16.mxu0 %vm4504_vm2, %v4502_v1  ;;  %v1375_v15 = vshrl.u32 %v1374_v14, 7 }
  0x6e   : > { %v1243_v8 = vld [vmem:[%s5201_s20] sm:$0xff]  ;;  %v1244_v9 = vld [vmem:[%s5201_s20 + $0x8] sm:$0xff]  ;;  %v1315_v12 = vpack.c.bf16 %v1312_v7, %v1312_v7 }
  0x6f   : > { %1246 = vst.msk [vmem:[#allocation2] sm:$0xff] %vm1245_vm3, %v1243_v8  ;;  %1247 = vst.msk [vmem:[#allocation2 + $0x8] sm:$0xff] %vm1245_vm3, %v1244_v9  ;;  %s5206_s22 = scalar_lea.vmem %s5202_s9, %s5228_s16  ;;  %4021 = vmatpush3.bf16.msra.mxu1 %v1331_v10  ;;  %v1376_v22 = vsub.s32 0, %v1375_v15 }
  0x70   : > { %v1249_v11 = vld [vmem:[%s5206_s22] sm:$0x1]  ;;  %4015 = vmatpush3.bf16.msra.mxu0 %v4300_v3 }
  0x71   : > { %v1255_v13 = vpack.c.bf16 %v1249_v11, %v1249_v11  ;;  %v1254_v16 = vld [vmem:[%s5203_s25] sm:$0x1] }
  0x72   : > { %4023 = vmatmul.mubr.msk.bf16.vlgmr.msra.gmra.mxu1 %vm1322_vm4, %v1315_v12  ;;  %v3776_v17 = vld [vmem:[%s5204_s14] ss:$0 sm:$0xff]  ;;  %s5207_s12 = scalar_lea.vmem %s5205_s24, %s5228_s16 }
  0x73   : > { %4017 = vmatmul.mubr.msk.bf16.vlgmr.msra.gmra.mxu0 %vm1245_vm3, %v1255_v13  ;;  %v1248_v19 = vld [vmem:[%s5207_s12] sm:$0x1] }
 0x132   : > { %v1367_v18 = vpop.f32.mrf.mxu1 }
 0x133   : > { %v1305_v20 = vpop.f32.mrf.mxu0  ;;  %v1368_v25 = vadd.f32 %v3776_v17, %v1367_v18 }
 0x134   : > { %v1306_v21 = vadd.f32 %v1305_v20, %v1254_v16  ;;  %v4024_v23 = vpop.f32.mrf.mxu1 }
 0x135   : > { %v4018_v24 = vpop.f32.mrf.mxu0 }
 0x136   : > { %v1311_v26 = vadd.f32 %v1306_v21, %v1248_v19  ;;  %v1370_v27 = vpop.f32.mrf.mxu1 }
 0x137   : > { %v1308_v28 = vpop.f32.mrf.mxu0 }
 0x138   : > { %v1377_v29 = vrot.slane %v1311_v26, %v1376_v22  ;;  %v4025_v30 = vpop.f32.mrf.mxu1 }
 0x139   : > { %v4019_v31 = vpop.f32.mrf.mxu0 }
 0x13a   : > { %v1379_v32 = vadd.f32 %v1377_v29, %v1368_v25 }
 0x13c   : > { %1380 = vst.msk [vmem:[#allocation3] sm:$0xff] %vm1245_vm3, %v1379_v32 }
 0x13d PF: > { %v1381_v33 = vld [vmem:[#allocation2] sm:$0xff]  ;;  %vm1386_vm5 = vcmask 261120   ;;  %v1382_v35 = vld [vmem:[#allocation2 + $0x8] sm:$0xff]  ;;  %v4505_v55 = vmov 0.0   ;;  %vm4506_vm6 = vmmov 0   ;;  %v4303_v15 = vld [vmem:[%s4748_s11 + $0x18] sm:$0xff]  }
 0x13e   : > { %v1387_v36 = vsel %vm1386_vm5, %v1381_v33, 0.0  ;;  %v1390_v38 = vsel %vm1386_vm5, %v1382_v35, 0.0  ;;  %v4301_v54 = vld [vmem:[%s4748_s11 + $0x8] sm:$0xff]   ;;  %4026 = vmatprep.subr.bf16.mxu1 %v4505_v55  ;;  %4030 = vmatprep.mubr.msk.bf16.mxu1 %vm4506_vm6, %v4505_v55  ;;  %v4302_v56 = vld [vmem:[%s4748_s11] sm:$0xff]   ;;  %v4304_v19 = vld [vmem:[%s4748_s11 + $0x10] sm:$0xff]   ;;  %vm1607_vm7 = vcmask 60416  }
 0x13f   : > { %1388 = vadd.xlane.f32.xlu0 %v1387_v36  ;;  %4027 = vmatpush3.bf16.msra.mxu1 %v4301_v54  ;;  %v3778_v4 = vld [vmem:[%s4742_s10] ss:$0 sm:$0xff]  ;;  %v3786_v12 = vld [vmem:[%s4742_s10 + $0x1] ss:$0 sm:$0xff]  ;;  %s4508_s20 = smov 88   ;;  %vm1801_vm8 = vcmask 64512  }
 0x140   : > { %4028 = vmatprep.subr.bf16.mxu1 %v4505_v55  ;;  %v3779_v9 = vld [vmem:[%s4745_s5] ss:$0 sm:$0xff]  ;;  %v3787_v18 = vld [vmem:[%s4745_s5 + $0x1] ss:$0 sm:$0xff]  ;;  %s4507_s5 = smov 96   ;;  %s4509_s16 = smov 120  }
 0x141   : > { %v3780_v22 = vld [vmem:[%s4751_s26] ss:$0 sm:$0xff]  ;;  %v3793_v30 = vld [vmem:[%s4751_s26 + $0x1] ss:$0 sm:$0xff]  ;;  %s4510_s23 = smov 80   ;;  %s4511_s26 = smov 72  }
 0x142   : > { %s4512_s2 = smov 112   ;;  %s4513_s10 = smov 104   ;;  %vm2258_vm9 = vcmask 1043456   ;;  %vm2114_vm10 = vcmask 195584   ;;  %vm2547_vm11 = vcmask 130112   ;;  %vm2563_vm12 = vcmask 195712  }
 0x143   : > { %v1383_v34 = vld [vmem:[#allocation3] sm:$0xff]  ;;  %1391 = vadd.xlane.f32.xlu0 %v1390_v38  ;;  %4029 = vmatpush3.bf16.msra.mxu1 %v4302_v56  ;;  %s4514_s11 = smov 64   ;;  %s4515_s28 = smov 56   ;;  %vm2579_vm13 = vcmask 261312  }
 0x144   : > { %v1503_v37 = vsel %vm1386_vm5, %v1383_v34, 0.0  ;;  %4034 = vmatprep.subr.bf16.mxu1 %v4505_v55  ;;  %s4516_s9 = smov 48   ;;  %s4517_s25 = smov 40  }
 0x145   : > { %1504 = vadd.xlane.f32.xlu1 %v1503_v37  ;;  %s4519_s14 = smov 16   ;;  %s4520_s24 = smov 24  }
 0x146   : > { %p3907_p9 = scmp.ne.s32.totalorder %s4454_s15, 1 }
 0x147   : > { %s5213_s15 = sld [smem:[#allocation27_spill]] (!%p3907_p9) }
 0x1c8   : > { %v1389_v39 = vpop.xlane.xlu0 %1388 }
 0x1c9   : > { %v1394_v41 = vmul.f32 0.03125, %v1389_v39 }
 0x1cb   : > { %v1396_v43 = vsub.f32 %v1381_v33, %v1394_v41 }
 0x1cc   : > { %v1392_v45 = vpop.xlane.xlu0 %1391 }
 0x1cd   : > { %v1395_v46 = vmul.f32 0.03125, %v1392_v45  ;;  %v1398_v47 = vmul.f32 %v1396_v43, %v1396_v43 }
 0x1ce   : > { %v1505_v40 = vpop.xlane.xlu1 %1504 }
 0x1cf   : > { %v1506_v42 = vmul.f32 0.03125, %v1505_v40  ;;  %v1397_v49 = vsub.f32 %v1382_v35, %v1395_v46  ;;  %v1400_v50 = vsel %vm1386_vm5, %v1398_v47, 0.0 }
 0x1d0   : > { %1401 = vadd.xlane.f32.xlu1 %v1400_v50 }
 0x1d1   : > { %v1507_v44 = vsub.f32 %v1383_v34, %v1506_v42  ;;  %v1399_v52 = vmul.f32 %v1397_v49, %v1397_v49 }
 0x1d3   : > { %v1508_v48 = vmul.f32 %v1507_v44, %v1507_v44  ;;  %v1403_v53 = vsel %vm1386_vm5, %v1399_v52, 0.0 }
 0x1d4   : > { %1404 = vadd.xlane.f32.xlu0 %v1403_v53 }
 0x1d5   : > { %v1509_v51 = vsel %vm1386_vm5, %v1508_v48, 0.0 }
 0x1d6   : > { %1510 = vadd.xlane.f32.xlu1 %v1509_v51 }
 0x259   : > { %v1402_v57 = vpop.xlane.xlu1 %1401 }
 0x25a   : > { %v1406_v58 = vmul.f32 0.03125, %v1402_v57 }
 0x25c   : > { %v1408_v59 = vadd.f32 1e-05, %v1406_v58 }
 0x25d   : > { %v1405_v61 = vpop.xlane.xlu0 %1404 }
 0x25e   : > { %4353 = vrsqrt.f32 %v1408_v59  ;;  %v1407_v63 = vmul.f32 0.03125, %v1405_v61 }
 0x25f   : > { %v1511_v60 = vpop.xlane.xlu1 %1510 }
 0x260   : > { %v1512_v62 = vmul.f32 0.03125, %v1511_v60  ;;  %v1409_v1 = vadd.f32 1e-05, %v1407_v63 }
 0x262   : > { %v1513_v0 = vadd.f32 1e-05, %v1512_v62 }
 0x264   : > { %4355 = vrsqrt.f32 %v1513_v0 }
 0x265   : > { %4357 = vrsqrt.f32 %v1409_v1 }
 0x26b   : > { %v4354_v2 = vpop.eup %4353 }
 0x26c   : > { %v1412_v3 = vmul.f32 %v4354_v2, %v1396_v43 }
 0x26e   : > { %v1420_v8 = vmul.f32 %v3778_v4, %v1412_v3 }
 0x270   : > { %v1428_v13 = vadd.f32 %v3779_v9, %v1420_v8 }
 0x271   : > { %v4356_v5 = vpop.eup %4355 }
 0x272   : > { %v4358_v6 = vpop.eup %4357  ;;  %v1515_v10 = vmul.f32 %v4356_v5, %v1507_v44 }
 0x273   : > { %v1413_v7 = vmul.f32 %v4358_v6, %v1397_v49 }
 0x274   : > { %v1522_v17 = vmul.f32 %v3786_v12, %v1515_v10 }
 0x275   : > { %v1421_v11 = vmul.f32 %v3778_v4, %v1413_v7 }
 0x276   : > { %v1529_v20 = vadd.f32 %v3787_v18, %v1522_v17 }
 0x277   : > { %v1429_v14 = vadd.f32 %v3779_v9, %v1421_v11 }
 0x278   : > { %v1537_v21 = vpack.c.bf16 %v1529_v20, %v1529_v20 }
 0x279   : > { %v1435_v16 = vpack.c.bf16 %v1429_v14, %v1428_v13 }
 0x27b   : > { %4031 = vmatmul.mubr.msk.bf16.vlgmr.msra.gmra.mxu1 %vm1386_vm5, %v1435_v16 }
 0x27c   : > { %4035 = vmatpush3.bf16.msra.mxu1 %v4303_v15  ;;  %4038 = vmatprep.mubr.msk.bf16.mxu1 %vm4506_vm6, %v4505_v55 }
 0x27d   : > { %4036 = vmatprep.subr.bf16.mxu1 %v4505_v55 }
 0x280   : > { %4037 = vmatpush3.bf16.msra.mxu1 %v4304_v19 }
 0x283   : > { %4039 = vmatmul.mubr.msk.bf16.vlgmr.msra.gmra.mxu1 %vm1386_vm5, %v1537_v21 }
 0x33b   : > { %v1491_v23 = vpop.f32.mrf.mxu1 }
 0x33c   : > { %v1492_v24 = vadd.f32 %v3780_v22, %v1491_v23 }
 0x33d   : > { %v4032_v25 = vpop.f32.mrf.mxu1 }
 0x33e   : > { %v4821_v26 = vpack.c.bf16 %v1492_v24, %v1492_v24 }
 0x33f   : > { %v1494_v27 = vpop.f32.mrf.mxu1 }
 0x340   : > { %v1495_v28 = vadd.f32 %v3780_v22, %v1494_v27  ;;  %1611 = vrot.lane.b32.xlu1 %v4821_v26, %s4507_s5  ;;  %1608 = vst.msk [vmem:[#allocation4] sm:$0xf] %vm1607_vm7, %v4821_v26 }
 0x341   : > { %v4033_v29 = vpop.f32.mrf.mxu1 }
 0x342   : > { %v4827_v31 = vpack.c.bf16 %v1495_v28, %v1495_v28 }
 0x343   : > { %v1593_v32 = vpop.f32.mrf.mxu1 }
 0x344   : > { %v1594_v33 = vadd.f32 %v3793_v30, %v1593_v32  ;;  %1613 = vrot.lane.b32.xlu1 %v4827_v31, %s4507_s5  ;;  %1609 = vst.msk [vmem:[#allocation4 + $0x4] sm:$0xf] %vm1607_vm7, %v4827_v31 }
 0x345   : > { %v4040_v34 = vpop.f32.mrf.mxu1 }
 0x346   : > { %v1599_v35 = vpack.c.bf16 %v1594_v33, %v1594_v33 }
 0x347   : > { %v1596_v36 = vpop.f32.mrf.mxu1 }
 0x348   : > { %1660 = vrot.lane.b32.xlu1 %v1599_v35, %s4508_s20  ;;  %1622 = vrot.lane.b32.xlu0 %v1599_v35, %s4507_s5  ;;  %1610 = vst.msk [vmem:[#allocation4 + $0x8] sm:$0xf] %vm1607_vm7, %v1599_v35 }
 0x349   : > { %v4041_v37 = vpop.f32.mrf.mxu1 }
 0x34b   : > { %v4305_v38 = vld [vmem:[#allocation4] sm:$0xff]  }
 0x34c   : > { %1653 = vrot.lane.b32.xlu1 %v4827_v31, %s4508_s20  ;;  %1651 = vrot.lane.b32.xlu0 %v4821_v26, %s4508_s20 }
 0x34d   : > { %4046 = vmatprep.mubr.msk.bf16.mxu0 %vm1801_vm8, %v4305_v38 }
 0x34f   : > { %v4311_v63 = vld [vmem:[#allocation4 + $0x8] ss:$0 sps:$4 sm:$0xff]  }
 0x350   : > { %1638 = vrot.lane.b32.xlu1 %v4821_v26, %s4509_s16  ;;  %1640 = vrot.lane.b32.xlu0 %v4827_v31, %s4509_s16 }
 0x354   : > { %1690 = vrot.lane.b32.xlu1 %v4821_v26, %s4510_s23  ;;  %1692 = vrot.lane.b32.xlu0 %v4827_v31, %s4510_s23 }
 0x358   : > { %1738 = vrot.lane.b32.xlu1 %v1599_v35, %s4511_s26  ;;  %1699 = vrot.lane.b32.xlu0 %v1599_v35, %s4510_s23 }
 0x35c   : > { %1729 = vrot.lane.b32.xlu1 %v4821_v26, %s4511_s26  ;;  %1647 = vrot.lane.b32.xlu0 %v1599_v35, %s4509_s16 }
 0x360   : > { %1677 = vrot.lane.b32.xlu1 %v4821_v26, %s4512_s2  ;;  %1731 = vrot.lane.b32.xlu0 %v4827_v31, %s4511_s26 }
 0x364   : > { %1686 = vrot.lane.b32.xlu1 %v1599_v35, %s4512_s2  ;;  %1679 = vrot.lane.b32.xlu0 %v4827_v31, %s4512_s2 }
 0x368   : > { %1718 = vrot.lane.b32.xlu1 %v4827_v31, %s4513_s10  ;;  %1716 = vrot.lane.b32.xlu0 %v4821_v26, %s4513_s10 }
 0x36c   : > { %1626 = vrot.lane.b32.xlu1 %v4821_v26, %s4514_s11  ;;  %1725 = vrot.lane.b32.xlu0 %v1599_v35, %s4513_s10 }
 0x370   : > { %1628 = vrot.lane.b32.xlu1 %v4827_v31, %s4514_s11  ;;  %1666 = vrot.lane.b32.xlu0 %v4827_v31, %s4515_s28 }
 0x374   : > { %1664 = vrot.lane.b32.xlu1 %v4821_v26, %s4515_s28  ;;  %1705 = vrot.lane.b32.xlu0 %v4827_v31, %s4516_s9 }
 0x378   : > { %1703 = vrot.lane.b32.xlu1 %v4821_v26, %s4516_s9  ;;  %1673 = vrot.lane.b32.xlu0 %v1599_v35, %s4515_s28 }
 0x37c   : > { %1634 = vrot.lane.b32.xlu1 %v1599_v35, %s4514_s11  ;;  %1751 = vrot.lane.b32.xlu0 %v1599_v35, %s4517_s25 }
 0x380   : > { %1712 = vrot.lane.b32.xlu1 %v1599_v35, %s4516_s9 }
 0x3b2   : > { %v1612_v39 = vpop.permute.xlu1 %1611 }
 0x3b3   : > { %1617 = vst.msk [vmem:[#allocation5] sm:$0xf] %vm1607_vm7, %v1612_v39 }
 0x3b6   : > { %v1614_v40 = vpop.permute.xlu1 %1613 }
 0x3b7   : > { %1618 = vst.msk [vmem:[#allocation5 + $0x4] sm:$0xf] %vm1607_vm7, %v1614_v40 }
 0x3ba   : > { %v1661_v41 = vpop.permute.xlu1 %1660  ;;  %v1623_v42 = vpop.permute.xlu0 %1622 }
 0x3bb   : > { %1663 = vst.msk [vmem:[#allocation5 + $0x14] sm:$0xf] %vm1607_vm7, %v1661_v41  ;;  %1625 = vst.msk [vmem:[#allocation5 + $0x8] sm:$0xf] %vm1607_vm7, %v1623_v42  ;;  %v1757_v42 = vld [vmem:[%s4736_s8 + $0x8] sm:$0xf] }
 0x3be   : > { %v1654_v43 = vpop.permute.xlu1 %1653  ;;  %v1652_v44 = vpop.permute.xlu0 %1651  ;;  %v4308_v50 = vld [vmem:[#allocation5] sm:$0xff]  }
 0x3bf   : > { %1659 = vst.msk [vmem:[#allocation5 + $0x10] sm:$0xf] %vm1607_vm7, %v1654_v43  ;;  %1658 = vst.msk [vmem:[#allocation5 + $0xc] sm:$0xf] %vm1607_vm7, %v1652_v44  ;;  %v1809_v59 = vsel %vm1801_vm8, %v4308_v50, 0  ;;  %v3930_v43 = vld [vmem:[%s4736_s8] sm:$0xff]   ;;  %v1760_v44 = vunpack.c.l.bf16 %v1757_v42 }
 0x3c0   : > { %s4518_s8 = smov 8  }
 0x3c2   : > { %v1639_v45 = vpop.permute.xlu1 %1638  ;;  %v1641_v46 = vpop.permute.xlu0 %1640  ;;  %v4306_v47 = vld [vmem:[#allocation5 + $0x8] ss:$0 sps:$4 sm:$0xff]   ;;  %v4307_v48 = vld [vmem:[#allocation5 + $0x14] ss:$0 sps:$4 sm:$0xff]  }
 0x3c3   : > { %1645 = vst.msk [vmem:[#allocation4 + $0xc] sm:$0xf] %vm1607_vm7, %v1639_v45  ;;  %1646 = vst.msk [vmem:[#allocation4 + $0x10] sm:$0xf] %vm1607_vm7, %v1641_v46  ;;  %4194 = vmatprep.subr.msk.bf16.mxu0 %vm1801_vm8, %v4306_v47  ;;  %v1812_v49 = vsel %vm1801_vm8, %v4306_v47, 0  ;;  %4196 = vmatprep.subr.msk.bf16.mxu1 %vm1801_vm8, %v4307_v48  ;;  %v1888_v51 = vsel %vm1801_vm8, %v4307_v48, 0  ;;  %v3931_v47 = vunpack.c.l.bf16 %v3930_v43 }
 0x3c4   : > { %4043 = vmatpush3.bf16.xpose.msra.mxu0 %v1812_v49  ;;  %4051 = vmatpush3.bf16.xpose.msra.mxu1 %v1888_v51 }
 0x3c5   : > { %4195 = vmatprep.subr.msk.bf16.mxu0 %vm1801_vm8, %v4308_v50 }
 0x3c6   : > { %v1691_v52 = vpop.permute.xlu1 %1690  ;;  %v1693_v53 = vpop.permute.xlu0 %1692  ;;  %v4309_v54 = vld [vmem:[#allocation5 + $0xc] sm:$0xff]  }
 0x3c7   : > { %1697 = vst.msk [vmem:[#allocation5 + $0x18] sm:$0xf] %vm1607_vm7, %v1691_v52  ;;  %1698 = vst.msk [vmem:[#allocation5 + $0x1c] sm:$0xf] %vm1607_vm7, %v1693_v53  ;;  %4197 = vmatprep.subr.msk.bf16.mxu1 %vm1801_vm8, %v4309_v54  ;;  %v1885_v60 = vsel %vm1801_vm8, %v4309_v54, 0 }
 0x3ca   : > { %v1739_v56 = vpop.permute.xlu1 %1738  ;;  %v1700_v57 = vpop.permute.xlu0 %1699  ;;  %v4310_v58 = vld [vmem:[#allocation4 + $0xc] sm:$0xff]  }
 0x3cb   : > { %1741 = vst.msk [vmem:[#allocation5 + $0x2c] sm:$0xf] %vm1607_vm7, %v1739_v56  ;;  %1702 = vst.msk [vmem:[#allocation5 + $0x20] sm:$0xf] %vm1607_vm7, %v1700_v57  ;;  %4054 = vmatprep.mubr.msk.bf16.mxu1 %vm1801_vm8, %v4310_v58 }
 0x3cc   : > { %4045 = vmatpush3.bf16.xpose.msra.mxu0 %v1809_v59  ;;  %4053 = vmatpush3.bf16.xpose.msra.mxu1 %v1885_v60 }
 0x3ce   : > { %v1730_v61 = vpop.permute.xlu1 %1729  ;;  %v1648_v62 = vpop.permute.xlu0 %1647  ;;  %v4314_v5 = vld [vmem:[#allocation5 + $0x18] sm:$0xff]  }
 0x3cf   : > { %1736 = vst.msk [vmem:[#allocation5 + $0x24] sm:$0xf] %vm1607_vm7, %v1730_v61  ;;  %1650 = vst.msk [vmem:[#allocation4 + $0x14] sm:$0xf] %vm1607_vm7, %v1648_v62  ;;  %v1961_v13 = vsel %vm1801_vm8, %v4314_v5, 0 }
 0x3d2   : > { %v1678_v0 = vpop.permute.xlu1 %1677  ;;  %v1732_v1 = vpop.permute.xlu0 %1731  ;;  %v4312_v2 = vld [vmem:[#allocation5 + $0x20] ss:$0 sps:$4 sm:$0xff]   ;;  %v4313_v3 = vld [vmem:[#allocation5 + $0x2c] ss:$0 sps:$4 sm:$0xff]  }
 0x3d3   : > { %1684 = vst.msk [vmem:[#allocation4 + $0x18] sm:$0xf] %vm1607_vm7, %v1678_v0  ;;  %1737 = vst.msk [vmem:[#allocation5 + $0x28] sm:$0xf] %vm1607_vm7, %v1732_v1  ;;  %4047 = vmatmul.mubr.msk.bf16.vlgmr.msra.gmra.mxu0 %vm1801_vm8, %v4311_v63  ;;  %4198 = vmatprep.subr.msk.bf16.mxu0 %vm1801_vm8, %v4312_v2  ;;  %v1964_v4 = vsel %vm1801_vm8, %v4312_v2, 0  ;;  %v2040_v9 = vsel %vm1801_vm8, %v4313_v3, 0  ;;  %v3932_v2 = vunpack.c.h.bf16 %v3930_v43 }
 0x3d4   : > { %4200 = vmatprep.subr.msk.bf16.mxu1 %vm1801_vm8, %v4313_v3  ;;  %4059 = vmatpush3.bf16.xpose.msra.mxu0 %v1964_v4 }
 0x3d5   : > { %4199 = vmatprep.subr.msk.bf16.mxu0 %vm1801_vm8, %v4314_v5 }
 0x3d6   : > { %v1687_v6 = vpop.permute.xlu1 %1686  ;;  %v1680_v7 = vpop.permute.xlu0 %1679  ;;  %v4315_v8 = vld [vmem:[#allocation4 + $0x14] ss:$0 sps:$4 sm:$0xff]  }
 0x3d7   : > { %1689 = vst.msk [vmem:[#allocation4 + $0x20] sm:$0xf] %vm1607_vm7, %v1687_v6  ;;  %1685 = vst.msk [vmem:[#allocation4 + $0x1c] sm:$0xf] %vm1607_vm7, %v1680_v7  ;;  %4055 = vmatmul.mubr.msk.bf16.vlgmr.msra.gmra.mxu1 %vm1801_vm8, %v4315_v8 }
 0x3d8   : > { %4067 = vmatpush3.bf16.xpose.msra.mxu1 %v2040_v9 }
 0x3da   : > { %v1719_v10 = vpop.permute.xlu1 %1718  ;;  %v1717_v11 = vpop.permute.xlu0 %1716  ;;  %v4316_v12 = vld [vmem:[#allocation5 + $0x24] sm:$0xff]  }
 0x3db   : > { %1724 = vst.msk [vmem:[#allocation4 + $0x28] sm:$0xf] %vm1607_vm7, %v1719_v10  ;;  %1723 = vst.msk [vmem:[#allocation4 + $0x24] sm:$0xf] %vm1607_vm7, %v1717_v11  ;;  %4201 = vmatprep.subr.msk.bf16.mxu1 %vm1801_vm8, %v4316_v12  ;;  %v2037_v17 = vsel %vm1801_vm8, %v4316_v12, 0 }
 0x3dc   : > { %4061 = vmatpush3.bf16.xpose.msra.mxu0 %v1961_v13 }
 0x3de   : > { %v1627_v14 = vpop.permute.xlu1 %1626  ;;  %v1726_v15 = vpop.permute.xlu0 %1725  ;;  %v4317_v16 = vld [vmem:[#allocation4 + $0x18] sm:$0xff]   ;;  %v4318_v18 = vld [vmem:[#allocation4 + $0x20] ss:$0 sps:$4 sm:$0xff]  }
 0x3df   : > { %1632 = vst.msk [vmem:[#allocation6] sm:$0xf] %vm1607_vm7, %v1627_v14  ;;  %1728 = vst.msk [vmem:[#allocation4 + $0x2c] sm:$0xf] %vm1607_vm7, %v1726_v15  ;;  %4062 = vmatprep.mubr.msk.bf16.mxu0 %vm1801_vm8, %v4317_v16 }
 0x3e0   : > { %4069 = vmatpush3.bf16.xpose.msra.mxu1 %v2037_v17 }
 0x3e2   : > { %v1629_v19 = vpop.permute.xlu1 %1628  ;;  %v1667_v20 = vpop.permute.xlu0 %1666  ;;  %v4319_v21 = vld [vmem:[#allocation4 + $0x24] sm:$0xff]  }
 0x3e3   : > { %1633 = vst.msk [vmem:[#allocation6 + $0x4] sm:$0xf] %vm1607_vm7, %v1629_v19  ;;  %1672 = vst.msk [vmem:[#allocation6 + $0x10] sm:$0xf] %vm1607_vm7, %v1667_v20  ;;  %4063 = vmatmul.mubr.msk.bf16.vlgmr.msra.gmra.mxu0 %vm1801_vm8, %v4318_v18  ;;  %4070 = vmatprep.mubr.msk.bf16.mxu1 %vm1801_vm8, %v4319_v21 }
 0x3e6   : > { %v1665_v22 = vpop.permute.xlu1 %1664  ;;  %v1706_v23 = vpop.permute.xlu0 %1705  ;;  %v4320_v24 = vld [vmem:[#allocation4 + $0x2c] ss:$0 sps:$4 sm:$0xff]  }
 0x3e7   : > { %1671 = vst.msk [vmem:[#allocation6 + $0xc] sm:$0xf] %vm1607_vm7, %v1665_v22  ;;  %1711 = vst.msk [vmem:[#allocation6 + $0x1c] sm:$0xf] %vm1607_vm7, %v1706_v23  ;;  %4071 = vmatmul.mubr.msk.bf16.vlgmr.msra.gmra.mxu1 %vm1801_vm8, %v4320_v24 }
 0x3ea   : > { %v1704_v25 = vpop.permute.xlu1 %1703  ;;  %v1674_v27 = vpop.permute.xlu0 %1673  ;;  %v4324_v38 = vld [vmem:[#allocation6] sm:$0xff]  }
 0x3eb   : > { %1710 = vst.msk [vmem:[#allocation6 + $0x18] sm:$0xf] %vm1607_vm7, %v1704_v25  ;;  %1676 = vst.msk [vmem:[#allocation6 + $0x14] sm:$0xf] %vm1607_vm7, %v1674_v27 }
 0x3ee   : > { %v1635_v28 = vpop.permute.xlu1 %1634  ;;  %v1752_v29 = vpop.permute.xlu0 %1751  ;;  %v4322_v34 = vld [vmem:[#allocation6 + $0xc] sm:$0xff]  }
 0x3ef   : > { %1637 = vst.msk [vmem:[#allocation6 + $0x8] sm:$0xf] %vm1607_vm7, %v1635_v28  ;;  %1754 = vst.msk [vmem:[#allocation6 + $0x2c] sm:$0xf] %vm1607_vm7, %v1752_v29 }
 0x3f2   : > { %v1713_v30 = vpop.permute.xlu1 %1712  ;;  %v4321_v32 = vld [vmem:[#allocation6 + $0x14] ss:$0 sps:$4 sm:$0xff]  }
 0x3f3   : > { %1715 = vst.msk [vmem:[#allocation6 + $0x20] sm:$0xf] %vm1607_vm7, %v1713_v30  ;;  %4203 = vmatprep.subr.msk.bf16.mxu1 %vm2258_vm9, %v4321_v32  ;;  %v2326_v33 = vsel %vm2258_vm9, %v4321_v32, 0 }
 0x3f4   : > { %4083 = vmatpush3.bf16.msra.mxu1 %v2326_v33 }
 0x3f5   : > { %4084 = vmatprep.subr.bf16.mxu1 %v4322_v34 }
 0x3f6   : > { %v4323_v35 = vld [vmem:[#allocation6 + $0x8] ss:$0 sps:$4 sm:$0xff]   ;;  %v4325_v36 = vld [vmem:[#allocation6 + $0x2c] ss:$0 sps:$4 sm:$0xff]  }
 0x3f7   : > { %4202 = vmatprep.subr.msk.bf16.mxu0 %vm2258_vm9, %v4323_v35  ;;  %v2260_v37 = vsel %vm2258_vm9, %v4323_v35, 0  ;;  %v4912_v39 = vsel %vm2258_vm9, %v4325_v36, 0 }
 0x3f8   : > { %4075 = vmatpush3.bf16.msra.mxu0 %v2260_v37  ;;  %4085 = vmatpush3.bf16.msra.mxu1 %v4322_v34 }
 0x3f9   : > { %4076 = vmatprep.subr.bf16.mxu0 %v4324_v38  ;;  %4205 = vmatprep.subr.msk.bf16.mxu1 %vm2258_vm9, %v4325_v36 }
 0x3fa   : > { %v4326_v40 = vld [vmem:[#allocation6 + $0x20] ss:$0 sps:$4 sm:$0xff]  }
 0x3fb   : > { %v4916_v41 = vsel %vm2258_vm9, %v4326_v40, 0 }
 0x3fc   : > { %4077 = vmatpush3.bf16.msra.mxu0 %v4324_v38 }
 0x3fd   : > { %4204 = vmatprep.subr.msk.bf16.mxu0 %vm2258_vm9, %v4326_v40 }
 0x493   : > { %v4048_v45 = vpop.f32.mrf.mxu0 }
 0x494   : > { %v2092_v46 = vmul.f32 0.125, %v4048_v45 }
 0x495   : > { %v1848_v48 = vpop.f32.mrf.mxu0 }
 0x496   : > { %v2090_v49 = vmul.f32 0.125, %v1848_v48  ;;  %v4921_v50 = vadd.f32 %v2092_v46, %v1760_v44 }
 0x497   : > { %v4049_v51 = vpop.f32.mrf.mxu0  ;;  %v4056_v52 = vpop.f32.mrf.mxu1 }
 0x498   : > { %v2095_v53 = vmul.f32 0.125, %v4056_v52  ;;  %v2121_v54 = vsel %vm2114_vm10, %v4921_v50, -inf  ;;  %v4925_v56 = vadd.f32 %v3931_v47, %v2090_v49 }
 0x499   : > { %2122 = vmax.xlane.f32.xlu0 %v2121_v54  ;;  %v1851_v57 = vpop.f32.mrf.mxu0  ;;  %v1924_v58 = vpop.f32.mrf.mxu1 }
 0x49a   : > { %v2093_v59 = vmul.f32 0.125, %v1924_v58  ;;  %v2115_v60 = vsel %vm2114_vm10, %v4925_v56, -inf  ;;  %v2107_v61 = vadd.f32 %v2095_v53, %v1760_v44  ;;  %v2091_v63 = vmul.f32 0.125, %v1851_v57 }
 0x49b   : > { %2116 = vmax.xlane.f32.xlu1 %v2115_v60  ;;  %v4057_v62 = vpop.f32.mrf.mxu1 }
 0x49c   : > { %v2130_v0 = vsel %vm2114_vm10, %v2107_v61, -inf  ;;  %v2105_v1 = vadd.f32 %v3931_v47, %v2093_v59  ;;  %v2103_v7 = vadd.f32 %v3932_v2, %v2091_v63 }
 0x49d   : > { %2131 = vmax.xlane.f32.xlu0 %v2130_v0  ;;  %v1927_v3 = vpop.f32.mrf.mxu1 }
 0x49e   : > { %v2094_v4 = vmul.f32 0.125, %v1927_v3  ;;  %v2124_v5 = vsel %vm2114_vm10, %v2105_v1, -inf  ;;  %v2118_v11 = vsel %vm2114_vm10, %v2103_v7, -inf }
 0x4a0   : > { %v2106_v6 = vadd.f32 %v3932_v2, %v2094_v4 }
 0x4a1   : > { %2125 = vmax.xlane.f32.xlu0 %v2124_v5 }
 0x4a2   : > { %v2127_v8 = vsel %vm2114_vm10, %v2106_v6, -inf }
 0x4a3   : > { %v4064_v9 = vpop.f32.mrf.mxu0  ;;  %2128 = vmax.xlane.f32.xlu1 %v2127_v8 }
 0x4a4   : > { %v2098_v10 = vmul.f32 0.125, %v4064_v9 }
 0x4a5   : > { %v2000_v12 = vpop.f32.mrf.mxu0  ;;  %2119 = vmax.xlane.f32.xlu0 %v2118_v11 }
 0x4a6   : > { %v2096_v13 = vmul.f32 0.125, %v2000_v12  ;;  %v4933_v14 = vadd.f32 %v2098_v10, %v1760_v44 }
 0x4a7   : > { %v4065_v15 = vpop.f32.mrf.mxu0  ;;  %v4072_v16 = vpop.f32.mrf.mxu1 }
 0x4a8   : > { %v2101_v17 = vmul.f32 0.125, %v4072_v16  ;;  %v2139_v18 = vsel %vm2114_vm10, %v4933_v14, -inf  ;;  %v2108_v19 = vadd.f32 %v3931_v47, %v2096_v13 }
 0x4a9   : > { %v2003_v20 = vpop.f32.mrf.mxu0  ;;  %2140 = vmax.xlane.f32.xlu1 %v2139_v18  ;;  %v2076_v21 = vpop.f32.mrf.mxu1 }
 0x4aa   : > { %v2099_v22 = vmul.f32 0.125, %v2076_v21  ;;  %v2113_v23 = vadd.f32 %v2101_v17, %v1760_v44  ;;  %v2097_v25 = vmul.f32 0.125, %v2003_v20  ;;  %v2133_v27 = vsel %vm2114_vm10, %v2108_v19, -inf }
 0x4ab   : > { %v4073_v24 = vpop.f32.mrf.mxu1 }
 0x4ac   : > { %v2148_v28 = vsel %vm2114_vm10, %v2113_v23, -inf  ;;  %v2111_v29 = vadd.f32 %v3931_v47, %v2099_v22  ;;  %v4940_v35 = vadd.f32 %v3932_v2, %v2097_v25  ;;  %v4327_v25 = vld [vmem:[#allocation6 + $0x18] sm:$0xff]  }
 0x4ad   : > { %2134 = vmax.xlane.f32.xlu1 %v2133_v27  ;;  %2149 = vmax.xlane.f32.xlu0 %v2148_v28  ;;  %v2079_v30 = vpop.f32.mrf.mxu1 }
 0x4ae   : > { %v2100_v32 = vmul.f32 0.125, %v2079_v30  ;;  %v2142_v33 = vsel %vm2114_vm10, %v2111_v29, -inf  ;;  %v2136_v37 = vsel %vm2114_vm10, %v4940_v35, -inf }
 0x4b0   : > { %v2112_v34 = vadd.f32 %v3932_v2, %v2100_v32 }
 0x4b1   : > { %2143 = vmax.xlane.f32.xlu0 %v2142_v33 }
 0x4b2   : > { %v2145_v36 = vsel %vm2114_vm10, %v2112_v34, -inf }
 0x4b3   : > { %2146 = vmax.xlane.f32.xlu1 %v2145_v36 }
 0x4b5   : > { %2137 = vmax.xlane.f32.xlu0 %v2136_v37 }
 0x4c4   : > { %1742 = vrot.lane.b32.xlu1 %v4821_v26, %s4517_s25 }
 0x4cb   : > { %1744 = vrot.lane.b32.xlu0 %v4827_v31, %s4517_s25 }
 0x522   : > { %v2123_v38 = vpop.xlane.xlu0 %2122 }
 0x523   : > { %v2153_v40 = vsub.f32 %v4921_v50, %v2123_v38 }
 0x524   : > { %v2117_v43 = vpop.xlane.xlu1 %2116 }
 0x525   : > { %v2167_v45 = vmul.f32 1.442695, %v2153_v40  ;;  %v2151_v46 = vsub.f32 %v4925_v56, %v2117_v43 }
 0x526   : > { %v2132_v42 = vpop.xlane.xlu0 %2131 }
 0x527   : > { %v2156_v44 = vsub.f32 %v2107_v61, %v2132_v42  ;;  %4359 = vpow2.f32 %v2167_v45  ;;  %v2163_v26 = vmul.f32 1.442695, %v2151_v46 }
 0x529   : > { %v2173_v49 = vmul.f32 1.442695, %v2156_v44 }
 0x52a   : > { %v2126_v47 = vpop.xlane.xlu0 %2125 }
 0x52b   : > { %v2154_v48 = vsub.f32 %v2105_v1, %v2126_v47 }
 0x52c   : > { %v2129_v51 = vpop.xlane.xlu1 %2128 }
 0x52d   : > { %v2169_v52 = vmul.f32 1.442695, %v2154_v48  ;;  %v2155_v53 = vsub.f32 %v2106_v6, %v2129_v51 }
 0x52e   : > { %v2120_v54 = vpop.xlane.xlu0 %2119 }
 0x52f   : > { %4361 = vpow2.f32 %v2169_v52  ;;  %v2171_v31 = vmul.f32 1.442695, %v2155_v53  ;;  %v2152_v57 = vsub.f32 %v2103_v7, %v2120_v54 }
 0x530   : > { %4363 = vpow2.f32 %v2173_v49 }
 0x531   : > { %4365 = vpow2.f32 %v2171_v31  ;;  %v2165_v50 = vmul.f32 1.442695, %v2152_v57 }
 0x532   : > { %4367 = vpow2.f32 %v2163_v26  ;;  %v2141_v58 = vpop.xlane.xlu1 %2140 }
 0x533   : > { %4369 = vpow2.f32 %v2165_v50  ;;  %v2159_v63 = vsub.f32 %v4933_v14, %v2141_v58 }
 0x534   : > { %v4952_v1 = vpop.eup %4359 }
 0x535   : > { %v2179_v11 = vmul.f32 1.442695, %v2159_v63  ;;  %v2224_v24 = vpack.c.bf16 %v4952_v1, %v4952_v1  ;;  %v2193_v48 = vsel %vm2114_vm10, %v4952_v1, 0.0 }
 0x536   : > { %v2135_v59 = vpop.xlane.xlu1 %2134  ;;  %v2150_v56 = vpop.xlane.xlu0 %2149 }
 0x537   : > { %v2157_v60 = vsub.f32 %v2108_v19, %v2135_v59  ;;  %v2162_v61 = vsub.f32 %v2113_v23, %v2150_v56 }
 0x539   : > { %v2175_v62 = vmul.f32 1.442695, %v2157_v60  ;;  %v2185_v4 = vmul.f32 1.442695, %v2162_v61 }
 0x53a   : > { %v2144_v0 = vpop.xlane.xlu0 %2143 }
 0x53b   : > { %4371 = vpow2.f32 %v2175_v62  ;;  %v2160_v2 = vsub.f32 %v2111_v29, %v2144_v0 }
 0x53c   : > { %v4362_v3 = vpop.eup %4361  ;;  %v2147_v5 = vpop.xlane.xlu1 %2146 }
 0x53d   : > { %v4364_v6 = vpop.eup %4363  ;;  %v2181_v7 = vmul.f32 1.442695, %v2160_v2  ;;  %v2161_v8 = vsub.f32 %v2112_v34, %v2147_v5  ;;  %v2196_v9 = vsel %vm2114_vm10, %v4362_v3, 0.0 }
 0x53e   : > { %v4366_v10 = vpop.eup %4365  ;;  %v2138_v12 = vpop.xlane.xlu0 %2137  ;;  %2197 = vadd.xlane.f32.xlu1 %v2196_v9  ;;  %v2226_v21 = vpack.c.bf16 %v4364_v6, %v4364_v6  ;;  %v2202_v37 = vsel %vm2114_vm10, %v4364_v6, 0.0 }
 0x53f   : > { %v4955_v13 = vpop.eup %4367  ;;  %4373 = vpow2.f32 %v2181_v7  ;;  %v2183_v14 = vmul.f32 1.442695, %v2161_v8  ;;  %v2158_v15 = vsub.f32 %v4940_v35, %v2138_v12  ;;  %v2199_v16 = vsel %vm2114_vm10, %v4366_v10, 0.0 }
 0x540   : > { %v4370_v17 = vpop.eup %4369  ;;  %4375 = vpow2.f32 %v2185_v4  ;;  %2200 = vadd.xlane.f32.xlu0 %v2199_v16  ;;  %v1743_v18 = vpop.permute.xlu1 %1742  ;;  %v2225_v19 = vpack.c.bf16 %v4366_v10, %v4362_v3  ;;  %v2187_v47 = vsel %vm2114_vm10, %v4955_v13, 0.0  ;;  %v4329_v16 = vld [vmem:[%s4754_s17 + $0x8] sm:$0xff]  }
 0x541   : > { %4377 = vpow2.f32 %v2183_v14  ;;  %v2177_v20 = vmul.f32 1.442695, %v2158_v15  ;;  %1749 = vst.msk [vmem:[#allocation6 + $0x24] sm:$0xf] %vm1607_vm7, %v1743_v18  ;;  %v2223_v22 = vpack.c.bf16 %v4370_v17, %v4955_v13  ;;  %v2190_v45 = vsel %vm2114_vm10, %v4370_v17, 0.0 }
 0x542   : > { %4379 = vpow2.f32 %v2179_v11  ;;  %4086 = vmatprep.mubr.msk.bf16.mxu1 %vm2114_vm10, %v2225_v19  ;;  %v1745_v23 = vpop.permute.xlu0 %1744 }
 0x543   : > { %4381 = vpow2.f32 %v2177_v20  ;;  %4087 = vmatmul.mubr.msk.bf16.vlgmr.msra.gmra.mxu1 %vm2114_vm10, %v2226_v21  ;;  %1750 = vst.msk [vmem:[#allocation6 + $0x28] sm:$0xf] %vm1607_vm7, %v1745_v23  ;;  %4078 = vmatprep.mubr.msk.bf16.mxu0 %vm2114_vm10, %v2223_v22 }
 0x544   : > { %4099 = vmatpush3.bf16.msra.mxu1 %v4912_v39  ;;  %4079 = vmatmul.mubr.msk.bf16.vlgmr.msra.gmra.mxu0 %vm2114_vm10, %v2224_v24 }
 0x545   : > { %4091 = vmatpush3.bf16.msra.mxu0 %v4916_v41 }
 0x546   : > { %4092 = vmatprep.subr.bf16.mxu0 %v4327_v25 }
 0x548   : > { %v4372_v27 = vpop.eup %4371 }
 0x549   : > { %4093 = vmatpush3.bf16.msra.mxu0 %v4327_v25  ;;  %v2205_v28 = vsel %vm2114_vm10, %v4372_v27, 0.0  ;;  %v4330_v25 = vld [vmem:[%s4754_s17] sm:$0xff]  }
 0x54a   : > { %2206 = vadd.xlane.f32.xlu0 %v2205_v28  ;;  %v4328_v29 = vld [vmem:[#allocation6 + $0x24] sm:$0xff]   ;;  %4106 = vmatprep.subr.bf16.mxu0 %v4505_v55 }
 0x54b   : > { %4100 = vmatprep.subr.bf16.mxu1 %v4328_v29 }
 0x54c   : > { %v4374_v30 = vpop.eup %4373  ;;  %4101 = vmatpush3.bf16.msra.mxu1 %v4328_v29 }
 0x54d   : > { %v4376_v32 = vpop.eup %4375  ;;  %v2214_v33 = vsel %vm2114_vm10, %v4374_v30, 0.0  ;;  %4114 = vmatprep.subr.bf16.mxu1 %v4505_v55 }
 0x54e   : > { %v4378_v39 = vpop.eup %4377  ;;  %2215 = vadd.xlane.f32.xlu1 %v2214_v33  ;;  %v2230_v38 = vpack.c.bf16 %v4376_v32, %v4376_v32  ;;  %v2220_v43 = vsel %vm2114_vm10, %v4376_v32, 0.0 }
 0x54f   : > { %v4380_v41 = vpop.eup %4379  ;;  %v2229_v34 = vpack.c.bf16 %v4378_v39, %v4374_v30  ;;  %v2217_v44 = vsel %vm2114_vm10, %v4378_v39, 0.0 }
 0x550   : > { %v4382_v35 = vpop.eup %4381  ;;  %v2228_v42 = vpack.c.bf16 %v4380_v41, %v4380_v41  ;;  %v2211_v46 = vsel %vm2114_vm10, %v4380_v41, 0.0  ;;  %v4331_v41 = vld [vmem:[%s4754_s17 + $0x18] sm:$0xff]  }
 0x551   : > { %4102 = vmatprep.mubr.msk.bf16.mxu1 %vm2114_vm10, %v2229_v34  ;;  %v2208_v36 = vsel %vm2114_vm10, %v4382_v35, 0.0  ;;  %v2227_v40 = vpack.c.bf16 %v4382_v35, %v4372_v27  ;;  %v4332_v35 = vld [vmem:[%s4754_s17 + $0x10] sm:$0xff]   ;;  %s5208_s17 = sld [smem:[#allocation28_spill]] (!%p3907_p9) }
 0x552   : > { %2209 = vadd.xlane.f32.xlu0 %v2208_v36  ;;  %2203 = vadd.xlane.f32.xlu1 %v2202_v37 }
 0x553   : > { %4103 = vmatmul.mubr.msk.bf16.vlgmr.msra.gmra.mxu1 %vm2114_vm10, %v2230_v38  ;;  %4094 = vmatprep.mubr.msk.bf16.mxu0 %vm2114_vm10, %v2227_v40 }
 0x554   : > { %4095 = vmatmul.mubr.msk.bf16.vlgmr.msra.gmra.mxu0 %vm2114_vm10, %v2228_v42  ;;  %4118 = vmatprep.mubr.msk.bf16.mxu1 %vm4506_vm6, %v4505_v55 }
 0x555   : > { %4110 = vmatprep.mubr.msk.bf16.mxu0 %vm4506_vm6, %v4505_v55  ;;  %4107 = vmatpush3.bf16.msra.mxu0 %v4329_v16 }
 0x556   : > { %2221 = vadd.xlane.f32.xlu1 %v2220_v43  ;;  %2218 = vadd.xlane.f32.xlu0 %v2217_v44 }
 0x557   : > { %4108 = vmatprep.subr.bf16.mxu0 %v4505_v55  ;;  %4115 = vmatpush3.bf16.msra.mxu1 %v4331_v41 }
 0x558   : > { %4116 = vmatprep.subr.bf16.mxu1 %v4505_v55 }
 0x559   : > { %4109 = vmatpush3.bf16.msra.mxu0 %v4330_v25 }
 0x55a   : > { %2191 = vadd.xlane.f32.xlu1 %v2190_v45  ;;  %2212 = vadd.xlane.f32.xlu0 %v2211_v46 }
 0x55b   : > { %4122 = vmatprep.subr.bf16.mxu0 %v4505_v55  ;;  %4117 = vmatpush3.bf16.msra.mxu1 %v4332_v35 }
 0x55c   : > { %4130 = vmatprep.subr.bf16.mxu1 %v4505_v55 }
 0x55e   : > { %2188 = vadd.xlane.f32.xlu0 %v2187_v47 }
 0x562   : > { %2194 = vadd.xlane.f32.xlu0 %v2193_v48 }
 0x5c7   : > { %v2198_v26 = vpop.xlane.xlu1 %2197 }
 0x5c9   : > { %v2201_v49 = vpop.xlane.xlu0 %2200 }
 0x5d3   : > { %v2207_v51 = vpop.xlane.xlu0 %2206 }
 0x5d7   : > { %v2216_v54 = vpop.xlane.xlu1 %2215 }
 0x5db   : > { %v2210_v52 = vpop.xlane.xlu0 %2209  ;;  %v2204_v57 = vpop.xlane.xlu1 %2203 }
 0x5df   : > { %v2219_v53 = vpop.xlane.xlu0 %2218  ;;  %v2222_v58 = vpop.xlane.xlu1 %2221 }
 0x5e3   : > { %v2213_v31 = vpop.xlane.xlu0 %2212  ;;  %v2192_v56 = vpop.xlane.xlu1 %2191 }
 0x5e7   : > { %v2189_v50 = vpop.xlane.xlu0 %2188 }
 0x5eb   : > { %v2195_v59 = vpop.xlane.xlu0 %2194 }
 0x5ec   : > { %4383 = vrcp.f32 %v2195_v59 }
 0x5ed   : > { %4385 = vrcp.f32 %v2198_v26 }
 0x5ee   : > { %4387 = vrcp.f32 %v2189_v50 }
 0x5ef   : > { %4389 = vrcp.f32 %v2201_v49 }
 0x5f0   : > { %4391 = vrcp.f32 %v2192_v56  ;;  %v4419_v56 = vld [vmem:[#allocation2] sm:$0xff] }
 0x5f1   : > { %4393 = vrcp.f32 %v2207_v51 }
 0x5f2   : > { %4395 = vrcp.f32 %v2219_v53 }
 0x5f3   : > { %4397 = vrcp.f32 %v2210_v52 }
 0x5f4   : > { %4399 = vrcp.f32 %v2213_v31 }
 0x5f5   : > { %4401 = vrcp.f32 %v2216_v54 }
 0x5f6   : > { %4403 = vrcp.f32 %v2204_v57  ;;  %v3840_v57 = vld [vmem:[%s4757_s1] ss:$0 sm:$0xff] }
 0x5f7   : > { %4405 = vrcp.f32 %v2222_v58 }
 0x5f9   : > { %v4384_v61 = vpop.eup %4383 }
 0x5fa   : > { %v4386_v63 = vpop.eup %4385 }
 0x5fb   : > { %v4388_v2 = vpop.eup %4387 }
 0x5fc   : > { %v4390_v8 = vpop.eup %4389 }
 0x5fd   : > { %v4392_v10 = vpop.eup %4391 }
 0x5fe   : > { %v4394_v18 = vpop.eup %4393 }
 0x5ff   : > { %v4396_v23 = vpop.eup %4395 }
 0x600   : > { %v4398_v27 = vpop.eup %4397 }
 0x601   : > { %v4400_v32 = vpop.eup %4399 }
 0x602   : > { %v4402_v33 = vpop.eup %4401 }
 0x603   : > { %v4992_v60 = vpop.f32.mrf.mxu1  ;;  %v4404_v36 = vpop.eup %4403 }
 0x604   : > { %v4080_v62 = vpop.f32.mrf.mxu0  ;;  %v2525_v37 = vmul.f32 %v4404_v36, %v4992_v60  ;;  %v4406_v38 = vpop.eup %4405 }
 0x605   : > { %v2522_v0 = vmul.f32 %v4384_v61, %v4080_v62  ;;  %v2362_v1 = vpop.f32.mrf.mxu1 }
 0x606   : > { %v2523_v3 = vmul.f32 %v4386_v63, %v2362_v1  ;;  %v2296_v4 = vpop.f32.mrf.mxu0  ;;  %v3849_v1 = vld [vmem:[%s4757_s1 + $0x1] ss:$0 sm:$0xff]  ;;  %s5214_s1 = sld [smem:[#allocation33_spill]] (!%p3907_p9) }
 0x607   : > { %2534 = vst.msk [vmem:[#allocation7 + $0x10] sm:$0xff] %vm1801_vm8, %v2522_v0  ;;  %v2520_v5 = vmul.f32 %v4388_v2, %v2296_v4  ;;  %v4089_v6 = vpop.f32.mrf.mxu1  ;;  %v4420_v2 = vld [vmem:[#allocation2 + $0x8] sm:$0xff] }
 0x608   : > { %2538 = vrot.lane.b32.xlu1 %v2523_v3, %s4518_s8  ;;  %v4081_v7 = vpop.f32.mrf.mxu0 }
 0x609   : > { %2532 = vst.msk [vmem:[#allocation7] sm:$0xff] %vm1801_vm8, %v2520_v5  ;;  %v2365_v9 = vpop.f32.mrf.mxu1 }
 0x60a   : > { %v2524_v11 = vmul.f32 %v4390_v8, %v2365_v9  ;;  %v2299_v12 = vpop.f32.mrf.mxu0  ;;  %v4421_v8 = vld [vmem:[#allocation3] sm:$0xff] }
 0x60b   : > { %v2521_v13 = vmul.f32 %v4392_v10, %v2299_v12 }
 0x60c   : > { %2540 = vrot.lane.b32.xlu0 %v2524_v11, %s4518_s8 }
 0x60d   : > { %2533 = vst.msk [vmem:[#allocation7 + $0x8] sm:$0xff] %vm1801_vm8, %v2521_v13 }
 0x613   : > { %v4104_v14 = vpop.f32.mrf.mxu1 }
 0x614   : > { %v4096_v15 = vpop.f32.mrf.mxu0  ;;  %v2531_v40 = vmul.f32 %v4406_v38, %v4104_v14 }
 0x615   : > { %v2494_v17 = vpop.f32.mrf.mxu1  ;;  %v2528_v39 = vmul.f32 %v4400_v32, %v4096_v15 }
 0x616   : > { %v2428_v19 = vpop.f32.mrf.mxu0  ;;  %v2529_v34 = vmul.f32 %v4402_v33, %v2494_v17 }
 0x617   : > { %v2526_v20 = vmul.f32 %v4394_v18, %v2428_v19  ;;  %v4105_v21 = vpop.f32.mrf.mxu1 }
 0x618   : > { %v4097_v22 = vpop.f32.mrf.mxu0 }
 0x619   : > { %v2497_v24 = vpop.f32.mrf.mxu1  ;;  %2554 = vrot.lane.b32.xlu1 %v2526_v20, %s4519_s14 }
 0x61a   : > { %v2530_v28 = vmul.f32 %v4396_v23, %v2497_v24  ;;  %v2431_v29 = vpop.f32.mrf.mxu0 }
 0x61b   : > { %v2527_v30 = vmul.f32 %v4398_v27, %v2431_v29  ;;  %v4333_v29 = vld [vmem:[%s4766_s7 + $0x8] sm:$0xff]  }
 0x61c   : > { %2572 = vrot.lane.b32.xlu0 %v2530_v28, %s4520_s24 }
 0x61d   : > { %2556 = vrot.lane.b32.xlu1 %v2527_v30, %s4519_s14  ;;  %v4334_v30 = vld [vmem:[%s4766_s7] sm:$0xff]  }
 0x620   : > { %2558 = vrot.lane.b32.xlu0 %v2528_v39, %s4519_s14 }
 0x621   : > { %2570 = vrot.lane.b32.xlu1 %v2529_v34, %s4520_s24 }
 0x625   : > { %2542 = vrot.lane.b32.xlu1 %v2525_v37, %s4518_s8 }
 0x629   : > { %2574 = vrot.lane.b32.xlu1 %v2531_v40, %s4520_s24 }
 0x67a   : > { %v2539_v42 = vpop.permute.xlu1 %2538 }
 0x67b   : > { %2548 = vst.msk [vmem:[#allocation7] sm:$0xff] %vm2547_vm11, %v2539_v42 }
 0x67e   : > { %v2541_v43 = vpop.permute.xlu0 %2540 }
 0x67f   : > { %2549 = vst.msk [vmem:[#allocation7 + $0x8] sm:$0xff] %vm2547_vm11, %v2541_v43  ;;  %v3853_v43 = vld [vmem:[%s4760_s3] ss:$0 sm:$0xff] }
 0x68b   : > { %v2555_v44 = vpop.permute.xlu1 %2554 }
 0x68c   : > { %2564 = vst.msk [vmem:[#allocation7] sm:$0xff] %vm2563_vm12, %v2555_v44 }
 0x68e   : > { %v2573_v46 = vpop.permute.xlu0 %2572 }
 0x68f   : > { %v2557_v45 = vpop.permute.xlu1 %2556 }
 0x690   : > { %2565 = vst.msk [vmem:[#allocation7 + $0x8] sm:$0xff] %vm2563_vm12, %v2557_v45 }
 0x691   : > { %2581 = vst.msk [vmem:[#allocation7 + $0x8] sm:$0xff] %vm2579_vm13, %v2573_v46 }
 0x692   : > { %v2559_v49 = vpop.permute.xlu0 %2558 }
 0x693   : > { %v2571_v47 = vpop.permute.xlu1 %2570 }
 0x694   : > { %2580 = vst.msk [vmem:[#allocation7] sm:$0xff] %vm2579_vm13, %v2571_v47  ;;  %v3854_v47 = vld [vmem:[%s4763_s0] ss:$0 sm:$0xff] }
 0x697   : > { %v2543_v48 = vpop.permute.xlu1 %2542 }
 0x698   : > { %2550 = vst.msk [vmem:[#allocation7 + $0x10] sm:$0xff] %vm2547_vm11, %v2543_v48  ;;  %v2584_v53 = vld [vmem:[#allocation7 + $0x8] sm:$0xff] }
 0x699   : > { %2566 = vst.msk [vmem:[#allocation7 + $0x10] sm:$0xff] %vm2563_vm12, %v2559_v49 }
 0x69b   : > { %v2575_v51 = vpop.permute.xlu1 %2574  ;;  %v2583_v52 = vld [vmem:[#allocation7] sm:$0xff] }
 0x69c   : > { %2582 = vst.msk [vmem:[#allocation7 + $0x10] sm:$0xff] %vm2579_vm13, %v2575_v51  ;;  %v2590_v26 = vpack.c.bf16 %v2584_v53, %v2583_v52  ;;  %v3870_v51 = vld [vmem:[%s4760_s3 + $0x1] ss:$0 sm:$0xff]  ;;  %s5211_s3 = sld [smem:[#allocation31_spill]] (!%p3907_p9) }
 0x69e   : > { %4111 = vmatmul.mubr.msk.bf16.vlgmr.msra.gmra.mxu0 %vm1386_vm5, %v2590_v26 }
 0x69f   : > { %4126 = vmatprep.mubr.msk.bf16.mxu0 %vm4506_vm6, %v4505_v55  ;;  %4123 = vmatpush3.bf16.msra.mxu0 %v4333_v29 }
 0x6a0   : > { %4124 = vmatprep.subr.bf16.mxu0 %v4505_v55 }
 0x6a3   : > { %v2655_v54 = vld [vmem:[#allocation7 + $0x10] sm:$0xff]  ;;  %4125 = vmatpush3.bf16.msra.mxu0 %v4334_v30 }
 0x6a4   : > { %v2663_v31 = vpack.c.bf16 %v2655_v54, %v2655_v54  ;;  %4150 = vmatprep.subr.bf16.mxu0 %v4505_v55  ;;  %v4335_v54 = vld [vmem:[%s4766_s7 + $0x18] sm:$0xff]  }
 0x6a6   : > { %4119 = vmatmul.mubr.msk.bf16.vlgmr.msra.gmra.mxu1 %vm1386_vm5, %v2663_v31 }
 0x6a7   : > { %4146 = vmatprep.mubr.msk.bf16.mxu1 %vm4506_vm6, %v4505_v55 }
 0x75e   : > { %v2646_v50 = vpop.f32.mrf.mxu0 }
 0x75f   : > { %v2647_v58 = vadd.f32 %v3840_v57, %v2646_v50  ;;  %v3871_v50 = vld [vmem:[%s4763_s0 + $0x1] ss:$0 sm:$0xff]  ;;  %s5215_s0 = sld [smem:[#allocation29_spill]] (!%p3907_p9) }
 0x760   : > { %v4112_v59 = vpop.f32.mrf.mxu0 }
 0x761   : > { %v5019_v60 = vadd.f32 %v4419_v56, %v2647_v58  ;;  %v4336_v58 = vld [vmem:[%s4766_s7 + $0x10] sm:$0xff]   ;;  %s4523_s7 = smov (!%p3907_p9), 32  }
 0x762   : > { %v2649_v61 = vpop.f32.mrf.mxu0 }
 0x763   : > { %v2650_v62 = vadd.f32 %v3840_v57, %v2649_v61  ;;  %v2728_v63 = vsel %vm1386_vm5, %v5019_v60, 0.0  ;;  %v4337_v61 = vld [vmem:[%s4775_s19 + $0x38] sm:$0xff]  }
 0x764   : > { %2729 = vadd.xlane.f32.xlu0 %v2728_v63  ;;  %v4113_v0 = vpop.f32.mrf.mxu0  ;;  %4131 = vmatpush3.bf16.msra.mxu1 %v4337_v61  ;;  %v4339_v63 = vld [vmem:[%s4775_s19 + $0x78] sm:$0xff]  }
 0x765   : > { %v5024_v3 = vadd.f32 %v4420_v2, %v2650_v62  ;;  %4132 = vmatprep.subr.bf16.mxu1 %v4505_v55  ;;  %v4338_v62 = vld [vmem:[%s4775_s19 + $0x30] sm:$0xff]   ;;  %v4340_v0 = vld [vmem:[%s4775_s19 + $0x28] sm:$0xff]   ;;  %v4342_v2 = vld [vmem:[%s4775_s19 + $0x20] sm:$0xff]  }
 0x766   : > { %v2719_v4 = vpop.f32.mrf.mxu1 }
 0x767   : > { %v2720_v5 = vadd.f32 %v3849_v1, %v2719_v4  ;;  %v2731_v6 = vsel %vm1386_vm5, %v5024_v3, 0.0  ;;  %v4341_v1 = vld [vmem:[%s4775_s19 + $0x70] sm:$0xff]   ;;  %v4343_v4 = vld [vmem:[%s4775_s19 + $0x68] sm:$0xff]  }
 0x768   : > { %2732 = vadd.xlane.f32.xlu1 %v2731_v6  ;;  %v4120_v7 = vpop.f32.mrf.mxu1  ;;  %4133 = vmatpush3.bf16.msra.mxu1 %v4338_v62  ;;  %v4345_v6 = vld [vmem:[%s4775_s19 + $0x60] sm:$0xff]  }
 0x769   : > { %v5028_v9 = vadd.f32 %v4421_v8, %v2720_v5  ;;  %4134 = vmatprep.subr.bf16.mxu1 %v4505_v55  ;;  %v4344_v5 = vld [vmem:[%s4775_s19 + $0x18] sm:$0xff]   ;;  %v4346_v7 = vld [vmem:[%s4775_s19 + $0x10] sm:$0xff]   ;;  %v3898_v62 = vld [vmem:[%s4772_s29 + $0x1] ss:$0 sm:$0xff] }
 0x76a   : > { %v2722_v10 = vpop.f32.mrf.mxu1  ;;  %v4347_v8 = vld [vmem:[%s4775_s19 + $0x58] sm:$0xff]  }
 0x76b   : > { %v2975_v11 = vsel %vm1386_vm5, %v5028_v9, 0.0  ;;  %v4348_v10 = vld [vmem:[%s4775_s19 + $0x8] sm:$0xff]  }
 0x76c   : > { %2976 = vadd.xlane.f32.xlu0 %v2975_v11  ;;  %v4121_v12 = vpop.f32.mrf.mxu1  ;;  %4135 = vmatpush3.bf16.msra.mxu1 %v4340_v0  ;;  %v4349_v11 = vld [vmem:[%s4775_s19 + $0x50] sm:$0xff]  }
 0x76d   : > { %4136 = vmatprep.subr.bf16.mxu1 %v4505_v55  ;;  %v4350_v12 = vld [vmem:[%s4775_s19] sm:$0xff]  }
 0x770   : > { %4137 = vmatpush3.bf16.msra.mxu1 %v4342_v2 }
 0x771   : > { %4138 = vmatprep.subr.bf16.mxu1 %v4505_v55 }
 0x774   : > { %4139 = vmatpush3.bf16.msra.mxu1 %v4344_v5 }
 0x775   : > { %4140 = vmatprep.subr.bf16.mxu1 %v4505_v55 }
 0x778   : > { %4141 = vmatpush3.bf16.msra.mxu1 %v4346_v7 }
 0x779   : > { %4142 = vmatprep.subr.bf16.mxu1 %v4505_v55 }
 0x77c   : > { %4143 = vmatpush3.bf16.msra.mxu1 %v4348_v10 }
 0x77d   : > { %4144 = vmatprep.subr.bf16.mxu1 %v4505_v55 }
 0x780   : > { %4145 = vmatpush3.bf16.msra.mxu1 %v4350_v12 }
 0x7ed   : > { %v2730_v13 = vpop.xlane.xlu0 %2729 }
 0x7ee   : > { %v2734_v14 = vmul.f32 0.03125, %v2730_v13  ;;  %v4351_v13 = vld [vmem:[%s4775_s19 + $0x48] sm:$0xff]  }
 0x7f0   : > { %v2736_v15 = vsub.f32 %v5019_v60, %v2734_v14  ;;  %v4352_v14 = vld [vmem:[%s4775_s19 + $0x40] sm:$0xff]   ;;  %s5212_s19 = sld [smem:[#allocation26_spill]] (!%p3907_p9) }
 0x7f1   : > { %v2733_v16 = vpop.xlane.xlu1 %2732 }
 0x7f2   : > { %v2735_v17 = vmul.f32 0.03125, %v2733_v16  ;;  %v2738_v18 = vmul.f32 %v2736_v15, %v2736_v15 }
 0x7f4   : > { %v2737_v19 = vsub.f32 %v5024_v3, %v2735_v17  ;;  %v2740_v20 = vsel %vm1386_vm5, %v2738_v18, 0.0 }
 0x7f5   : > { %2741 = vadd.xlane.f32.xlu0 %v2740_v20  ;;  %v2977_v21 = vpop.xlane.xlu0 %2976 }
 0x7f6   : > { %v2978_v22 = vmul.f32 0.03125, %v2977_v21  ;;  %v2739_v23 = vmul.f32 %v2737_v19, %v2737_v19 }
 0x7f8   : > { %v2979_v24 = vsub.f32 %v5028_v9, %v2978_v22  ;;  %v2743_v25 = vsel %vm1386_vm5, %v2739_v23, 0.0 }
 0x7f9   : > { %2744 = vadd.xlane.f32.xlu0 %v2743_v25 }
 0x7fa   : > { %v2980_v27 = vmul.f32 %v2979_v24, %v2979_v24 }
 0x7fc   : > { %v2981_v28 = vsel %vm1386_vm5, %v2980_v27, 0.0 }
 0x7fd   : > { %2982 = vadd.xlane.f32.xlu1 %v2981_v28 }
 0x87e   : > { %v2742_v32 = vpop.xlane.xlu0 %2741 }
 0x87f   : > { %v2746_v33 = vmul.f32 0.03125, %v2742_v32 }
 0x881   : > { %v2748_v39 = vadd.f32 1e-05, %v2746_v33 }
 0x882   : > { %v2745_v41 = vpop.xlane.xlu0 %2744 }
 0x883   : > { %4407 = vrsqrt.f32 %v2748_v39  ;;  %v2747_v34 = vmul.f32 0.03125, %v2745_v41 }
 0x885   : > { %v2749_v35 = vadd.f32 1e-05, %v2747_v34 }
 0x886   : > { %v2983_v36 = vpop.xlane.xlu1 %2982 }
 0x887   : > { %4409 = vrsqrt.f32 %v2749_v35  ;;  %v2984_v37 = vmul.f32 0.03125, %v2983_v36 }
 0x889   : > { %v2985_v38 = vadd.f32 1e-05, %v2984_v37 }
 0x88b   : > { %4411 = vrsqrt.f32 %v2985_v38 }
 0x890   : > { %v4408_v40 = vpop.eup %4407 }
 0x891   : > { %v2752_v42 = vmul.f32 %v4408_v40, %v2736_v15  ;;  %v3855_v15 = vld [vmem:[%s4769_s21] ss:$0 sm:$0xff] }
 0x893   : > { %v2760_v46 = vmul.f32 %v3853_v43, %v2752_v42 }
 0x894   : > { %v4410_v44 = vpop.eup %4409 }
 0x895   : > { %v2753_v45 = vmul.f32 %v4410_v44, %v2737_v19  ;;  %v2768_v53 = vadd.f32 %v3854_v47, %v2760_v46 }
 0x897   : > { %v2761_v48 = vmul.f32 %v3853_v43, %v2753_v45 }
 0x898   : > { %v4412_v49 = vpop.eup %4411 }
 0x899   : > { %v2987_v52 = vmul.f32 %v4412_v49, %v2979_v24  ;;  %v2769_v26 = vadd.f32 %v3854_v47, %v2761_v48  ;;  %v3877_v24 = vld [vmem:[%s4769_s21 + $0x1] ss:$0 sm:$0xff]  ;;  %s5209_s21 = sld [smem:[#allocation32_spill]] (!%p3907_p9) }
 0x89b   : > { %v2775_v31 = vpack.c.bf16 %v2769_v26, %v2768_v53  ;;  %v2994_v57 = vmul.f32 %v3870_v51, %v2987_v52 }
 0x89d   : > { %4127 = vmatmul.mubr.msk.bf16.vlgmr.msra.gmra.mxu0 %vm1386_vm5, %v2775_v31  ;;  %v3001_v59 = vadd.f32 %v3871_v50, %v2994_v57 }
 0x89e   : > { %4151 = vmatpush3.bf16.msra.mxu0 %v4335_v54  ;;  %4154 = vmatprep.mubr.msk.bf16.mxu0 %vm4506_vm6, %v4505_v55 }
 0x89f   : > { %4152 = vmatprep.subr.bf16.mxu0 %v4505_v55  ;;  %v3009_v56 = vpack.c.bf16 %v3001_v59, %v3001_v59 }
 0x8a2   : > { %4153 = vmatpush3.bf16.msra.mxu0 %v4336_v58  ;;  %v3859_v58 = vld [vmem:[%s4772_s29] ss:$0 sm:$0xff]  ;;  %s5210_s29 = sld [smem:[#allocation30_spill]] (!%p3907_p9) }
 0x8a3   : > { %4158 = vmatprep.subr.bf16.mxu0 %v4505_v55 }
 0x8a5   : > { %4155 = vmatmul.mubr.msk.bf16.vlgmr.msra.gmra.mxu0 %vm1386_vm5, %v3009_v56 }
 0x8a6   : > { %4174 = vmatprep.mubr.msk.bf16.mxu0 %vm4506_vm6, %v4505_v55  ;;  %4159 = vmatpush3.bf16.msra.mxu0 %v4339_v63 }
 0x8a7   : > { %4160 = vmatprep.subr.bf16.mxu0 %v4505_v55 }
 0x8aa   : > { %4161 = vmatpush3.bf16.msra.mxu0 %v4341_v1 }
 0x8ab   : > { %4162 = vmatprep.subr.bf16.mxu0 %v4505_v55 }
 0x8ae   : > { %4163 = vmatpush3.bf16.msra.mxu0 %v4343_v4 }
 0x8af   : > { %4164 = vmatprep.subr.bf16.mxu0 %v4505_v55 }
 0x8b2   : > { %4165 = vmatpush3.bf16.msra.mxu0 %v4345_v6 }
 0x8b3   : > { %4166 = vmatprep.subr.bf16.mxu0 %v4505_v55 }
 0x8b6   : > { %4167 = vmatpush3.bf16.msra.mxu0 %v4347_v8 }
 0x8b7   : > { %4168 = vmatprep.subr.bf16.mxu0 %v4505_v55 }
 0x8ba   : > { %4169 = vmatpush3.bf16.msra.mxu0 %v4349_v11 }
 0x8bb   : > { %4170 = vmatprep.subr.bf16.mxu0 %v4505_v55 }
 0x8be   : > { %4171 = vmatpush3.bf16.msra.mxu0 %v4351_v13 }
 0x8bf   : > { %4172 = vmatprep.subr.bf16.mxu0 %v4505_v55 }
 0x8c2   : > { %4173 = vmatpush3.bf16.msra.mxu0 %v4352_v14 }
 0x95d   : > { %v2831_v16 = vpop.f32.mrf.mxu0 }
 0x95e   : > { %v2832_v17 = vadd.f32 %v3855_v15, %v2831_v16 }
 0x95f   : > { %v4128_v18 = vpop.f32.mrf.mxu0 }
 0x960   : > { %v2838_v19 = vmul.f32 %v2832_v17, %v2832_v17 }
 0x961   : > { %v2834_v20 = vpop.f32.mrf.mxu0 }
 0x962   : > { %v2840_v21 = vmul.f32 %v2838_v19, %v2832_v17  ;;  %v2835_v22 = vadd.f32 %v3855_v15, %v2834_v20 }
 0x963   : > { %v4129_v23 = vpop.f32.mrf.mxu0 }
 0x964   : > { %v2842_v25 = vmul.f32 0.044715, %v2840_v21  ;;  %v2839_v27 = vmul.f32 %v2835_v22, %v2835_v22 }
 0x965   : > { %v3065_v28 = vpop.f32.mrf.mxu0 }
 0x966   : > { %v2844_v29 = vadd.f32 %v2842_v25, %v2832_v17  ;;  %v2841_v30 = vmul.f32 %v2839_v27, %v2835_v22  ;;  %v3066_v32 = vadd.f32 %v3877_v24, %v3065_v28 }
 0x967   : > { %v4156_v33 = vpop.f32.mrf.mxu0 }
 0x968   : > { %v2846_v55 = vmul.f32 0.7978846, %v2844_v29  ;;  %v2843_v39 = vmul.f32 0.044715, %v2841_v30  ;;  %v3071_v41 = vmul.f32 %v3066_v32, %v3066_v32 }
 0x969   : > { %v3068_v34 = vpop.f32.mrf.mxu0 }
 0x96a   : > { %4413 = vtanh.f32 %v2846_v55  ;;  %v2845_v35 = vadd.f32 %v2843_v39, %v2835_v22  ;;  %v3072_v36 = vmul.f32 %v3071_v41, %v3066_v32 }
 0x96b   : > { %v4157_v37 = vpop.f32.mrf.mxu0 }
 0x96c   : > { %v2847_v38 = vmul.f32 0.7978846, %v2845_v35  ;;  %v3073_v40 = vmul.f32 0.044715, %v3072_v36 }
 0x96e   : > { %4415 = vtanh.f32 %v2847_v38  ;;  %v3074_v42 = vadd.f32 %v3073_v40, %v3066_v32 }
 0x970   : > { %v3075_v43 = vmul.f32 0.7978846, %v3074_v42 }
 0x972   : > { %4417 = vtanh.f32 %v3075_v43 }
 0x977   : > { %v4414_v44 = vpop.eup %4413 }
 0x978   : > { %v2850_v45 = vadd.f32 1.0, %v4414_v44 }
 0x97a   : > { %v2852_v47 = vmul.f32 0.5, %v2850_v45 }
 0x97b   : > { %v4416_v46 = vpop.eup %4415 }
 0x97c   : > { %v2851_v48 = vadd.f32 1.0, %v4416_v46  ;;  %v2854_v52 = vmul.f32 %v2852_v47, %v2832_v17 }
 0x97e   : > { %v2853_v49 = vmul.f32 0.5, %v2851_v48 }
 0x97f   : > { %v4418_v51 = vpop.eup %4417 }
 0x980   : > { %v2855_v53 = vmul.f32 %v2853_v49, %v2835_v22  ;;  %v3077_v26 = vadd.f32 1.0, %v4418_v51 }
 0x982   : > { %v2873_v54 = vpack.c.bf16 %v2855_v53, %v2854_v52  ;;  %v3078_v31 = vmul.f32 0.5, %v3077_v26 }
 0x984   : > { %4147 = vmatmul.mubr.bf16.vlgmr.msra.gmra.mxu1 %v2873_v54  ;;  %v3079_v57 = vmul.f32 %v3078_v31, %v3066_v32 }
 0x986   : > { %v3099_v50 = vpack.c.bf16 %v3079_v57, %v3079_v57 }
 0x988   : > { %4175 = vmatmul.mubr.bf16.vlgmr.msra.gmra.mxu0 %v3099_v50 }
 0xa44   : > { %v2962_v59 = vpop.f32.mrf.mxu1 }
 0xa45   : > { %v2963_v56 = vadd.f32 %v3859_v58, %v2962_v59 }
 0xa46   : > { %v4148_v61 = vpop.f32.mrf.mxu1 }
 0xa47   : > { %v2969_v63 = vadd.f32 %v2963_v56, %v5019_v60 }
 0xa48   : > { %v2965_v0 = vpop.f32.mrf.mxu1  ;;  %v3188_v1 = vpop.f32.mrf.mxu0 }
 0xa49   : > { %3195 = vst.msk [vmem:[#allocation2] sm:$0xff] %vm1386_vm5, %v2969_v63  ;;  %v2966_v2 = vadd.f32 %v3859_v58, %v2965_v0  ;;  %v3189_v4 = vadd.f32 %v3898_v62, %v3188_v1 }
 0xa4a   : > { %v4149_v5 = vpop.f32.mrf.mxu1  ;;  %v4176_v6 = vpop.f32.mrf.mxu0  ;;  %3201 = sbr.rel (%p3907_p9) target bundleno = 3268 (0xcc4), region = 144 }
 0xa4b   : > { %v2970_v7 = vadd.f32 %v2966_v2, %v5024_v3  ;;  %v3194_v8 = vadd.f32 %v3189_v4, %v5028_v9 }
 0xa4c   : > { %v3191_v10 = vpop.f32.mrf.mxu0 }
 0xa4d   : > { %3196 = vst.msk [vmem:[#allocation2 + $0x8] sm:$0xff] %vm1386_vm5, %v2970_v7  ;;  %3197 = vst.msk [vmem:[#allocation3] sm:$0xff] %vm1386_vm5, %v3194_v8 }
 0xa4e   : > { %v4177_v11 = vpop.f32.mrf.mxu0 }
 0xa4f   : > { %v3307_v60 = vsel %vm1386_vm5, %v2969_v63, 0.0  ;;  %v3310_v12 = vsel %vm1386_vm5, %v2970_v7, 0.0  ;;  %v3204_v13 = vsel %vm1386_vm5, %v3194_v8, 0.0  ;;  %v4422_v28 = vld [vmem:[%s5208_s17 + $0x8] sm:$0xff]   ;;  %v4521_v30 = vmov 0.0   ;;  %v4424_v32 = vld [vmem:[%s5208_s17] sm:$0xff]  }
 0xa50   : > { %3308 = vadd.xlane.f32.xlu0 %v3307_v60  ;;  %3205 = vadd.xlane.f32.xlu1 %v3204_v13  ;;  %v4423_v29 = vld [vmem:[%s5209_s21 + $0x8] sm:$0xff]   ;;  %v4425_v33 = vld [vmem:[%s5209_s21] sm:$0xff]   ;;  %vm4522_vm14 = vmmov 0   ;;  %vm3303_vm15 = vcmask 1047808  }
 0xa51   : > { %4178 = vmatprep.subr.bf16.mxu0 %v4521_v30  ;;  %4186 = vmatprep.subr.bf16.mxu1 %v4521_v30  ;;  %v3914_v43 = vld [vmem:[%s5210_s29] ss:$0 sm:$0xff] }
 0xa52   : > { %4179 = vmatpush3.bf16.msra.mxu0 %v4422_v28  ;;  %4187 = vmatpush3.bf16.msra.mxu1 %v4423_v29  ;;  %v3915_v45 = vld [vmem:[%s5211_s3] ss:$0 sm:$0xff] }
 0xa53   : > { %4180 = vmatprep.subr.bf16.mxu0 %v4521_v30  ;;  %4188 = vmatprep.subr.bf16.mxu1 %v4521_v30  ;;  %v3908_v49 = vld [vmem:[%s5212_s19] ss:$0 sm:$0xff] }
 0xa54   : > { %3311 = vadd.xlane.f32.xlu0 %v3310_v12  ;;  %4182 = vmatprep.mubr.msk.bf16.mxu0 %vm4522_vm14, %v4521_v30  ;;  %v3909_v26 = vld [vmem:[%s5213_s15] ss:$0 sm:$0xff] }
 0xa55   : > { %4190 = vmatprep.mubr.msk.bf16.mxu1 %vm4522_vm14, %v4521_v30  ;;  %v3916_v56 = vld [vmem:[%s5214_s1] ss:$0 sm:$0xff] }
 0xa56   : > { %4181 = vmatpush3.bf16.msra.mxu0 %v4424_v32  ;;  %4189 = vmatpush3.bf16.msra.mxu1 %v4425_v33  ;;  %v3910_v61 = vld [vmem:[%s5215_s0] ss:$0 sm:$0xff] }
 0xad9   : > { %v3309_v3 = vpop.xlane.xlu0 %3308  ;;  %v3206_v9 = vpop.xlane.xlu1 %3205 }
 0xada   : > { %v3313_v14 = vmul.f32 0.03125, %v3309_v3  ;;  %v3207_v15 = vmul.f32 0.03125, %v3206_v9 }
 0xadc   : > { %v3315_v16 = vsub.f32 %v2969_v63, %v3313_v14  ;;  %v3208_v17 = vsub.f32 %v3194_v8, %v3207_v15 }
 0xadd   : > { %v3312_v18 = vpop.xlane.xlu0 %3311 }
 0xade   : > { %v3314_v19 = vmul.f32 0.03125, %v3312_v18  ;;  %v3317_v20 = vmul.f32 %v3315_v16, %v3315_v16  ;;  %v3209_v21 = vmul.f32 %v3208_v17, %v3208_v17 }
 0xae0   : > { %v3316_v22 = vsub.f32 %v2970_v7, %v3314_v19  ;;  %v3319_v23 = vsel %vm1386_vm5, %v3317_v20, 0.0  ;;  %v3210_v25 = vsel %vm1386_vm5, %v3209_v21, 0.0 }
 0xae1   : > { %3320 = vadd.xlane.f32.xlu1 %v3319_v23 }
 0xae2   : > { %v3318_v24 = vmul.f32 %v3316_v22, %v3316_v22 }
 0xae4   : > { %v3322_v27 = vsel %vm1386_vm5, %v3318_v24, 0.0 }
 0xae5   : > { %3323 = vadd.xlane.f32.xlu0 %v3322_v27  ;;  %3211 = vadd.xlane.f32.xlu1 %v3210_v25 }
 0xb6a   : > { %v3321_v55 = vpop.xlane.xlu1 %3320 }
 0xb6b   : > { %v3325_v39 = vmul.f32 0.03125, %v3321_v55 }
 0xb6d   : > { %v3327_v41 = vadd.f32 1e-05, %v3325_v39 }
 0xb6e   : > { %v3324_v34 = vpop.xlane.xlu0 %3323  ;;  %v3212_v35 = vpop.xlane.xlu1 %3211 }
 0xb6f   : > { %4426 = vrsqrt.f32 %v3327_v41  ;;  %v3326_v36 = vmul.f32 0.03125, %v3324_v34  ;;  %v3213_v37 = vmul.f32 0.03125, %v3212_v35 }
 0xb71   : > { %v3328_v38 = vadd.f32 1e-05, %v3326_v36  ;;  %v3214_v40 = vadd.f32 1e-05, %v3213_v37 }
 0xb73   : > { %4428 = vrsqrt.f32 %v3328_v38 }
 0xb74   : > { %4430 = vrsqrt.f32 %v3214_v40 }
 0xb7c   : > { %v4427_v42 = vpop.eup %4426 }
 0xb7d   : > { %v3331_v44 = vmul.f32 %v4427_v42, %v3315_v16 }
 0xb7f   : > { %v3339_v46 = vmul.f32 %v3914_v43, %v3331_v44 }
 0xb80   : > { %v4429_v47 = vpop.eup %4428 }
 0xb81   : > { %v4431_v48 = vpop.eup %4430  ;;  %v3332_v51 = vmul.f32 %v4429_v47, %v3316_v22  ;;  %v3347_v52 = vadd.f32 %v3915_v45, %v3339_v46 }
 0xb82   : > { %v3216_v53 = vmul.f32 %v4431_v48, %v3208_v17 }
 0xb83   : > { %v3340_v54 = vmul.f32 %v3914_v43, %v3332_v51  ;;  %3349 = vst.msk [vmem:[%s4739_s13] sm:$0xff] %vm1386_vm5, %v3347_v52 }
 0xb84   : > { %v3223_v31 = vmul.f32 %v3908_v49, %v3216_v53 }
 0xb85   : > { %v3348_v57 = vadd.f32 %v3915_v45, %v3340_v54 }
 0xb86   : > { %v3230_v50 = vadd.f32 %v3909_v26, %v3223_v31 }
 0xb87   : > { %v3356_v58 = vpack.c.bf16 %v3348_v57, %v3347_v52  ;;  %3350 = vst.msk [vmem:[%s4739_s13 + $0x8] sm:$0xff] %vm1386_vm5, %v3348_v57 }
 0xb88   : > { %v3237_v59 = vpack.c.bf16 %v3230_v50, %v3230_v50  ;;  %3231 = vst.msk [vmem:[%s4732_s18] sm:$0xff] %vm1386_vm5, %v3230_v50 }
 0xb89   : > { %4191 = vmatmul.mubr.msk.bf16.vlgmr.msra.gmra.mxu1 %vm1386_vm5, %v3356_v58 }
 0xb8a   : > { %4183 = vmatmul.mubr.msk.bf16.vlgmr.msra.gmra.mxu0 %vm1386_vm5, %v3237_v59 }
 0xc49   : > { %v3412_v62 = vpop.f32.mrf.mxu1 }
 0xc4a   : > { %v3293_v63 = vpop.f32.mrf.mxu0  ;;  %v3413_v0 = vadd.f32 %v3916_v56, %v3412_v62 }
 0xc4b   : > { %v3294_v1 = vadd.f32 %v3910_v61, %v3293_v63  ;;  %v4192_v2 = vpop.f32.mrf.mxu1 }
 0xc4c   : > { %v4184_v4 = vpop.f32.mrf.mxu0  ;;  %3421 = vrot.lane.b32.xlu1 %v3413_v0, %s4523_s7 }
 0xc4d   : > { %3300 = vrot.lane.b32.xlu0 %v3294_v1, %s4523_s7  ;;  %v3415_v5 = vpop.f32.mrf.mxu1 }
 0xc4e   : > { %v3296_v6 = vpop.f32.mrf.mxu0  ;;  %v3416_v7 = vadd.f32 %v3916_v56, %v3415_v5 }
 0xc4f   : > { %v4193_v8 = vpop.f32.mrf.mxu1 }
 0xc50   : > { %v4185_v10 = vpop.f32.mrf.mxu0  ;;  %3423 = vrot.lane.b32.xlu1 %v3416_v7, %s4523_s7 }
 0xcbe   : > { %v3422_v11 = vpop.permute.xlu1 %3421 }
 0xcbf   : > { %3427 = vst.msk [vmem:[%s4739_s13] sm:$0xff] %vm3303_vm15, %v3422_v11  ;;  %v3301_v60 = vpop.permute.xlu0 %3300 }
 0xcc0   : > { %3304 = vst.msk [vmem:[%s4732_s18] sm:$0xff] %vm3303_vm15, %v3301_v60 }
 0xcc2   : > { %v3424_v12 = vpop.permute.xlu1 %3423 }
 0xcc3   : > { %3428 = vst.msk [vmem:[%s4739_s13 + $0x8] sm:$0xff] %vm3303_vm15, %v3424_v12 }
 0xcc4 PF: > { %s5216_s22 = sld [smem:[#allocation38_spill]] }
 0xcc5   : > { %s5217_s15 = sld [smem:[#allocation36_spill]] }
 0xcc6   : > { %s5218_s16 = sld [smem:[#allocation37_spill]] }
 0xcc7   : > { %s5219_s18 = sld [smem:[#allocation39_spill]] }
 0xcca   : > { %s72_s23 = sadd.s32 1, %s5216_s22   ;;  %s5220_s22 = sld [smem:[#allocation40_spill]] }
 0xccb   : > { %p69_p10 = scmp.ge.s32.totalorder %s72_s23, 6  }
 0xccd   :  { %71 = sbr.rel (!%p69_p10) target bundleno = 65 (0x41), region = 285 }

</bundles_post_ra>
